<compile_context>
chip_gen: v5e
topology: v5e:2x2
jax: 0.10.0
libtpu: 0.0.40
codegen_flags: <defaults>
</compile_context>

<pallas_src>
import functools

import jax
import jax.numpy as jnp
from jax.experimental import pallas as pl
from jax.experimental.pallas import tpu as pltpu  # noqa: F401  (kept for parity)


def _seq2seq_kernel(src_ids_ref, trg_ids_ref, valid_ref, bias_ref,
                    eemb_ref, demb_ref,
                    ewih_ref, ewhh_ref, ebih_ref, ebhh_ref,
                    wbr_ref, bbr_ref,
                    waenc_ref, ba_ref, wahrep_ref, vsel_ref,
                    wihy_ref, wihc_ref, dwhh_ref, dbih_ref, dbhh_ref,
                    wouth_ref, woutc_ref, wouty_ref, bout_ref,
                    logp_ref, pred_ref):
    """Fused encoder + attention-decoder forward (single invocation)."""
    f32 = jnp.float32
    B, S = valid_ref.shape                     # padded batch, src length
    Td = trg_ids_ref.shape[0] // B             # decoder steps
    H = ewhh_ref.shape[0]
    VE = eemb_ref.shape[0]                     # padded embedding-vocab rows
    VP = wouth_ref.shape[1]                    # lane-padded output vocab

    def gru(gi, gh, h):
        # PyTorch GRU gate order: [r | z | n]
        r = jax.nn.sigmoid(gi[:, 0 * H:1 * H] + gh[:, 0 * H:1 * H])
        z = jax.nn.sigmoid(gi[:, 1 * H:2 * H] + gh[:, 1 * H:2 * H])
        n = jnp.tanh(gi[:, 2 * H:3 * H] + r * gh[:, 2 * H:3 * H])
        return (1.0 - z) * n + z * h

    def embed(ids_col, emb):
        # in-kernel embedding gather via one-hot matmul (vocab is tiny)
        n = ids_col.shape[0]
        onehot = (jax.lax.broadcasted_iota(jnp.int32, (n, VE), 1)
                  == ids_col).astype(f32)
        return jnp.dot(onehot, emb, preferred_element_type=f32)   # [n, E]

    valid = valid_ref[...]                     # [B, S]  1/0 per (batch, step)
    bias = bias_ref[...]                       # [B, S]  additive attn bias
    ewhh = ewhh_ref[...]; ebhh = ebhh_ref[...]
    waenc = waenc_ref[...]; ba = ba_ref[...]
    wahrep = wahrep_ref[...]                   # [H, S*A]  Wa_h replicated over S
    vsel = vsel_ref[...]                       # [S*A, S]  v folded into selector
    wihc = wihc_ref[...]; dwhh = dwhh_ref[...]; dbhh = dbhh_ref[...]

    # ---- hoisted input-side projections (independent of the recurrences) ----
    src_x = embed(src_ids_ref[...], eemb_ref[...])                    # [S*B, E]
    gi_enc = jnp.dot(src_x, ewih_ref[...],
                     preferred_element_type=f32) + ebih_ref[...]      # [S*B, 3H]
    y_x = embed(trg_ids_ref[...], demb_ref[...])                      # [Td*B, E]
    gi_y = jnp.dot(y_x, wihy_ref[...],
                   preferred_element_type=f32) + dbih_ref[...]        # [Td*B, 3H]

    # ---------------- encoder: unrolled masked GRU over the source ----------
    # pack_padded_sequence semantics: padded steps do not update the hidden
    # state and emit zero outputs.
    h = jnp.zeros((B, H), f32)
    eh_list = []                              # encoder outputs, per step [B, H]
    ee_list = []                              # enc @ Wa_enc + ba, per step [B, A]
    for t in range(S):
        vld = valid[:, t:t + 1]                                       # [B, 1]
        gi = gi_enc[t * B:(t + 1) * B, :]                             # [B, 3H]
        gh = jnp.dot(h, ewhh, preferred_element_type=f32) + ebhh
        h_new = gru(gi, gh, h)
        h = h + vld * (h_new - h)             # freeze past src_len
        eh = h * vld                          # zero padded outputs
        eh_list.append(eh)
        ee_list.append(jnp.dot(eh, waenc, preferred_element_type=f32) + ba)
    eenc = jnp.concatenate(ee_list, axis=1)                           # [B, S*A]

    # bridge: decoder initial hidden from encoder final state
    hd = jnp.tanh(jnp.dot(h, wbr_ref[...], preferred_element_type=f32)
                  + bbr_ref[...])

    # ---------------- decoder: unrolled attention + GRU cell ----------------
    hd_list = []
    ctx_list = []
    for t in range(Td):
        # Bahdanau attention, lane-packed: energy[b, s*A+a]
        hpart = jnp.dot(hd, wahrep, preferred_element_type=f32)       # [B, S*A]
        energy = jnp.tanh(eenc + hpart)                               # [B, S*A]
        scores = (jnp.dot(energy, vsel, preferred_element_type=f32)
                  + bias)                                             # [B, S]
        m = jnp.max(scores, axis=1, keepdims=True)
        e = jnp.exp(scores - m)
        denom = jnp.sum(e, axis=1, keepdims=True)
        attn = e * pl.reciprocal(denom, approx=True)                  # [B, S]
        ctx = jnp.zeros((B, H), f32)
        for s in range(S):
            ctx = ctx + attn[:, s:s + 1] * eh_list[s]                 # [B, H]

        # GRU cell on [y ; context] via split weights (y part hoisted)
        gi = gi_y[t * B:(t + 1) * B, :] + jnp.dot(
            ctx, wihc, preferred_element_type=f32)
        gh = jnp.dot(hd, dwhh, preferred_element_type=f32) + dbhh
        hd = gru(gi, gh, hd)
        hd_list.append(hd)
        ctx_list.append(ctx)

    # -------- deferred output projection + log-softmax + argmax -------------
    hs = jnp.concatenate(hd_list, axis=0)                             # [Td*B, H]
    cs = jnp.concatenate(ctx_list, axis=0)                            # [Td*B, H]
    logits = (jnp.dot(hs, wouth_ref[...], preferred_element_type=f32)
              + jnp.dot(cs, woutc_ref[...], preferred_element_type=f32)
              + jnp.dot(y_x, wouty_ref[...], preferred_element_type=f32)
              + bout_ref[...])                                        # [Td*B, VP]
    lmax = jnp.max(logits, axis=-1, keepdims=True)
    lse = lmax + jnp.log(jnp.sum(jnp.exp(logits - lmax),
                                 axis=-1, keepdims=True))
    logp_ref[...] = logits - lse              # one contiguous lane-dense store

    # prediction = argmax over vocab (padded lanes carry a -1e9 bias)
    idx = jax.lax.broadcasted_iota(jnp.int32, logits.shape, 1).astype(f32)
    first = jnp.min(jnp.where(logits >= lmax, idx, jnp.float32(VP)),
                    axis=-1, keepdims=True)
    pred_ref[...] = first.astype(jnp.int32)                           # [Td*B, 1]


# ----------------------------------------------------------------------------
# Seq2Seq.forward
# ----------------------------------------------------------------------------
@functools.partial(jax.jit, static_argnames=("pad_idx",))
def seq2seq_forward(params, src, src_lens, trg, pad_idx=0):
    f32 = jnp.float32
    B, S = src.shape
    Td = trg.shape[1] - 1
    E = params["enc_emb"].shape[1]
    H = params["enc_whh"].shape[0]
    A = params["dec_wa_enc"].shape[1]
    V = params["dec_wout"].shape[1]
    VP = ((V + 127) // 128) * 128            # lane-padded output vocab
    VE = ((V + 127) // 128) * 128            # lane-padded one-hot / table rows
    Bp = ((B + 7) // 8) * 8                  # sublane-padded batch

    # ---- pad the batch (padded rows: src_len=0, all-pad source; discarded) ----
    pb = Bp - B
    src_p = jnp.pad(src, ((0, pb), (0, 0)), constant_values=pad_idx)
    lens_p = jnp.pad(src_lens, ((0, pb),), constant_values=0)
    trg_p = jnp.pad(trg[:, :-1], ((0, pb), (0, 0)), constant_values=0)

    # token ids, time-major flattened (row = t*Bp + b) for in-kernel embedding
    src_ids = src_p.T.reshape(S * Bp, 1).astype(jnp.int32)
    trg_ids = trg_p.T.reshape(Td * Bp, 1).astype(jnp.int32)

    # per-(batch, step) encoder validity and additive attention bias (0/-1e9)
    pos = jnp.arange(S, dtype=jnp.int32)[None, :]
    valid_bs = (pos < lens_p[:, None]).astype(f32)                    # [Bp, S]
    bias_bs = jnp.where(src_p == pad_idx, jnp.float32(-1e9), 0.0).astype(f32)

    # embedding tables padded to VE rows (gathered in-kernel via one-hot matmul)
    eemb = jnp.pad(params["enc_emb"], ((0, VE - V), (0, 0)))
    demb = jnp.pad(params["dec_emb"], ((0, VE - V), (0, 0)))

    # weight preprocessing: split concatenated weights (no in-kernel concat of
    # operands), replicate Wa_h over S, fold v into a block-selector so the
    # attention scores come straight out of one MXU dot in [B, S] layout.
    wih_y = params["dec_wih"][:E]                                     # [E, 3H]
    wih_c = params["dec_wih"][E:]                                     # [H, 3H]
    wah_rep = jnp.tile(params["dec_wa_h"], (1, S))                    # [H, S*A]
    vsel = jnp.kron(jnp.eye(S, dtype=f32),
                    params["dec_v"].reshape(A, 1))                    # [S*A, S]
    wout_h = params["dec_wout"][:H]
    wout_c = params["dec_wout"][H:2 * H]
    wout_y = params["dec_wout"][2 * H:]
    pad_v = VP - V
    wout_h = jnp.pad(wout_h, ((0, 0), (0, pad_v)))
    wout_c = jnp.pad(wout_c, ((0, 0), (0, pad_v)))
    wout_y = jnp.pad(wout_y, ((0, 0), (0, pad_v)))
    bout = jnp.pad(params["dec_bout"], ((0, 0), (0, pad_v)),
                   constant_values=-1e9)      # padded logits vanish from softmax

    logp2, pred2 = pl.pallas_call(
        _seq2seq_kernel,
        out_shape=(jax.ShapeDtypeStruct((Td * Bp, VP), f32),
                   jax.ShapeDtypeStruct((Td * Bp, 1), jnp.int32)),
    )(src_ids, trg_ids, valid_bs, bias_bs, eemb, demb,
      params["enc_wih"], params["enc_whh"], params["enc_bih"], params["enc_bhh"],
      params["dec_wbr"], params["dec_bbr"],
      params["dec_wa_enc"], params["dec_ba"], wah_rep, vsel,
      wih_y, wih_c, params["dec_whh"], params["dec_bih"], params["dec_bhh"],
      wout_h, wout_c, wout_y, bout)

    log_prob = logp2.reshape(Td, Bp, VP)[:, :B, :V]                   # [Td, B, V]
    prediction = pred2.reshape(Td, Bp)[:, :B]                         # [Td, B]
    return log_prob, prediction


def init_params(key, vocab, emb, hid, attn):
    ks = jax.random.split(key, 16)
    s = 0.1
    f32 = jnp.float32
    return {
        "enc_emb": s * jax.random.normal(ks[0], (vocab, emb), f32),
        "enc_wih": s * jax.random.normal(ks[1], (emb, 3 * hid), f32),
        "enc_whh": s * jax.random.normal(ks[2], (hid, 3 * hid), f32),
        "enc_bih": jnp.zeros((1, 3 * hid), f32),
        "enc_bhh": jnp.zeros((1, 3 * hid), f32),
        "dec_emb": s * jax.random.normal(ks[3], (vocab, emb), f32),
        "dec_wbr": s * jax.random.normal(ks[4], (hid, hid), f32),
        "dec_bbr": jnp.zeros((1, hid), f32),
        "dec_wa_enc": s * jax.random.normal(ks[5], (hid, attn), f32),
        "dec_wa_h": s * jax.random.normal(ks[6], (hid, attn), f32),
        "dec_ba": jnp.zeros((1, attn), f32),
        "dec_v": s * jax.random.normal(ks[7], (1, attn), f32),
        "dec_wih": s * jax.random.normal(ks[8], (emb + hid, 3 * hid), f32),
        "dec_whh": s * jax.random.normal(ks[9], (hid, 3 * hid), f32),
        "dec_bih": jnp.zeros((1, 3 * hid), f32),
        "dec_bhh": jnp.zeros((1, 3 * hid), f32),
        "dec_wout": s * jax.random.normal(ks[10], (2 * hid + emb, vocab), f32),
        "dec_bout": jnp.zeros((1, vocab), f32),
    }


if __name__ == "__main__":
    B, S, T = 2, 8, 8            # batch, src_len, trg_len
    E, H, A, V = 16, 32, 32, 24  # emb, hidden, attn, vocab
    PAD = 0

    key = jax.random.PRNGKey(0)
    kp, ks, kt = jax.random.split(key, 3)

    params = init_params(kp, V, E, H, A)

    src_lens = jnp.array([8, 5], dtype=jnp.int32)
    src = jax.random.randint(ks, (B, S), 1, V).astype(jnp.int32)
    pos = jnp.arange(S)[None, :]
    src = jnp.where(pos < src_lens[:, None], src, PAD).astype(jnp.int32)
    trg = jax.random.randint(kt, (B, T), 1, V).astype(jnp.int32)

    log_prob, prediction = seq2seq_forward(params, src, src_lens, trg,
                                           pad_idx=PAD)
    jax.block_until_ready((log_prob, prediction))

    assert log_prob.shape == (T - 1, B, V)
    assert prediction.shape == (T - 1, B)
    assert bool(jnp.all(jnp.isfinite(log_prob)))
    print("KERNEL_OK")
</pallas_src>

<mosaic_0001>
module attributes {stable_mosaic.version = 11 : i64} {
  func.func @_seq2seq_kernel(%arg0: memref<64x1xi32, #tpu.memory_space<vmem>>, %arg1: memref<56x1xi32, #tpu.memory_space<vmem>>, %arg2: memref<8x8xf32, #tpu.memory_space<vmem>>, %arg3: memref<8x8xf32, #tpu.memory_space<vmem>>, %arg4: memref<128x16xf32, #tpu.memory_space<vmem>>, %arg5: memref<128x16xf32, #tpu.memory_space<vmem>>, %arg6: memref<16x96xf32, #tpu.memory_space<vmem>>, %arg7: memref<32x96xf32, #tpu.memory_space<vmem>>, %arg8: memref<1x96xf32, #tpu.memory_space<vmem>>, %arg9: memref<1x96xf32, #tpu.memory_space<vmem>>, %arg10: memref<32x32xf32, #tpu.memory_space<vmem>>, %arg11: memref<1x32xf32, #tpu.memory_space<vmem>>, %arg12: memref<32x32xf32, #tpu.memory_space<vmem>>, %arg13: memref<1x32xf32, #tpu.memory_space<vmem>>, %arg14: memref<32x256xf32, #tpu.memory_space<vmem>>, %arg15: memref<256x8xf32, #tpu.memory_space<vmem>>, %arg16: memref<16x96xf32, #tpu.memory_space<vmem>>, %arg17: memref<32x96xf32, #tpu.memory_space<vmem>>, %arg18: memref<32x96xf32, #tpu.memory_space<vmem>>, %arg19: memref<1x96xf32, #tpu.memory_space<vmem>>, %arg20: memref<1x96xf32, #tpu.memory_space<vmem>>, %arg21: memref<32x128xf32, #tpu.memory_space<vmem>>, %arg22: memref<32x128xf32, #tpu.memory_space<vmem>>, %arg23: memref<16x128xf32, #tpu.memory_space<vmem>>, %arg24: memref<1x128xf32, #tpu.memory_space<vmem>>, %arg25: memref<56x128xf32, #tpu.memory_space<vmem>>, %arg26: memref<56x1xi32, #tpu.memory_space<vmem>>) attributes {dimension_semantics = [], scalar_prefetch = 0 : i64, scratch_operands = 0 : i64, tpu.core_type = #tpu.core_type<tc>} {
    %c0 = arith.constant 0 : index
    %c0_0 = arith.constant 0 : index
    %0 = vector.load %arg2[%c0, %c0_0] : memref<8x8xf32, #tpu.memory_space<vmem>>, vector<8x8xf32>
    %c0_1 = arith.constant 0 : index
    %c0_2 = arith.constant 0 : index
    %1 = vector.load %arg3[%c0_1, %c0_2] : memref<8x8xf32, #tpu.memory_space<vmem>>, vector<8x8xf32>
    %c0_3 = arith.constant 0 : index
    %c0_4 = arith.constant 0 : index
    %2 = vector.load %arg7[%c0_3, %c0_4] : memref<32x96xf32, #tpu.memory_space<vmem>>, vector<32x96xf32>
    %c0_5 = arith.constant 0 : index
    %c0_6 = arith.constant 0 : index
    %3 = vector.load %arg9[%c0_5, %c0_6] : memref<1x96xf32, #tpu.memory_space<vmem>>, vector<1x96xf32>
    %c0_7 = arith.constant 0 : index
    %c0_8 = arith.constant 0 : index
    %4 = vector.load %arg12[%c0_7, %c0_8] : memref<32x32xf32, #tpu.memory_space<vmem>>, vector<32x32xf32>
    %c0_9 = arith.constant 0 : index
    %c0_10 = arith.constant 0 : index
    %5 = vector.load %arg13[%c0_9, %c0_10] : memref<1x32xf32, #tpu.memory_space<vmem>>, vector<1x32xf32>
    %c0_11 = arith.constant 0 : index
    %c0_12 = arith.constant 0 : index
    %6 = vector.load %arg14[%c0_11, %c0_12] : memref<32x256xf32, #tpu.memory_space<vmem>>, vector<32x256xf32>
    %c0_13 = arith.constant 0 : index
    %c0_14 = arith.constant 0 : index
    %7 = vector.load %arg15[%c0_13, %c0_14] : memref<256x8xf32, #tpu.memory_space<vmem>>, vector<256x8xf32>
    %c0_15 = arith.constant 0 : index
    %c0_16 = arith.constant 0 : index
    %8 = vector.load %arg17[%c0_15, %c0_16] : memref<32x96xf32, #tpu.memory_space<vmem>>, vector<32x96xf32>
    %c0_17 = arith.constant 0 : index
    %c0_18 = arith.constant 0 : index
    %9 = vector.load %arg18[%c0_17, %c0_18] : memref<32x96xf32, #tpu.memory_space<vmem>>, vector<32x96xf32>
    %c0_19 = arith.constant 0 : index
    %c0_20 = arith.constant 0 : index
    %10 = vector.load %arg20[%c0_19, %c0_20] : memref<1x96xf32, #tpu.memory_space<vmem>>, vector<1x96xf32>
    %c0_21 = arith.constant 0 : index
    %c0_22 = arith.constant 0 : index
    %11 = vector.load %arg0[%c0_21, %c0_22] : memref<64x1xi32, #tpu.memory_space<vmem>>, vector<64x1xi32>
    %c0_23 = arith.constant 0 : index
    %c0_24 = arith.constant 0 : index
    %12 = vector.load %arg4[%c0_23, %c0_24] : memref<128x16xf32, #tpu.memory_space<vmem>>, vector<128x16xf32>
    %13 = tpu.iota {dimensions = array<i32: 1>} : vector<64x128xi32>
    %14 = vector.broadcast %11 : vector<64x1xi32> to vector<64x128xi32>
    %15 = arith.cmpi eq, %13, %14 : vector<64x128xi32>
    %16 = arith.extui %15 : vector<64x128xi1> to vector<64x128xi32>
    %17 = arith.sitofp %16 : vector<64x128xi32> to vector<64x128xf32>
    %cst = arith.constant dense<0.000000e+00> : vector<64x16xf32>
    %18 = tpu.matmul %17, %12, %cst {dimension_numbers = #tpu.dot_dimension_numbers<[1], [0], [0], [1], [0, 0, 1, 1], [], []>} : vector<64x128xf32>, vector<128x16xf32>, vector<64x16xf32> -> vector<64x16xf32>
    %c0_25 = arith.constant 0 : index
    %c0_26 = arith.constant 0 : index
    %19 = vector.load %arg6[%c0_25, %c0_26] : memref<16x96xf32, #tpu.memory_space<vmem>>, vector<16x96xf32>
    %cst_27 = arith.constant dense<0.000000e+00> : vector<64x96xf32>
    %20 = tpu.matmul %18, %19, %cst_27 {dimension_numbers = #tpu.dot_dimension_numbers<[1], [0], [0], [1], [0, 0, 1, 1], [], []>} : vector<64x16xf32>, vector<16x96xf32>, vector<64x96xf32> -> vector<64x96xf32>
    %c0_28 = arith.constant 0 : index
    %c0_29 = arith.constant 0 : index
    %21 = vector.load %arg8[%c0_28, %c0_29] : memref<1x96xf32, #tpu.memory_space<vmem>>, vector<1x96xf32>
    %22 = vector.broadcast %21 : vector<1x96xf32> to vector<64x96xf32>
    %23 = arith.addf %20, %22 : vector<64x96xf32>
    %c0_30 = arith.constant 0 : index
    %c0_31 = arith.constant 0 : index
    %24 = vector.load %arg1[%c0_30, %c0_31] : memref<56x1xi32, #tpu.memory_space<vmem>>, vector<56x1xi32>
    %c0_32 = arith.constant 0 : index
    %c0_33 = arith.constant 0 : index
    %25 = vector.load %arg5[%c0_32, %c0_33] : memref<128x16xf32, #tpu.memory_space<vmem>>, vector<128x16xf32>
    %26 = tpu.iota {dimensions = array<i32: 1>} : vector<56x128xi32>
    %27 = vector.broadcast %24 : vector<56x1xi32> to vector<56x128xi32>
    %28 = arith.cmpi eq, %26, %27 : vector<56x128xi32>
    %29 = arith.extui %28 : vector<56x128xi1> to vector<56x128xi32>
    %30 = arith.sitofp %29 : vector<56x128xi32> to vector<56x128xf32>
    %cst_34 = arith.constant dense<0.000000e+00> : vector<56x16xf32>
    %31 = tpu.matmul %30, %25, %cst_34 {dimension_numbers = #tpu.dot_dimension_numbers<[1], [0], [0], [1], [0, 0, 1, 1], [], []>} : vector<56x128xf32>, vector<128x16xf32>, vector<56x16xf32> -> vector<56x16xf32>
    %c0_35 = arith.constant 0 : index
    %c0_36 = arith.constant 0 : index
    %32 = vector.load %arg16[%c0_35, %c0_36] : memref<16x96xf32, #tpu.memory_space<vmem>>, vector<16x96xf32>
    %cst_37 = arith.constant dense<0.000000e+00> : vector<56x96xf32>
    %33 = tpu.matmul %31, %32, %cst_37 {dimension_numbers = #tpu.dot_dimension_numbers<[1], [0], [0], [1], [0, 0, 1, 1], [], []>} : vector<56x16xf32>, vector<16x96xf32>, vector<56x96xf32> -> vector<56x96xf32>
    %c0_38 = arith.constant 0 : index
    %c0_39 = arith.constant 0 : index
    %34 = vector.load %arg19[%c0_38, %c0_39] : memref<1x96xf32, #tpu.memory_space<vmem>>, vector<1x96xf32>
    %35 = vector.broadcast %34 : vector<1x96xf32> to vector<56x96xf32>
    %36 = arith.addf %33, %35 : vector<56x96xf32>
    %cst_40 = arith.constant 0.000000e+00 : f32
    %37 = vector.broadcast %cst_40 : f32 to vector<8x32xf32>
    %38 = vector.extract_strided_slice %0 {offsets = [0, 0], sizes = [8, 1], strides = [1, 1]} : vector<8x8xf32> to vector<8x1xf32>
    %39 = vector.extract_strided_slice %23 {offsets = [0, 0], sizes = [8, 96], strides = [1, 1]} : vector<64x96xf32> to vector<8x96xf32>
    %cst_41 = arith.constant dense<0.000000e+00> : vector<8x96xf32>
    %40 = tpu.matmul %37, %2, %cst_41 {dimension_numbers = #tpu.dot_dimension_numbers<[1], [0], [0], [1], [0, 0, 1, 1], [], []>} : vector<8x32xf32>, vector<32x96xf32>, vector<8x96xf32> -> vector<8x96xf32>
    %41 = vector.broadcast %3 : vector<1x96xf32> to vector<8x96xf32>
    %42 = arith.addf %40, %41 : vector<8x96xf32>
    %43 = vector.extract_strided_slice %39 {offsets = [0, 0], sizes = [8, 32], strides = [1, 1]} : vector<8x96xf32> to vector<8x32xf32>
    %44 = vector.extract_strided_slice %42 {offsets = [0, 0], sizes = [8, 32], strides = [1, 1]} : vector<8x96xf32> to vector<8x32xf32>
    %45 = arith.addf %43, %44 : vector<8x32xf32>
    %46 = arith.negf %45 : vector<8x32xf32>
    %47 = math.exp %46 : vector<8x32xf32>
    %cst_42 = arith.constant 1.000000e+00 : f32
    %48 = vector.broadcast %cst_42 : f32 to vector<8x32xf32>
    %49 = arith.addf %48, %47 : vector<8x32xf32>
    %50 = arith.divf %48, %49 : vector<8x32xf32>
    %51 = vector.extract_strided_slice %39 {offsets = [0, 32], sizes = [8, 32], strides = [1, 1]} : vector<8x96xf32> to vector<8x32xf32>
    %52 = vector.extract_strided_slice %42 {offsets = [0, 32], sizes = [8, 32], strides = [1, 1]} : vector<8x96xf32> to vector<8x32xf32>
    %53 = arith.addf %51, %52 : vector<8x32xf32>
    %54 = arith.negf %53 : vector<8x32xf32>
    %55 = math.exp %54 : vector<8x32xf32>
    %cst_43 = arith.constant 1.000000e+00 : f32
    %56 = vector.broadcast %cst_43 : f32 to vector<8x32xf32>
    %57 = arith.addf %56, %55 : vector<8x32xf32>
    %58 = arith.divf %56, %57 : vector<8x32xf32>
    %59 = vector.extract_strided_slice %39 {offsets = [0, 64], sizes = [8, 32], strides = [1, 1]} : vector<8x96xf32> to vector<8x32xf32>
    %60 = vector.extract_strided_slice %42 {offsets = [0, 64], sizes = [8, 32], strides = [1, 1]} : vector<8x96xf32> to vector<8x32xf32>
    %61 = arith.mulf %50, %60 : vector<8x32xf32>
    %62 = arith.addf %59, %61 : vector<8x32xf32>
    %63 = math.tanh %62 : vector<8x32xf32>
    %cst_44 = arith.constant 1.000000e+00 : f32
    %64 = vector.broadcast %cst_44 : f32 to vector<8x32xf32>
    %65 = arith.subf %64, %58 : vector<8x32xf32>
    %66 = arith.mulf %65, %63 : vector<8x32xf32>
    %67 = arith.mulf %58, %37 : vector<8x32xf32>
    %68 = arith.addf %66, %67 : vector<8x32xf32>
    %69 = arith.subf %68, %37 : vector<8x32xf32>
    %70 = vector.broadcast %38 : vector<8x1xf32> to vector<8x32xf32>
    %71 = arith.mulf %70, %69 : vector<8x32xf32>
    %72 = arith.addf %37, %71 : vector<8x32xf32>
    %73 = vector.broadcast %38 : vector<8x1xf32> to vector<8x32xf32>
    %74 = arith.mulf %72, %73 : vector<8x32xf32>
    %cst_45 = arith.constant dense<0.000000e+00> : vector<8x32xf32>
    %75 = tpu.matmul %74, %4, %cst_45 {dimension_numbers = #tpu.dot_dimension_numbers<[1], [0], [0], [1], [0, 0, 1, 1], [], []>} : vector<8x32xf32>, vector<32x32xf32>, vector<8x32xf32> -> vector<8x32xf32>
    %76 = vector.broadcast %5 : vector<1x32xf32> to vector<8x32xf32>
    %77 = arith.addf %75, %76 : vector<8x32xf32>
    %78 = vector.extract_strided_slice %0 {offsets = [0, 1], sizes = [8, 1], strides = [1, 1]} : vector<8x8xf32> to vector<8x1xf32>
    %79 = vector.extract_strided_slice %23 {offsets = [8, 0], sizes = [8, 96], strides = [1, 1]} : vector<64x96xf32> to vector<8x96xf32>
    %cst_46 = arith.constant dense<0.000000e+00> : vector<8x96xf32>
    %80 = tpu.matmul %72, %2, %cst_46 {dimension_numbers = #tpu.dot_dimension_numbers<[1], [0], [0], [1], [0, 0, 1, 1], [], []>} : vector<8x32xf32>, vector<32x96xf32>, vector<8x96xf32> -> vector<8x96xf32>
    %81 = vector.broadcast %3 : vector<1x96xf32> to vector<8x96xf32>
    %82 = arith.addf %80, %81 : vector<8x96xf32>
    %83 = vector.extract_strided_slice %79 {offsets = [0, 0], sizes = [8, 32], strides = [1, 1]} : vector<8x96xf32> to vector<8x32xf32>
    %84 = vector.extract_strided_slice %82 {offsets = [0, 0], sizes = [8, 32], strides = [1, 1]} : vector<8x96xf32> to vector<8x32xf32>
    %85 = arith.addf %83, %84 : vector<8x32xf32>
    %86 = arith.negf %85 : vector<8x32xf32>
    %87 = math.exp %86 : vector<8x32xf32>
    %cst_47 = arith.constant 1.000000e+00 : f32
    %88 = vector.broadcast %cst_47 : f32 to vector<8x32xf32>
    %89 = arith.addf %88, %87 : vector<8x32xf32>
    %90 = arith.divf %88, %89 : vector<8x32xf32>
    %91 = vector.extract_strided_slice %79 {offsets = [0, 32], sizes = [8, 32], strides = [1, 1]} : vector<8x96xf32> to vector<8x32xf32>
    %92 = vector.extract_strided_slice %82 {offsets = [0, 32], sizes = [8, 32], strides = [1, 1]} : vector<8x96xf32> to vector<8x32xf32>
    %93 = arith.addf %91, %92 : vector<8x32xf32>
    %94 = arith.negf %93 : vector<8x32xf32>
    %95 = math.exp %94 : vector<8x32xf32>
    %cst_48 = arith.constant 1.000000e+00 : f32
    %96 = vector.broadcast %cst_48 : f32 to vector<8x32xf32>
    %97 = arith.addf %96, %95 : vector<8x32xf32>
    %98 = arith.divf %96, %97 : vector<8x32xf32>
    %99 = vector.extract_strided_slice %79 {offsets = [0, 64], sizes = [8, 32], strides = [1, 1]} : vector<8x96xf32> to vector<8x32xf32>
    %100 = vector.extract_strided_slice %82 {offsets = [0, 64], sizes = [8, 32], strides = [1, 1]} : vector<8x96xf32> to vector<8x32xf32>
    %101 = arith.mulf %90, %100 : vector<8x32xf32>
    %102 = arith.addf %99, %101 : vector<8x32xf32>
    %103 = math.tanh %102 : vector<8x32xf32>
    %cst_49 = arith.constant 1.000000e+00 : f32
    %104 = vector.broadcast %cst_49 : f32 to vector<8x32xf32>
    %105 = arith.subf %104, %98 : vector<8x32xf32>
    %106 = arith.mulf %105, %103 : vector<8x32xf32>
    %107 = arith.mulf %98, %72 : vector<8x32xf32>
    %108 = arith.addf %106, %107 : vector<8x32xf32>
    %109 = arith.subf %108, %72 : vector<8x32xf32>
    %110 = vector.broadcast %78 : vector<8x1xf32> to vector<8x32xf32>
    %111 = arith.mulf %110, %109 : vector<8x32xf32>
    %112 = arith.addf %72, %111 : vector<8x32xf32>
    %113 = vector.broadcast %78 : vector<8x1xf32> to vector<8x32xf32>
    %114 = arith.mulf %112, %113 : vector<8x32xf32>
    %cst_50 = arith.constant dense<0.000000e+00> : vector<8x32xf32>
    %115 = tpu.matmul %114, %4, %cst_50 {dimension_numbers = #tpu.dot_dimension_numbers<[1], [0], [0], [1], [0, 0, 1, 1], [], []>} : vector<8x32xf32>, vector<32x32xf32>, vector<8x32xf32> -> vector<8x32xf32>
    %116 = vector.broadcast %5 : vector<1x32xf32> to vector<8x32xf32>
    %117 = arith.addf %115, %116 : vector<8x32xf32>
    %118 = vector.extract_strided_slice %0 {offsets = [0, 2], sizes = [8, 1], strides = [1, 1]} : vector<8x8xf32> to vector<8x1xf32>
    %119 = vector.extract_strided_slice %23 {offsets = [16, 0], sizes = [8, 96], strides = [1, 1]} : vector<64x96xf32> to vector<8x96xf32>
    %cst_51 = arith.constant dense<0.000000e+00> : vector<8x96xf32>
    %120 = tpu.matmul %112, %2, %cst_51 {dimension_numbers = #tpu.dot_dimension_numbers<[1], [0], [0], [1], [0, 0, 1, 1], [], []>} : vector<8x32xf32>, vector<32x96xf32>, vector<8x96xf32> -> vector<8x96xf32>
    %121 = vector.broadcast %3 : vector<1x96xf32> to vector<8x96xf32>
    %122 = arith.addf %120, %121 : vector<8x96xf32>
    %123 = vector.extract_strided_slice %119 {offsets = [0, 0], sizes = [8, 32], strides = [1, 1]} : vector<8x96xf32> to vector<8x32xf32>
    %124 = vector.extract_strided_slice %122 {offsets = [0, 0], sizes = [8, 32], strides = [1, 1]} : vector<8x96xf32> to vector<8x32xf32>
    %125 = arith.addf %123, %124 : vector<8x32xf32>
    %126 = arith.negf %125 : vector<8x32xf32>
    %127 = math.exp %126 : vector<8x32xf32>
    %cst_52 = arith.constant 1.000000e+00 : f32
    %128 = vector.broadcast %cst_52 : f32 to vector<8x32xf32>
    %129 = arith.addf %128, %127 : vector<8x32xf32>
    %130 = arith.divf %128, %129 : vector<8x32xf32>
    %131 = vector.extract_strided_slice %119 {offsets = [0, 32], sizes = [8, 32], strides = [1, 1]} : vector<8x96xf32> to vector<8x32xf32>
    %132 = vector.extract_strided_slice %122 {offsets = [0, 32], sizes = [8, 32], strides = [1, 1]} : vector<8x96xf32> to vector<8x32xf32>
    %133 = arith.addf %131, %132 : vector<8x32xf32>
    %134 = arith.negf %133 : vector<8x32xf32>
    %135 = math.exp %134 : vector<8x32xf32>
    %cst_53 = arith.constant 1.000000e+00 : f32
    %136 = vector.broadcast %cst_53 : f32 to vector<8x32xf32>
    %137 = arith.addf %136, %135 : vector<8x32xf32>
    %138 = arith.divf %136, %137 : vector<8x32xf32>
    %139 = vector.extract_strided_slice %119 {offsets = [0, 64], sizes = [8, 32], strides = [1, 1]} : vector<8x96xf32> to vector<8x32xf32>
    %140 = vector.extract_strided_slice %122 {offsets = [0, 64], sizes = [8, 32], strides = [1, 1]} : vector<8x96xf32> to vector<8x32xf32>
    %141 = arith.mulf %130, %140 : vector<8x32xf32>
    %142 = arith.addf %139, %141 : vector<8x32xf32>
    %143 = math.tanh %142 : vector<8x32xf32>
    %cst_54 = arith.constant 1.000000e+00 : f32
    %144 = vector.broadcast %cst_54 : f32 to vector<8x32xf32>
    %145 = arith.subf %144, %138 : vector<8x32xf32>
    %146 = arith.mulf %145, %143 : vector<8x32xf32>
    %147 = arith.mulf %138, %112 : vector<8x32xf32>
    %148 = arith.addf %146, %147 : vector<8x32xf32>
    %149 = arith.subf %148, %112 : vector<8x32xf32>
    %150 = vector.broadcast %118 : vector<8x1xf32> to vector<8x32xf32>
    %151 = arith.mulf %150, %149 : vector<8x32xf32>
    %152 = arith.addf %112, %151 : vector<8x32xf32>
    %153 = vector.broadcast %118 : vector<8x1xf32> to vector<8x32xf32>
    %154 = arith.mulf %152, %153 : vector<8x32xf32>
    %cst_55 = arith.constant dense<0.000000e+00> : vector<8x32xf32>
    %155 = tpu.matmul %154, %4, %cst_55 {dimension_numbers = #tpu.dot_dimension_numbers<[1], [0], [0], [1], [0, 0, 1, 1], [], []>} : vector<8x32xf32>, vector<32x32xf32>, vector<8x32xf32> -> vector<8x32xf32>
    %156 = vector.broadcast %5 : vector<1x32xf32> to vector<8x32xf32>
    %157 = arith.addf %155, %156 : vector<8x32xf32>
    %158 = vector.extract_strided_slice %0 {offsets = [0, 3], sizes = [8, 1], strides = [1, 1]} : vector<8x8xf32> to vector<8x1xf32>
    %159 = vector.extract_strided_slice %23 {offsets = [24, 0], sizes = [8, 96], strides = [1, 1]} : vector<64x96xf32> to vector<8x96xf32>
    %cst_56 = arith.constant dense<0.000000e+00> : vector<8x96xf32>
    %160 = tpu.matmul %152, %2, %cst_56 {dimension_numbers = #tpu.dot_dimension_numbers<[1], [0], [0], [1], [0, 0, 1, 1], [], []>} : vector<8x32xf32>, vector<32x96xf32>, vector<8x96xf32> -> vector<8x96xf32>
    %161 = vector.broadcast %3 : vector<1x96xf32> to vector<8x96xf32>
    %162 = arith.addf %160, %161 : vector<8x96xf32>
    %163 = vector.extract_strided_slice %159 {offsets = [0, 0], sizes = [8, 32], strides = [1, 1]} : vector<8x96xf32> to vector<8x32xf32>
    %164 = vector.extract_strided_slice %162 {offsets = [0, 0], sizes = [8, 32], strides = [1, 1]} : vector<8x96xf32> to vector<8x32xf32>
    %165 = arith.addf %163, %164 : vector<8x32xf32>
    %166 = arith.negf %165 : vector<8x32xf32>
    %167 = math.exp %166 : vector<8x32xf32>
    %cst_57 = arith.constant 1.000000e+00 : f32
    %168 = vector.broadcast %cst_57 : f32 to vector<8x32xf32>
    %169 = arith.addf %168, %167 : vector<8x32xf32>
    %170 = arith.divf %168, %169 : vector<8x32xf32>
    %171 = vector.extract_strided_slice %159 {offsets = [0, 32], sizes = [8, 32], strides = [1, 1]} : vector<8x96xf32> to vector<8x32xf32>
    %172 = vector.extract_strided_slice %162 {offsets = [0, 32], sizes = [8, 32], strides = [1, 1]} : vector<8x96xf32> to vector<8x32xf32>
    %173 = arith.addf %171, %172 : vector<8x32xf32>
    %174 = arith.negf %173 : vector<8x32xf32>
    %175 = math.exp %174 : vector<8x32xf32>
    %cst_58 = arith.constant 1.000000e+00 : f32
    %176 = vector.broadcast %cst_58 : f32 to vector<8x32xf32>
    %177 = arith.addf %176, %175 : vector<8x32xf32>
    %178 = arith.divf %176, %177 : vector<8x32xf32>
    %179 = vector.extract_strided_slice %159 {offsets = [0, 64], sizes = [8, 32], strides = [1, 1]} : vector<8x96xf32> to vector<8x32xf32>
    %180 = vector.extract_strided_slice %162 {offsets = [0, 64], sizes = [8, 32], strides = [1, 1]} : vector<8x96xf32> to vector<8x32xf32>
    %181 = arith.mulf %170, %180 : vector<8x32xf32>
    %182 = arith.addf %179, %181 : vector<8x32xf32>
    %183 = math.tanh %182 : vector<8x32xf32>
    %cst_59 = arith.constant 1.000000e+00 : f32
    %184 = vector.broadcast %cst_59 : f32 to vector<8x32xf32>
    %185 = arith.subf %184, %178 : vector<8x32xf32>
    %186 = arith.mulf %185, %183 : vector<8x32xf32>
    %187 = arith.mulf %178, %152 : vector<8x32xf32>
    %188 = arith.addf %186, %187 : vector<8x32xf32>
    %189 = arith.subf %188, %152 : vector<8x32xf32>
    %190 = vector.broadcast %158 : vector<8x1xf32> to vector<8x32xf32>
    %191 = arith.mulf %190, %189 : vector<8x32xf32>
    %192 = arith.addf %152, %191 : vector<8x32xf32>
    %193 = vector.broadcast %158 : vector<8x1xf32> to vector<8x32xf32>
    %194 = arith.mulf %192, %193 : vector<8x32xf32>
    %cst_60 = arith.constant dense<0.000000e+00> : vector<8x32xf32>
    %195 = tpu.matmul %194, %4, %cst_60 {dimension_numbers = #tpu.dot_dimension_numbers<[1], [0], [0], [1], [0, 0, 1, 1], [], []>} : vector<8x32xf32>, vector<32x32xf32>, vector<8x32xf32> -> vector<8x32xf32>
    %196 = vector.broadcast %5 : vector<1x32xf32> to vector<8x32xf32>
    %197 = arith.addf %195, %196 : vector<8x32xf32>
    %198 = vector.extract_strided_slice %0 {offsets = [0, 4], sizes = [8, 1], strides = [1, 1]} : vector<8x8xf32> to vector<8x1xf32>
    %199 = vector.extract_strided_slice %23 {offsets = [32, 0], sizes = [8, 96], strides = [1, 1]} : vector<64x96xf32> to vector<8x96xf32>
    %cst_61 = arith.constant dense<0.000000e+00> : vector<8x96xf32>
    %200 = tpu.matmul %192, %2, %cst_61 {dimension_numbers = #tpu.dot_dimension_numbers<[1], [0], [0], [1], [0, 0, 1, 1], [], []>} : vector<8x32xf32>, vector<32x96xf32>, vector<8x96xf32> -> vector<8x96xf32>
    %201 = vector.broadcast %3 : vector<1x96xf32> to vector<8x96xf32>
    %202 = arith.addf %200, %201 : vector<8x96xf32>
    %203 = vector.extract_strided_slice %199 {offsets = [0, 0], sizes = [8, 32], strides = [1, 1]} : vector<8x96xf32> to vector<8x32xf32>
    %204 = vector.extract_strided_slice %202 {offsets = [0, 0], sizes = [8, 32], strides = [1, 1]} : vector<8x96xf32> to vector<8x32xf32>
    %205 = arith.addf %203, %204 : vector<8x32xf32>
    %206 = arith.negf %205 : vector<8x32xf32>
    %207 = math.exp %206 : vector<8x32xf32>
    %cst_62 = arith.constant 1.000000e+00 : f32
    %208 = vector.broadcast %cst_62 : f32 to vector<8x32xf32>
    %209 = arith.addf %208, %207 : vector<8x32xf32>
    %210 = arith.divf %208, %209 : vector<8x32xf32>
    %211 = vector.extract_strided_slice %199 {offsets = [0, 32], sizes = [8, 32], strides = [1, 1]} : vector<8x96xf32> to vector<8x32xf32>
    %212 = vector.extract_strided_slice %202 {offsets = [0, 32], sizes = [8, 32], strides = [1, 1]} : vector<8x96xf32> to vector<8x32xf32>
    %213 = arith.addf %211, %212 : vector<8x32xf32>
    %214 = arith.negf %213 : vector<8x32xf32>
    %215 = math.exp %214 : vector<8x32xf32>
    %cst_63 = arith.constant 1.000000e+00 : f32
    %216 = vector.broadcast %cst_63 : f32 to vector<8x32xf32>
    %217 = arith.addf %216, %215 : vector<8x32xf32>
    %218 = arith.divf %216, %217 : vector<8x32xf32>
    %219 = vector.extract_strided_slice %199 {offsets = [0, 64], sizes = [8, 32], strides = [1, 1]} : vector<8x96xf32> to vector<8x32xf32>
    %220 = vector.extract_strided_slice %202 {offsets = [0, 64], sizes = [8, 32], strides = [1, 1]} : vector<8x96xf32> to vector<8x32xf32>
    %221 = arith.mulf %210, %220 : vector<8x32xf32>
    %222 = arith.addf %219, %221 : vector<8x32xf32>
    %223 = math.tanh %222 : vector<8x32xf32>
    %cst_64 = arith.constant 1.000000e+00 : f32
    %224 = vector.broadcast %cst_64 : f32 to vector<8x32xf32>
    %225 = arith.subf %224, %218 : vector<8x32xf32>
    %226 = arith.mulf %225, %223 : vector<8x32xf32>
    %227 = arith.mulf %218, %192 : vector<8x32xf32>
    %228 = arith.addf %226, %227 : vector<8x32xf32>
    %229 = arith.subf %228, %192 : vector<8x32xf32>
    %230 = vector.broadcast %198 : vector<8x1xf32> to vector<8x32xf32>
    %231 = arith.mulf %230, %229 : vector<8x32xf32>
    %232 = arith.addf %192, %231 : vector<8x32xf32>
    %233 = vector.broadcast %198 : vector<8x1xf32> to vector<8x32xf32>
    %234 = arith.mulf %232, %233 : vector<8x32xf32>
    %cst_65 = arith.constant dense<0.000000e+00> : vector<8x32xf32>
    %235 = tpu.matmul %234, %4, %cst_65 {dimension_numbers = #tpu.dot_dimension_numbers<[1], [0], [0], [1], [0, 0, 1, 1], [], []>} : vector<8x32xf32>, vector<32x32xf32>, vector<8x32xf32> -> vector<8x32xf32>
    %236 = vector.broadcast %5 : vector<1x32xf32> to vector<8x32xf32>
    %237 = arith.addf %235, %236 : vector<8x32xf32>
    %238 = vector.extract_strided_slice %0 {offsets = [0, 5], sizes = [8, 1], strides = [1, 1]} : vector<8x8xf32> to vector<8x1xf32>
    %239 = vector.extract_strided_slice %23 {offsets = [40, 0], sizes = [8, 96], strides = [1, 1]} : vector<64x96xf32> to vector<8x96xf32>
    %cst_66 = arith.constant dense<0.000000e+00> : vector<8x96xf32>
    %240 = tpu.matmul %232, %2, %cst_66 {dimension_numbers = #tpu.dot_dimension_numbers<[1], [0], [0], [1], [0, 0, 1, 1], [], []>} : vector<8x32xf32>, vector<32x96xf32>, vector<8x96xf32> -> vector<8x96xf32>
    %241 = vector.broadcast %3 : vector<1x96xf32> to vector<8x96xf32>
    %242 = arith.addf %240, %241 : vector<8x96xf32>
    %243 = vector.extract_strided_slice %239 {offsets = [0, 0], sizes = [8, 32], strides = [1, 1]} : vector<8x96xf32> to vector<8x32xf32>
    %244 = vector.extract_strided_slice %242 {offsets = [0, 0], sizes = [8, 32], strides = [1, 1]} : vector<8x96xf32> to vector<8x32xf32>
    %245 = arith.addf %243, %244 : vector<8x32xf32>
    %246 = arith.negf %245 : vector<8x32xf32>
    %247 = math.exp %246 : vector<8x32xf32>
    %cst_67 = arith.constant 1.000000e+00 : f32
    %248 = vector.broadcast %cst_67 : f32 to vector<8x32xf32>
    %249 = arith.addf %248, %247 : vector<8x32xf32>
    %250 = arith.divf %248, %249 : vector<8x32xf32>
    %251 = vector.extract_strided_slice %239 {offsets = [0, 32], sizes = [8, 32], strides = [1, 1]} : vector<8x96xf32> to vector<8x32xf32>
    %252 = vector.extract_strided_slice %242 {offsets = [0, 32], sizes = [8, 32], strides = [1, 1]} : vector<8x96xf32> to vector<8x32xf32>
    %253 = arith.addf %251, %252 : vector<8x32xf32>
    %254 = arith.negf %253 : vector<8x32xf32>
    %255 = math.exp %254 : vector<8x32xf32>
    %cst_68 = arith.constant 1.000000e+00 : f32
    %256 = vector.broadcast %cst_68 : f32 to vector<8x32xf32>
    %257 = arith.addf %256, %255 : vector<8x32xf32>
    %258 = arith.divf %256, %257 : vector<8x32xf32>
    %259 = vector.extract_strided_slice %239 {offsets = [0, 64], sizes = [8, 32], strides = [1, 1]} : vector<8x96xf32> to vector<8x32xf32>
    %260 = vector.extract_strided_slice %242 {offsets = [0, 64], sizes = [8, 32], strides = [1, 1]} : vector<8x96xf32> to vector<8x32xf32>
    %261 = arith.mulf %250, %260 : vector<8x32xf32>
    %262 = arith.addf %259, %261 : vector<8x32xf32>
    %263 = math.tanh %262 : vector<8x32xf32>
    %cst_69 = arith.constant 1.000000e+00 : f32
    %264 = vector.broadcast %cst_69 : f32 to vector<8x32xf32>
    %265 = arith.subf %264, %258 : vector<8x32xf32>
    %266 = arith.mulf %265, %263 : vector<8x32xf32>
    %267 = arith.mulf %258, %232 : vector<8x32xf32>
    %268 = arith.addf %266, %267 : vector<8x32xf32>
    %269 = arith.subf %268, %232 : vector<8x32xf32>
    %270 = vector.broadcast %238 : vector<8x1xf32> to vector<8x32xf32>
    %271 = arith.mulf %270, %269 : vector<8x32xf32>
    %272 = arith.addf %232, %271 : vector<8x32xf32>
    %273 = vector.broadcast %238 : vector<8x1xf32> to vector<8x32xf32>
    %274 = arith.mulf %272, %273 : vector<8x32xf32>
    %cst_70 = arith.constant dense<0.000000e+00> : vector<8x32xf32>
    %275 = tpu.matmul %274, %4, %cst_70 {dimension_numbers = #tpu.dot_dimension_numbers<[1], [0], [0], [1], [0, 0, 1, 1], [], []>} : vector<8x32xf32>, vector<32x32xf32>, vector<8x32xf32> -> vector<8x32xf32>
    %276 = vector.broadcast %5 : vector<1x32xf32> to vector<8x32xf32>
    %277 = arith.addf %275, %276 : vector<8x32xf32>
    %278 = vector.extract_strided_slice %0 {offsets = [0, 6], sizes = [8, 1], strides = [1, 1]} : vector<8x8xf32> to vector<8x1xf32>
    %279 = vector.extract_strided_slice %23 {offsets = [48, 0], sizes = [8, 96], strides = [1, 1]} : vector<64x96xf32> to vector<8x96xf32>
    %cst_71 = arith.constant dense<0.000000e+00> : vector<8x96xf32>
    %280 = tpu.matmul %272, %2, %cst_71 {dimension_numbers = #tpu.dot_dimension_numbers<[1], [0], [0], [1], [0, 0, 1, 1], [], []>} : vector<8x32xf32>, vector<32x96xf32>, vector<8x96xf32> -> vector<8x96xf32>
    %281 = vector.broadcast %3 : vector<1x96xf32> to vector<8x96xf32>
    %282 = arith.addf %280, %281 : vector<8x96xf32>
    %283 = vector.extract_strided_slice %279 {offsets = [0, 0], sizes = [8, 32], strides = [1, 1]} : vector<8x96xf32> to vector<8x32xf32>
    %284 = vector.extract_strided_slice %282 {offsets = [0, 0], sizes = [8, 32], strides = [1, 1]} : vector<8x96xf32> to vector<8x32xf32>
    %285 = arith.addf %283, %284 : vector<8x32xf32>
    %286 = arith.negf %285 : vector<8x32xf32>
    %287 = math.exp %286 : vector<8x32xf32>
    %cst_72 = arith.constant 1.000000e+00 : f32
    %288 = vector.broadcast %cst_72 : f32 to vector<8x32xf32>
    %289 = arith.addf %288, %287 : vector<8x32xf32>
    %290 = arith.divf %288, %289 : vector<8x32xf32>
    %291 = vector.extract_strided_slice %279 {offsets = [0, 32], sizes = [8, 32], strides = [1, 1]} : vector<8x96xf32> to vector<8x32xf32>
    %292 = vector.extract_strided_slice %282 {offsets = [0, 32], sizes = [8, 32], strides = [1, 1]} : vector<8x96xf32> to vector<8x32xf32>
    %293 = arith.addf %291, %292 : vector<8x32xf32>
    %294 = arith.negf %293 : vector<8x32xf32>
    %295 = math.exp %294 : vector<8x32xf32>
    %cst_73 = arith.constant 1.000000e+00 : f32
    %296 = vector.broadcast %cst_73 : f32 to vector<8x32xf32>
    %297 = arith.addf %296, %295 : vector<8x32xf32>
    %298 = arith.divf %296, %297 : vector<8x32xf32>
    %299 = vector.extract_strided_slice %279 {offsets = [0, 64], sizes = [8, 32], strides = [1, 1]} : vector<8x96xf32> to vector<8x32xf32>
    %300 = vector.extract_strided_slice %282 {offsets = [0, 64], sizes = [8, 32], strides = [1, 1]} : vector<8x96xf32> to vector<8x32xf32>
    %301 = arith.mulf %290, %300 : vector<8x32xf32>
    %302 = arith.addf %299, %301 : vector<8x32xf32>
    %303 = math.tanh %302 : vector<8x32xf32>
    %cst_74 = arith.constant 1.000000e+00 : f32
    %304 = vector.broadcast %cst_74 : f32 to vector<8x32xf32>
    %305 = arith.subf %304, %298 : vector<8x32xf32>
    %306 = arith.mulf %305, %303 : vector<8x32xf32>
    %307 = arith.mulf %298, %272 : vector<8x32xf32>
    %308 = arith.addf %306, %307 : vector<8x32xf32>
    %309 = arith.subf %308, %272 : vector<8x32xf32>
    %310 = vector.broadcast %278 : vector<8x1xf32> to vector<8x32xf32>
    %311 = arith.mulf %310, %309 : vector<8x32xf32>
    %312 = arith.addf %272, %311 : vector<8x32xf32>
    %313 = vector.broadcast %278 : vector<8x1xf32> to vector<8x32xf32>
    %314 = arith.mulf %312, %313 : vector<8x32xf32>
    %cst_75 = arith.constant dense<0.000000e+00> : vector<8x32xf32>
    %315 = tpu.matmul %314, %4, %cst_75 {dimension_numbers = #tpu.dot_dimension_numbers<[1], [0], [0], [1], [0, 0, 1, 1], [], []>} : vector<8x32xf32>, vector<32x32xf32>, vector<8x32xf32> -> vector<8x32xf32>
    %316 = vector.broadcast %5 : vector<1x32xf32> to vector<8x32xf32>
    %317 = arith.addf %315, %316 : vector<8x32xf32>
    %318 = vector.extract_strided_slice %0 {offsets = [0, 7], sizes = [8, 1], strides = [1, 1]} : vector<8x8xf32> to vector<8x1xf32>
    %319 = vector.extract_strided_slice %23 {offsets = [56, 0], sizes = [8, 96], strides = [1, 1]} : vector<64x96xf32> to vector<8x96xf32>
    %cst_76 = arith.constant dense<0.000000e+00> : vector<8x96xf32>
    %320 = tpu.matmul %312, %2, %cst_76 {dimension_numbers = #tpu.dot_dimension_numbers<[1], [0], [0], [1], [0, 0, 1, 1], [], []>} : vector<8x32xf32>, vector<32x96xf32>, vector<8x96xf32> -> vector<8x96xf32>
    %321 = vector.broadcast %3 : vector<1x96xf32> to vector<8x96xf32>
    %322 = arith.addf %320, %321 : vector<8x96xf32>
    %323 = vector.extract_strided_slice %319 {offsets = [0, 0], sizes = [8, 32], strides = [1, 1]} : vector<8x96xf32> to vector<8x32xf32>
    %324 = vector.extract_strided_slice %322 {offsets = [0, 0], sizes = [8, 32], strides = [1, 1]} : vector<8x96xf32> to vector<8x32xf32>
    %325 = arith.addf %323, %324 : vector<8x32xf32>
    %326 = arith.negf %325 : vector<8x32xf32>
    %327 = math.exp %326 : vector<8x32xf32>
    %cst_77 = arith.constant 1.000000e+00 : f32
    %328 = vector.broadcast %cst_77 : f32 to vector<8x32xf32>
    %329 = arith.addf %328, %327 : vector<8x32xf32>
    %330 = arith.divf %328, %329 : vector<8x32xf32>
    %331 = vector.extract_strided_slice %319 {offsets = [0, 32], sizes = [8, 32], strides = [1, 1]} : vector<8x96xf32> to vector<8x32xf32>
    %332 = vector.extract_strided_slice %322 {offsets = [0, 32], sizes = [8, 32], strides = [1, 1]} : vector<8x96xf32> to vector<8x32xf32>
    %333 = arith.addf %331, %332 : vector<8x32xf32>
    %334 = arith.negf %333 : vector<8x32xf32>
    %335 = math.exp %334 : vector<8x32xf32>
    %cst_78 = arith.constant 1.000000e+00 : f32
    %336 = vector.broadcast %cst_78 : f32 to vector<8x32xf32>
    %337 = arith.addf %336, %335 : vector<8x32xf32>
    %338 = arith.divf %336, %337 : vector<8x32xf32>
    %339 = vector.extract_strided_slice %319 {offsets = [0, 64], sizes = [8, 32], strides = [1, 1]} : vector<8x96xf32> to vector<8x32xf32>
    %340 = vector.extract_strided_slice %322 {offsets = [0, 64], sizes = [8, 32], strides = [1, 1]} : vector<8x96xf32> to vector<8x32xf32>
    %341 = arith.mulf %330, %340 : vector<8x32xf32>
    %342 = arith.addf %339, %341 : vector<8x32xf32>
    %343 = math.tanh %342 : vector<8x32xf32>
    %cst_79 = arith.constant 1.000000e+00 : f32
    %344 = vector.broadcast %cst_79 : f32 to vector<8x32xf32>
    %345 = arith.subf %344, %338 : vector<8x32xf32>
    %346 = arith.mulf %345, %343 : vector<8x32xf32>
    %347 = arith.mulf %338, %312 : vector<8x32xf32>
    %348 = arith.addf %346, %347 : vector<8x32xf32>
    %349 = arith.subf %348, %312 : vector<8x32xf32>
    %350 = vector.broadcast %318 : vector<8x1xf32> to vector<8x32xf32>
    %351 = arith.mulf %350, %349 : vector<8x32xf32>
    %352 = arith.addf %312, %351 : vector<8x32xf32>
    %353 = vector.broadcast %318 : vector<8x1xf32> to vector<8x32xf32>
    %354 = arith.mulf %352, %353 : vector<8x32xf32>
    %cst_80 = arith.constant dense<0.000000e+00> : vector<8x32xf32>
    %355 = tpu.matmul %354, %4, %cst_80 {dimension_numbers = #tpu.dot_dimension_numbers<[1], [0], [0], [1], [0, 0, 1, 1], [], []>} : vector<8x32xf32>, vector<32x32xf32>, vector<8x32xf32> -> vector<8x32xf32>
    %356 = vector.broadcast %5 : vector<1x32xf32> to vector<8x32xf32>
    %357 = arith.addf %355, %356 : vector<8x32xf32>
    %358 = tpu.concatenate %77, %117, %157, %197, %237, %277, %317, %357 in 1 : vector<8x32xf32>, vector<8x32xf32>, vector<8x32xf32>, vector<8x32xf32>, vector<8x32xf32>, vector<8x32xf32>, vector<8x32xf32>, vector<8x32xf32> -> vector<8x256xf32>
    %c0_81 = arith.constant 0 : index
    %c0_82 = arith.constant 0 : index
    %359 = vector.load %arg10[%c0_81, %c0_82] : memref<32x32xf32, #tpu.memory_space<vmem>>, vector<32x32xf32>
    %cst_83 = arith.constant dense<0.000000e+00> : vector<8x32xf32>
    %360 = tpu.matmul %352, %359, %cst_83 {dimension_numbers = #tpu.dot_dimension_numbers<[1], [0], [0], [1], [0, 0, 1, 1], [], []>} : vector<8x32xf32>, vector<32x32xf32>, vector<8x32xf32> -> vector<8x32xf32>
    %c0_84 = arith.constant 0 : index
    %c0_85 = arith.constant 0 : index
    %361 = vector.load %arg11[%c0_84, %c0_85] : memref<1x32xf32, #tpu.memory_space<vmem>>, vector<1x32xf32>
    %362 = vector.broadcast %361 : vector<1x32xf32> to vector<8x32xf32>
    %363 = arith.addf %360, %362 : vector<8x32xf32>
    %364 = math.tanh %363 : vector<8x32xf32>
    %cst_86 = arith.constant dense<0.000000e+00> : vector<8x256xf32>
    %365 = tpu.matmul %364, %6, %cst_86 {dimension_numbers = #tpu.dot_dimension_numbers<[1], [0], [0], [1], [0, 0, 1, 1], [], []>} : vector<8x32xf32>, vector<32x256xf32>, vector<8x256xf32> -> vector<8x256xf32>
    %366 = arith.addf %358, %365 : vector<8x256xf32>
    %367 = math.tanh %366 : vector<8x256xf32>
    %cst_87 = arith.constant dense<0.000000e+00> : vector<8x8xf32>
    %368 = tpu.matmul %367, %7, %cst_87 {dimension_numbers = #tpu.dot_dimension_numbers<[1], [0], [0], [1], [0, 0, 1, 1], [], []>} : vector<8x256xf32>, vector<256x8xf32>, vector<8x8xf32> -> vector<8x8xf32>
    %369 = arith.addf %368, %1 : vector<8x8xf32>
    %cst_88 = arith.constant dense<0xFF800000> : vector<8xf32>
    %370 = vector.multi_reduction <maximumf>, %369, %cst_88 [1] : vector<8x8xf32> to vector<8xf32>
    %371 = vector.shape_cast %370 : vector<8xf32> to vector<8x1xf32>
    %372 = vector.broadcast %371 : vector<8x1xf32> to vector<8x8xf32>
    %373 = arith.subf %369, %372 : vector<8x8xf32>
    %374 = math.exp %373 : vector<8x8xf32>
    %cst_89 = arith.constant dense<0.000000e+00> : vector<8xf32>
    %375 = vector.multi_reduction <add>, %374, %cst_89 [1] : vector<8x8xf32> to vector<8xf32>
    %376 = vector.shape_cast %375 : vector<8xf32> to vector<8x1xf32>
    %377 = tpu.reciprocal %376 {approx = true} : vector<8x1xf32> -> vector<8x1xf32>
    %378 = vector.broadcast %377 : vector<8x1xf32> to vector<8x8xf32>
    %379 = arith.mulf %374, %378 : vector<8x8xf32>
    %cst_90 = arith.constant 0.000000e+00 : f32
    %380 = vector.broadcast %cst_90 : f32 to vector<8x32xf32>
    %381 = vector.extract_strided_slice %379 {offsets = [0, 0], sizes = [8, 1], strides = [1, 1]} : vector<8x8xf32> to vector<8x1xf32>
    %382 = vector.broadcast %381 : vector<8x1xf32> to vector<8x32xf32>
    %383 = arith.mulf %382, %74 : vector<8x32xf32>
    %384 = arith.addf %380, %383 : vector<8x32xf32>
    %385 = vector.extract_strided_slice %379 {offsets = [0, 1], sizes = [8, 1], strides = [1, 1]} : vector<8x8xf32> to vector<8x1xf32>
    %386 = vector.broadcast %385 : vector<8x1xf32> to vector<8x32xf32>
    %387 = arith.mulf %386, %114 : vector<8x32xf32>
    %388 = arith.addf %384, %387 : vector<8x32xf32>
    %389 = vector.extract_strided_slice %379 {offsets = [0, 2], sizes = [8, 1], strides = [1, 1]} : vector<8x8xf32> to vector<8x1xf32>
    %390 = vector.broadcast %389 : vector<8x1xf32> to vector<8x32xf32>
    %391 = arith.mulf %390, %154 : vector<8x32xf32>
    %392 = arith.addf %388, %391 : vector<8x32xf32>
    %393 = vector.extract_strided_slice %379 {offsets = [0, 3], sizes = [8, 1], strides = [1, 1]} : vector<8x8xf32> to vector<8x1xf32>
    %394 = vector.broadcast %393 : vector<8x1xf32> to vector<8x32xf32>
    %395 = arith.mulf %394, %194 : vector<8x32xf32>
    %396 = arith.addf %392, %395 : vector<8x32xf32>
    %397 = vector.extract_strided_slice %379 {offsets = [0, 4], sizes = [8, 1], strides = [1, 1]} : vector<8x8xf32> to vector<8x1xf32>
    %398 = vector.broadcast %397 : vector<8x1xf32> to vector<8x32xf32>
    %399 = arith.mulf %398, %234 : vector<8x32xf32>
    %400 = arith.addf %396, %399 : vector<8x32xf32>
    %401 = vector.extract_strided_slice %379 {offsets = [0, 5], sizes = [8, 1], strides = [1, 1]} : vector<8x8xf32> to vector<8x1xf32>
    %402 = vector.broadcast %401 : vector<8x1xf32> to vector<8x32xf32>
    %403 = arith.mulf %402, %274 : vector<8x32xf32>
    %404 = arith.addf %400, %403 : vector<8x32xf32>
    %405 = vector.extract_strided_slice %379 {offsets = [0, 6], sizes = [8, 1], strides = [1, 1]} : vector<8x8xf32> to vector<8x1xf32>
    %406 = vector.broadcast %405 : vector<8x1xf32> to vector<8x32xf32>
    %407 = arith.mulf %406, %314 : vector<8x32xf32>
    %408 = arith.addf %404, %407 : vector<8x32xf32>
    %409 = vector.extract_strided_slice %379 {offsets = [0, 7], sizes = [8, 1], strides = [1, 1]} : vector<8x8xf32> to vector<8x1xf32>
    %410 = vector.broadcast %409 : vector<8x1xf32> to vector<8x32xf32>
    %411 = arith.mulf %410, %354 : vector<8x32xf32>
    %412 = arith.addf %408, %411 : vector<8x32xf32>
    %413 = vector.extract_strided_slice %36 {offsets = [0, 0], sizes = [8, 96], strides = [1, 1]} : vector<56x96xf32> to vector<8x96xf32>
    %cst_91 = arith.constant dense<0.000000e+00> : vector<8x96xf32>
    %414 = tpu.matmul %412, %8, %cst_91 {dimension_numbers = #tpu.dot_dimension_numbers<[1], [0], [0], [1], [0, 0, 1, 1], [], []>} : vector<8x32xf32>, vector<32x96xf32>, vector<8x96xf32> -> vector<8x96xf32>
    %415 = arith.addf %413, %414 : vector<8x96xf32>
    %cst_92 = arith.constant dense<0.000000e+00> : vector<8x96xf32>
    %416 = tpu.matmul %364, %9, %cst_92 {dimension_numbers = #tpu.dot_dimension_numbers<[1], [0], [0], [1], [0, 0, 1, 1], [], []>} : vector<8x32xf32>, vector<32x96xf32>, vector<8x96xf32> -> vector<8x96xf32>
    %417 = vector.broadcast %10 : vector<1x96xf32> to vector<8x96xf32>
    %418 = arith.addf %416, %417 : vector<8x96xf32>
    %419 = vector.extract_strided_slice %415 {offsets = [0, 0], sizes = [8, 32], strides = [1, 1]} : vector<8x96xf32> to vector<8x32xf32>
    %420 = vector.extract_strided_slice %418 {offsets = [0, 0], sizes = [8, 32], strides = [1, 1]} : vector<8x96xf32> to vector<8x32xf32>
    %421 = arith.addf %419, %420 : vector<8x32xf32>
    %422 = arith.negf %421 : vector<8x32xf32>
    %423 = math.exp %422 : vector<8x32xf32>
    %cst_93 = arith.constant 1.000000e+00 : f32
    %424 = vector.broadcast %cst_93 : f32 to vector<8x32xf32>
    %425 = arith.addf %424, %423 : vector<8x32xf32>
    %426 = arith.divf %424, %425 : vector<8x32xf32>
    %427 = vector.extract_strided_slice %415 {offsets = [0, 32], sizes = [8, 32], strides = [1, 1]} : vector<8x96xf32> to vector<8x32xf32>
    %428 = vector.extract_strided_slice %418 {offsets = [0, 32], sizes = [8, 32], strides = [1, 1]} : vector<8x96xf32> to vector<8x32xf32>
    %429 = arith.addf %427, %428 : vector<8x32xf32>
    %430 = arith.negf %429 : vector<8x32xf32>
    %431 = math.exp %430 : vector<8x32xf32>
    %cst_94 = arith.constant 1.000000e+00 : f32
    %432 = vector.broadcast %cst_94 : f32 to vector<8x32xf32>
    %433 = arith.addf %432, %431 : vector<8x32xf32>
    %434 = arith.divf %432, %433 : vector<8x32xf32>
    %435 = vector.extract_strided_slice %415 {offsets = [0, 64], sizes = [8, 32], strides = [1, 1]} : vector<8x96xf32> to vector<8x32xf32>
    %436 = vector.extract_strided_slice %418 {offsets = [0, 64], sizes = [8, 32], strides = [1, 1]} : vector<8x96xf32> to vector<8x32xf32>
    %437 = arith.mulf %426, %436 : vector<8x32xf32>
    %438 = arith.addf %435, %437 : vector<8x32xf32>
    %439 = math.tanh %438 : vector<8x32xf32>
    %cst_95 = arith.constant 1.000000e+00 : f32
    %440 = vector.broadcast %cst_95 : f32 to vector<8x32xf32>
    %441 = arith.subf %440, %434 : vector<8x32xf32>
    %442 = arith.mulf %441, %439 : vector<8x32xf32>
    %443 = arith.mulf %434, %364 : vector<8x32xf32>
    %444 = arith.addf %442, %443 : vector<8x32xf32>
    %cst_96 = arith.constant dense<0.000000e+00> : vector<8x256xf32>
    %445 = tpu.matmul %444, %6, %cst_96 {dimension_numbers = #tpu.dot_dimension_numbers<[1], [0], [0], [1], [0, 0, 1, 1], [], []>} : vector<8x32xf32>, vector<32x256xf32>, vector<8x256xf32> -> vector<8x256xf32>
    %446 = arith.addf %358, %445 : vector<8x256xf32>
    %447 = math.tanh %446 : vector<8x256xf32>
    %cst_97 = arith.constant dense<0.000000e+00> : vector<8x8xf32>
    %448 = tpu.matmul %447, %7, %cst_97 {dimension_numbers = #tpu.dot_dimension_numbers<[1], [0], [0], [1], [0, 0, 1, 1], [], []>} : vector<8x256xf32>, vector<256x8xf32>, vector<8x8xf32> -> vector<8x8xf32>
    %449 = arith.addf %448, %1 : vector<8x8xf32>
    %cst_98 = arith.constant dense<0xFF800000> : vector<8xf32>
    %450 = vector.multi_reduction <maximumf>, %449, %cst_98 [1] : vector<8x8xf32> to vector<8xf32>
    %451 = vector.shape_cast %450 : vector<8xf32> to vector<8x1xf32>
    %452 = vector.broadcast %451 : vector<8x1xf32> to vector<8x8xf32>
    %453 = arith.subf %449, %452 : vector<8x8xf32>
    %454 = math.exp %453 : vector<8x8xf32>
    %cst_99 = arith.constant dense<0.000000e+00> : vector<8xf32>
    %455 = vector.multi_reduction <add>, %454, %cst_99 [1] : vector<8x8xf32> to vector<8xf32>
    %456 = vector.shape_cast %455 : vector<8xf32> to vector<8x1xf32>
    %457 = tpu.reciprocal %456 {approx = true} : vector<8x1xf32> -> vector<8x1xf32>
    %458 = vector.broadcast %457 : vector<8x1xf32> to vector<8x8xf32>
    %459 = arith.mulf %454, %458 : vector<8x8xf32>
    %cst_100 = arith.constant 0.000000e+00 : f32
    %460 = vector.broadcast %cst_100 : f32 to vector<8x32xf32>
    %461 = vector.extract_strided_slice %459 {offsets = [0, 0], sizes = [8, 1], strides = [1, 1]} : vector<8x8xf32> to vector<8x1xf32>
    %462 = vector.broadcast %461 : vector<8x1xf32> to vector<8x32xf32>
    %463 = arith.mulf %462, %74 : vector<8x32xf32>
    %464 = arith.addf %460, %463 : vector<8x32xf32>
    %465 = vector.extract_strided_slice %459 {offsets = [0, 1], sizes = [8, 1], strides = [1, 1]} : vector<8x8xf32> to vector<8x1xf32>
    %466 = vector.broadcast %465 : vector<8x1xf32> to vector<8x32xf32>
    %467 = arith.mulf %466, %114 : vector<8x32xf32>
    %468 = arith.addf %464, %467 : vector<8x32xf32>
    %469 = vector.extract_strided_slice %459 {offsets = [0, 2], sizes = [8, 1], strides = [1, 1]} : vector<8x8xf32> to vector<8x1xf32>
    %470 = vector.broadcast %469 : vector<8x1xf32> to vector<8x32xf32>
    %471 = arith.mulf %470, %154 : vector<8x32xf32>
    %472 = arith.addf %468, %471 : vector<8x32xf32>
    %473 = vector.extract_strided_slice %459 {offsets = [0, 3], sizes = [8, 1], strides = [1, 1]} : vector<8x8xf32> to vector<8x1xf32>
    %474 = vector.broadcast %473 : vector<8x1xf32> to vector<8x32xf32>
    %475 = arith.mulf %474, %194 : vector<8x32xf32>
    %476 = arith.addf %472, %475 : vector<8x32xf32>
    %477 = vector.extract_strided_slice %459 {offsets = [0, 4], sizes = [8, 1], strides = [1, 1]} : vector<8x8xf32> to vector<8x1xf32>
    %478 = vector.broadcast %477 : vector<8x1xf32> to vector<8x32xf32>
    %479 = arith.mulf %478, %234 : vector<8x32xf32>
    %480 = arith.addf %476, %479 : vector<8x32xf32>
    %481 = vector.extract_strided_slice %459 {offsets = [0, 5], sizes = [8, 1], strides = [1, 1]} : vector<8x8xf32> to vector<8x1xf32>
    %482 = vector.broadcast %481 : vector<8x1xf32> to vector<8x32xf32>
    %483 = arith.mulf %482, %274 : vector<8x32xf32>
    %484 = arith.addf %480, %483 : vector<8x32xf32>
    %485 = vector.extract_strided_slice %459 {offsets = [0, 6], sizes = [8, 1], strides = [1, 1]} : vector<8x8xf32> to vector<8x1xf32>
    %486 = vector.broadcast %485 : vector<8x1xf32> to vector<8x32xf32>
    %487 = arith.mulf %486, %314 : vector<8x32xf32>
    %488 = arith.addf %484, %487 : vector<8x32xf32>
    %489 = vector.extract_strided_slice %459 {offsets = [0, 7], sizes = [8, 1], strides = [1, 1]} : vector<8x8xf32> to vector<8x1xf32>
    %490 = vector.broadcast %489 : vector<8x1xf32> to vector<8x32xf32>
    %491 = arith.mulf %490, %354 : vector<8x32xf32>
    %492 = arith.addf %488, %491 : vector<8x32xf32>
    %493 = vector.extract_strided_slice %36 {offsets = [8, 0], sizes = [8, 96], strides = [1, 1]} : vector<56x96xf32> to vector<8x96xf32>
    %cst_101 = arith.constant dense<0.000000e+00> : vector<8x96xf32>
    %494 = tpu.matmul %492, %8, %cst_101 {dimension_numbers = #tpu.dot_dimension_numbers<[1], [0], [0], [1], [0, 0, 1, 1], [], []>} : vector<8x32xf32>, vector<32x96xf32>, vector<8x96xf32> -> vector<8x96xf32>
    %495 = arith.addf %493, %494 : vector<8x96xf32>
    %cst_102 = arith.constant dense<0.000000e+00> : vector<8x96xf32>
    %496 = tpu.matmul %444, %9, %cst_102 {dimension_numbers = #tpu.dot_dimension_numbers<[1], [0], [0], [1], [0, 0, 1, 1], [], []>} : vector<8x32xf32>, vector<32x96xf32>, vector<8x96xf32> -> vector<8x96xf32>
    %497 = vector.broadcast %10 : vector<1x96xf32> to vector<8x96xf32>
    %498 = arith.addf %496, %497 : vector<8x96xf32>
    %499 = vector.extract_strided_slice %495 {offsets = [0, 0], sizes = [8, 32], strides = [1, 1]} : vector<8x96xf32> to vector<8x32xf32>
    %500 = vector.extract_strided_slice %498 {offsets = [0, 0], sizes = [8, 32], strides = [1, 1]} : vector<8x96xf32> to vector<8x32xf32>
    %501 = arith.addf %499, %500 : vector<8x32xf32>
    %502 = arith.negf %501 : vector<8x32xf32>
    %503 = math.exp %502 : vector<8x32xf32>
    %cst_103 = arith.constant 1.000000e+00 : f32
    %504 = vector.broadcast %cst_103 : f32 to vector<8x32xf32>
    %505 = arith.addf %504, %503 : vector<8x32xf32>
    %506 = arith.divf %504, %505 : vector<8x32xf32>
    %507 = vector.extract_strided_slice %495 {offsets = [0, 32], sizes = [8, 32], strides = [1, 1]} : vector<8x96xf32> to vector<8x32xf32>
    %508 = vector.extract_strided_slice %498 {offsets = [0, 32], sizes = [8, 32], strides = [1, 1]} : vector<8x96xf32> to vector<8x32xf32>
    %509 = arith.addf %507, %508 : vector<8x32xf32>
    %510 = arith.negf %509 : vector<8x32xf32>
    %511 = math.exp %510 : vector<8x32xf32>
    %cst_104 = arith.constant 1.000000e+00 : f32
    %512 = vector.broadcast %cst_104 : f32 to vector<8x32xf32>
    %513 = arith.addf %512, %511 : vector<8x32xf32>
    %514 = arith.divf %512, %513 : vector<8x32xf32>
    %515 = vector.extract_strided_slice %495 {offsets = [0, 64], sizes = [8, 32], strides = [1, 1]} : vector<8x96xf32> to vector<8x32xf32>
    %516 = vector.extract_strided_slice %498 {offsets = [0, 64], sizes = [8, 32], strides = [1, 1]} : vector<8x96xf32> to vector<8x32xf32>
    %517 = arith.mulf %506, %516 : vector<8x32xf32>
    %518 = arith.addf %515, %517 : vector<8x32xf32>
    %519 = math.tanh %518 : vector<8x32xf32>
    %cst_105 = arith.constant 1.000000e+00 : f32
    %520 = vector.broadcast %cst_105 : f32 to vector<8x32xf32>
    %521 = arith.subf %520, %514 : vector<8x32xf32>
    %522 = arith.mulf %521, %519 : vector<8x32xf32>
    %523 = arith.mulf %514, %444 : vector<8x32xf32>
    %524 = arith.addf %522, %523 : vector<8x32xf32>
    %cst_106 = arith.constant dense<0.000000e+00> : vector<8x256xf32>
    %525 = tpu.matmul %524, %6, %cst_106 {dimension_numbers = #tpu.dot_dimension_numbers<[1], [0], [0], [1], [0, 0, 1, 1], [], []>} : vector<8x32xf32>, vector<32x256xf32>, vector<8x256xf32> -> vector<8x256xf32>
    %526 = arith.addf %358, %525 : vector<8x256xf32>
    %527 = math.tanh %526 : vector<8x256xf32>
    %cst_107 = arith.constant dense<0.000000e+00> : vector<8x8xf32>
    %528 = tpu.matmul %527, %7, %cst_107 {dimension_numbers = #tpu.dot_dimension_numbers<[1], [0], [0], [1], [0, 0, 1, 1], [], []>} : vector<8x256xf32>, vector<256x8xf32>, vector<8x8xf32> -> vector<8x8xf32>
    %529 = arith.addf %528, %1 : vector<8x8xf32>
    %cst_108 = arith.constant dense<0xFF800000> : vector<8xf32>
    %530 = vector.multi_reduction <maximumf>, %529, %cst_108 [1] : vector<8x8xf32> to vector<8xf32>
    %531 = vector.shape_cast %530 : vector<8xf32> to vector<8x1xf32>
    %532 = vector.broadcast %531 : vector<8x1xf32> to vector<8x8xf32>
    %533 = arith.subf %529, %532 : vector<8x8xf32>
    %534 = math.exp %533 : vector<8x8xf32>
    %cst_109 = arith.constant dense<0.000000e+00> : vector<8xf32>
    %535 = vector.multi_reduction <add>, %534, %cst_109 [1] : vector<8x8xf32> to vector<8xf32>
    %536 = vector.shape_cast %535 : vector<8xf32> to vector<8x1xf32>
    %537 = tpu.reciprocal %536 {approx = true} : vector<8x1xf32> -> vector<8x1xf32>
    %538 = vector.broadcast %537 : vector<8x1xf32> to vector<8x8xf32>
    %539 = arith.mulf %534, %538 : vector<8x8xf32>
    %cst_110 = arith.constant 0.000000e+00 : f32
    %540 = vector.broadcast %cst_110 : f32 to vector<8x32xf32>
    %541 = vector.extract_strided_slice %539 {offsets = [0, 0], sizes = [8, 1], strides = [1, 1]} : vector<8x8xf32> to vector<8x1xf32>
    %542 = vector.broadcast %541 : vector<8x1xf32> to vector<8x32xf32>
    %543 = arith.mulf %542, %74 : vector<8x32xf32>
    %544 = arith.addf %540, %543 : vector<8x32xf32>
    %545 = vector.extract_strided_slice %539 {offsets = [0, 1], sizes = [8, 1], strides = [1, 1]} : vector<8x8xf32> to vector<8x1xf32>
    %546 = vector.broadcast %545 : vector<8x1xf32> to vector<8x32xf32>
    %547 = arith.mulf %546, %114 : vector<8x32xf32>
    %548 = arith.addf %544, %547 : vector<8x32xf32>
    %549 = vector.extract_strided_slice %539 {offsets = [0, 2], sizes = [8, 1], strides = [1, 1]} : vector<8x8xf32> to vector<8x1xf32>
    %550 = vector.broadcast %549 : vector<8x1xf32> to vector<8x32xf32>
    %551 = arith.mulf %550, %154 : vector<8x32xf32>
    %552 = arith.addf %548, %551 : vector<8x32xf32>
    %553 = vector.extract_strided_slice %539 {offsets = [0, 3], sizes = [8, 1], strides = [1, 1]} : vector<8x8xf32> to vector<8x1xf32>
    %554 = vector.broadcast %553 : vector<8x1xf32> to vector<8x32xf32>
    %555 = arith.mulf %554, %194 : vector<8x32xf32>
    %556 = arith.addf %552, %555 : vector<8x32xf32>
    %557 = vector.extract_strided_slice %539 {offsets = [0, 4], sizes = [8, 1], strides = [1, 1]} : vector<8x8xf32> to vector<8x1xf32>
    %558 = vector.broadcast %557 : vector<8x1xf32> to vector<8x32xf32>
    %559 = arith.mulf %558, %234 : vector<8x32xf32>
    %560 = arith.addf %556, %559 : vector<8x32xf32>
    %561 = vector.extract_strided_slice %539 {offsets = [0, 5], sizes = [8, 1], strides = [1, 1]} : vector<8x8xf32> to vector<8x1xf32>
    %562 = vector.broadcast %561 : vector<8x1xf32> to vector<8x32xf32>
    %563 = arith.mulf %562, %274 : vector<8x32xf32>
    %564 = arith.addf %560, %563 : vector<8x32xf32>
    %565 = vector.extract_strided_slice %539 {offsets = [0, 6], sizes = [8, 1], strides = [1, 1]} : vector<8x8xf32> to vector<8x1xf32>
    %566 = vector.broadcast %565 : vector<8x1xf32> to vector<8x32xf32>
    %567 = arith.mulf %566, %314 : vector<8x32xf32>
    %568 = arith.addf %564, %567 : vector<8x32xf32>
    %569 = vector.extract_strided_slice %539 {offsets = [0, 7], sizes = [8, 1], strides = [1, 1]} : vector<8x8xf32> to vector<8x1xf32>
    %570 = vector.broadcast %569 : vector<8x1xf32> to vector<8x32xf32>
    %571 = arith.mulf %570, %354 : vector<8x32xf32>
    %572 = arith.addf %568, %571 : vector<8x32xf32>
    %573 = vector.extract_strided_slice %36 {offsets = [16, 0], sizes = [8, 96], strides = [1, 1]} : vector<56x96xf32> to vector<8x96xf32>
    %cst_111 = arith.constant dense<0.000000e+00> : vector<8x96xf32>
    %574 = tpu.matmul %572, %8, %cst_111 {dimension_numbers = #tpu.dot_dimension_numbers<[1], [0], [0], [1], [0, 0, 1, 1], [], []>} : vector<8x32xf32>, vector<32x96xf32>, vector<8x96xf32> -> vector<8x96xf32>
    %575 = arith.addf %573, %574 : vector<8x96xf32>
    %cst_112 = arith.constant dense<0.000000e+00> : vector<8x96xf32>
    %576 = tpu.matmul %524, %9, %cst_112 {dimension_numbers = #tpu.dot_dimension_numbers<[1], [0], [0], [1], [0, 0, 1, 1], [], []>} : vector<8x32xf32>, vector<32x96xf32>, vector<8x96xf32> -> vector<8x96xf32>
    %577 = vector.broadcast %10 : vector<1x96xf32> to vector<8x96xf32>
    %578 = arith.addf %576, %577 : vector<8x96xf32>
    %579 = vector.extract_strided_slice %575 {offsets = [0, 0], sizes = [8, 32], strides = [1, 1]} : vector<8x96xf32> to vector<8x32xf32>
    %580 = vector.extract_strided_slice %578 {offsets = [0, 0], sizes = [8, 32], strides = [1, 1]} : vector<8x96xf32> to vector<8x32xf32>
    %581 = arith.addf %579, %580 : vector<8x32xf32>
    %582 = arith.negf %581 : vector<8x32xf32>
    %583 = math.exp %582 : vector<8x32xf32>
    %cst_113 = arith.constant 1.000000e+00 : f32
    %584 = vector.broadcast %cst_113 : f32 to vector<8x32xf32>
    %585 = arith.addf %584, %583 : vector<8x32xf32>
    %586 = arith.divf %584, %585 : vector<8x32xf32>
    %587 = vector.extract_strided_slice %575 {offsets = [0, 32], sizes = [8, 32], strides = [1, 1]} : vector<8x96xf32> to vector<8x32xf32>
    %588 = vector.extract_strided_slice %578 {offsets = [0, 32], sizes = [8, 32], strides = [1, 1]} : vector<8x96xf32> to vector<8x32xf32>
    %589 = arith.addf %587, %588 : vector<8x32xf32>
    %590 = arith.negf %589 : vector<8x32xf32>
    %591 = math.exp %590 : vector<8x32xf32>
    %cst_114 = arith.constant 1.000000e+00 : f32
    %592 = vector.broadcast %cst_114 : f32 to vector<8x32xf32>
    %593 = arith.addf %592, %591 : vector<8x32xf32>
    %594 = arith.divf %592, %593 : vector<8x32xf32>
    %595 = vector.extract_strided_slice %575 {offsets = [0, 64], sizes = [8, 32], strides = [1, 1]} : vector<8x96xf32> to vector<8x32xf32>
    %596 = vector.extract_strided_slice %578 {offsets = [0, 64], sizes = [8, 32], strides = [1, 1]} : vector<8x96xf32> to vector<8x32xf32>
    %597 = arith.mulf %586, %596 : vector<8x32xf32>
    %598 = arith.addf %595, %597 : vector<8x32xf32>
    %599 = math.tanh %598 : vector<8x32xf32>
    %cst_115 = arith.constant 1.000000e+00 : f32
    %600 = vector.broadcast %cst_115 : f32 to vector<8x32xf32>
    %601 = arith.subf %600, %594 : vector<8x32xf32>
    %602 = arith.mulf %601, %599 : vector<8x32xf32>
    %603 = arith.mulf %594, %524 : vector<8x32xf32>
    %604 = arith.addf %602, %603 : vector<8x32xf32>
    %cst_116 = arith.constant dense<0.000000e+00> : vector<8x256xf32>
    %605 = tpu.matmul %604, %6, %cst_116 {dimension_numbers = #tpu.dot_dimension_numbers<[1], [0], [0], [1], [0, 0, 1, 1], [], []>} : vector<8x32xf32>, vector<32x256xf32>, vector<8x256xf32> -> vector<8x256xf32>
    %606 = arith.addf %358, %605 : vector<8x256xf32>
    %607 = math.tanh %606 : vector<8x256xf32>
    %cst_117 = arith.constant dense<0.000000e+00> : vector<8x8xf32>
    %608 = tpu.matmul %607, %7, %cst_117 {dimension_numbers = #tpu.dot_dimension_numbers<[1], [0], [0], [1], [0, 0, 1, 1], [], []>} : vector<8x256xf32>, vector<256x8xf32>, vector<8x8xf32> -> vector<8x8xf32>
    %609 = arith.addf %608, %1 : vector<8x8xf32>
    %cst_118 = arith.constant dense<0xFF800000> : vector<8xf32>
    %610 = vector.multi_reduction <maximumf>, %609, %cst_118 [1] : vector<8x8xf32> to vector<8xf32>
    %611 = vector.shape_cast %610 : vector<8xf32> to vector<8x1xf32>
    %612 = vector.broadcast %611 : vector<8x1xf32> to vector<8x8xf32>
    %613 = arith.subf %609, %612 : vector<8x8xf32>
    %614 = math.exp %613 : vector<8x8xf32>
    %cst_119 = arith.constant dense<0.000000e+00> : vector<8xf32>
    %615 = vector.multi_reduction <add>, %614, %cst_119 [1] : vector<8x8xf32> to vector<8xf32>
    %616 = vector.shape_cast %615 : vector<8xf32> to vector<8x1xf32>
    %617 = tpu.reciprocal %616 {approx = true} : vector<8x1xf32> -> vector<8x1xf32>
    %618 = vector.broadcast %617 : vector<8x1xf32> to vector<8x8xf32>
    %619 = arith.mulf %614, %618 : vector<8x8xf32>
    %cst_120 = arith.constant 0.000000e+00 : f32
    %620 = vector.broadcast %cst_120 : f32 to vector<8x32xf32>
    %621 = vector.extract_strided_slice %619 {offsets = [0, 0], sizes = [8, 1], strides = [1, 1]} : vector<8x8xf32> to vector<8x1xf32>
    %622 = vector.broadcast %621 : vector<8x1xf32> to vector<8x32xf32>
    %623 = arith.mulf %622, %74 : vector<8x32xf32>
    %624 = arith.addf %620, %623 : vector<8x32xf32>
    %625 = vector.extract_strided_slice %619 {offsets = [0, 1], sizes = [8, 1], strides = [1, 1]} : vector<8x8xf32> to vector<8x1xf32>
    %626 = vector.broadcast %625 : vector<8x1xf32> to vector<8x32xf32>
    %627 = arith.mulf %626, %114 : vector<8x32xf32>
    %628 = arith.addf %624, %627 : vector<8x32xf32>
    %629 = vector.extract_strided_slice %619 {offsets = [0, 2], sizes = [8, 1], strides = [1, 1]} : vector<8x8xf32> to vector<8x1xf32>
    %630 = vector.broadcast %629 : vector<8x1xf32> to vector<8x32xf32>
    %631 = arith.mulf %630, %154 : vector<8x32xf32>
    %632 = arith.addf %628, %631 : vector<8x32xf32>
    %633 = vector.extract_strided_slice %619 {offsets = [0, 3], sizes = [8, 1], strides = [1, 1]} : vector<8x8xf32> to vector<8x1xf32>
    %634 = vector.broadcast %633 : vector<8x1xf32> to vector<8x32xf32>
    %635 = arith.mulf %634, %194 : vector<8x32xf32>
    %636 = arith.addf %632, %635 : vector<8x32xf32>
    %637 = vector.extract_strided_slice %619 {offsets = [0, 4], sizes = [8, 1], strides = [1, 1]} : vector<8x8xf32> to vector<8x1xf32>
    %638 = vector.broadcast %637 : vector<8x1xf32> to vector<8x32xf32>
    %639 = arith.mulf %638, %234 : vector<8x32xf32>
    %640 = arith.addf %636, %639 : vector<8x32xf32>
    %641 = vector.extract_strided_slice %619 {offsets = [0, 5], sizes = [8, 1], strides = [1, 1]} : vector<8x8xf32> to vector<8x1xf32>
    %642 = vector.broadcast %641 : vector<8x1xf32> to vector<8x32xf32>
    %643 = arith.mulf %642, %274 : vector<8x32xf32>
    %644 = arith.addf %640, %643 : vector<8x32xf32>
    %645 = vector.extract_strided_slice %619 {offsets = [0, 6], sizes = [8, 1], strides = [1, 1]} : vector<8x8xf32> to vector<8x1xf32>
    %646 = vector.broadcast %645 : vector<8x1xf32> to vector<8x32xf32>
    %647 = arith.mulf %646, %314 : vector<8x32xf32>
    %648 = arith.addf %644, %647 : vector<8x32xf32>
    %649 = vector.extract_strided_slice %619 {offsets = [0, 7], sizes = [8, 1], strides = [1, 1]} : vector<8x8xf32> to vector<8x1xf32>
    %650 = vector.broadcast %649 : vector<8x1xf32> to vector<8x32xf32>
    %651 = arith.mulf %650, %354 : vector<8x32xf32>
    %652 = arith.addf %648, %651 : vector<8x32xf32>
    %653 = vector.extract_strided_slice %36 {offsets = [24, 0], sizes = [8, 96], strides = [1, 1]} : vector<56x96xf32> to vector<8x96xf32>
    %cst_121 = arith.constant dense<0.000000e+00> : vector<8x96xf32>
    %654 = tpu.matmul %652, %8, %cst_121 {dimension_numbers = #tpu.dot_dimension_numbers<[1], [0], [0], [1], [0, 0, 1, 1], [], []>} : vector<8x32xf32>, vector<32x96xf32>, vector<8x96xf32> -> vector<8x96xf32>
    %655 = arith.addf %653, %654 : vector<8x96xf32>
    %cst_122 = arith.constant dense<0.000000e+00> : vector<8x96xf32>
    %656 = tpu.matmul %604, %9, %cst_122 {dimension_numbers = #tpu.dot_dimension_numbers<[1], [0], [0], [1], [0, 0, 1, 1], [], []>} : vector<8x32xf32>, vector<32x96xf32>, vector<8x96xf32> -> vector<8x96xf32>
    %657 = vector.broadcast %10 : vector<1x96xf32> to vector<8x96xf32>
    %658 = arith.addf %656, %657 : vector<8x96xf32>
    %659 = vector.extract_strided_slice %655 {offsets = [0, 0], sizes = [8, 32], strides = [1, 1]} : vector<8x96xf32> to vector<8x32xf32>
    %660 = vector.extract_strided_slice %658 {offsets = [0, 0], sizes = [8, 32], strides = [1, 1]} : vector<8x96xf32> to vector<8x32xf32>
    %661 = arith.addf %659, %660 : vector<8x32xf32>
    %662 = arith.negf %661 : vector<8x32xf32>
    %663 = math.exp %662 : vector<8x32xf32>
    %cst_123 = arith.constant 1.000000e+00 : f32
    %664 = vector.broadcast %cst_123 : f32 to vector<8x32xf32>
    %665 = arith.addf %664, %663 : vector<8x32xf32>
    %666 = arith.divf %664, %665 : vector<8x32xf32>
    %667 = vector.extract_strided_slice %655 {offsets = [0, 32], sizes = [8, 32], strides = [1, 1]} : vector<8x96xf32> to vector<8x32xf32>
    %668 = vector.extract_strided_slice %658 {offsets = [0, 32], sizes = [8, 32], strides = [1, 1]} : vector<8x96xf32> to vector<8x32xf32>
    %669 = arith.addf %667, %668 : vector<8x32xf32>
    %670 = arith.negf %669 : vector<8x32xf32>
    %671 = math.exp %670 : vector<8x32xf32>
    %cst_124 = arith.constant 1.000000e+00 : f32
    %672 = vector.broadcast %cst_124 : f32 to vector<8x32xf32>
    %673 = arith.addf %672, %671 : vector<8x32xf32>
    %674 = arith.divf %672, %673 : vector<8x32xf32>
    %675 = vector.extract_strided_slice %655 {offsets = [0, 64], sizes = [8, 32], strides = [1, 1]} : vector<8x96xf32> to vector<8x32xf32>
    %676 = vector.extract_strided_slice %658 {offsets = [0, 64], sizes = [8, 32], strides = [1, 1]} : vector<8x96xf32> to vector<8x32xf32>
    %677 = arith.mulf %666, %676 : vector<8x32xf32>
    %678 = arith.addf %675, %677 : vector<8x32xf32>
    %679 = math.tanh %678 : vector<8x32xf32>
    %cst_125 = arith.constant 1.000000e+00 : f32
    %680 = vector.broadcast %cst_125 : f32 to vector<8x32xf32>
    %681 = arith.subf %680, %674 : vector<8x32xf32>
    %682 = arith.mulf %681, %679 : vector<8x32xf32>
    %683 = arith.mulf %674, %604 : vector<8x32xf32>
    %684 = arith.addf %682, %683 : vector<8x32xf32>
    %cst_126 = arith.constant dense<0.000000e+00> : vector<8x256xf32>
    %685 = tpu.matmul %684, %6, %cst_126 {dimension_numbers = #tpu.dot_dimension_numbers<[1], [0], [0], [1], [0, 0, 1, 1], [], []>} : vector<8x32xf32>, vector<32x256xf32>, vector<8x256xf32> -> vector<8x256xf32>
    %686 = arith.addf %358, %685 : vector<8x256xf32>
    %687 = math.tanh %686 : vector<8x256xf32>
    %cst_127 = arith.constant dense<0.000000e+00> : vector<8x8xf32>
    %688 = tpu.matmul %687, %7, %cst_127 {dimension_numbers = #tpu.dot_dimension_numbers<[1], [0], [0], [1], [0, 0, 1, 1], [], []>} : vector<8x256xf32>, vector<256x8xf32>, vector<8x8xf32> -> vector<8x8xf32>
    %689 = arith.addf %688, %1 : vector<8x8xf32>
    %cst_128 = arith.constant dense<0xFF800000> : vector<8xf32>
    %690 = vector.multi_reduction <maximumf>, %689, %cst_128 [1] : vector<8x8xf32> to vector<8xf32>
    %691 = vector.shape_cast %690 : vector<8xf32> to vector<8x1xf32>
    %692 = vector.broadcast %691 : vector<8x1xf32> to vector<8x8xf32>
    %693 = arith.subf %689, %692 : vector<8x8xf32>
    %694 = math.exp %693 : vector<8x8xf32>
    %cst_129 = arith.constant dense<0.000000e+00> : vector<8xf32>
    %695 = vector.multi_reduction <add>, %694, %cst_129 [1] : vector<8x8xf32> to vector<8xf32>
    %696 = vector.shape_cast %695 : vector<8xf32> to vector<8x1xf32>
    %697 = tpu.reciprocal %696 {approx = true} : vector<8x1xf32> -> vector<8x1xf32>
    %698 = vector.broadcast %697 : vector<8x1xf32> to vector<8x8xf32>
    %699 = arith.mulf %694, %698 : vector<8x8xf32>
    %cst_130 = arith.constant 0.000000e+00 : f32
    %700 = vector.broadcast %cst_130 : f32 to vector<8x32xf32>
    %701 = vector.extract_strided_slice %699 {offsets = [0, 0], sizes = [8, 1], strides = [1, 1]} : vector<8x8xf32> to vector<8x1xf32>
    %702 = vector.broadcast %701 : vector<8x1xf32> to vector<8x32xf32>
    %703 = arith.mulf %702, %74 : vector<8x32xf32>
    %704 = arith.addf %700, %703 : vector<8x32xf32>
    %705 = vector.extract_strided_slice %699 {offsets = [0, 1], sizes = [8, 1], strides = [1, 1]} : vector<8x8xf32> to vector<8x1xf32>
    %706 = vector.broadcast %705 : vector<8x1xf32> to vector<8x32xf32>
    %707 = arith.mulf %706, %114 : vector<8x32xf32>
    %708 = arith.addf %704, %707 : vector<8x32xf32>
    %709 = vector.extract_strided_slice %699 {offsets = [0, 2], sizes = [8, 1], strides = [1, 1]} : vector<8x8xf32> to vector<8x1xf32>
    %710 = vector.broadcast %709 : vector<8x1xf32> to vector<8x32xf32>
    %711 = arith.mulf %710, %154 : vector<8x32xf32>
    %712 = arith.addf %708, %711 : vector<8x32xf32>
    %713 = vector.extract_strided_slice %699 {offsets = [0, 3], sizes = [8, 1], strides = [1, 1]} : vector<8x8xf32> to vector<8x1xf32>
    %714 = vector.broadcast %713 : vector<8x1xf32> to vector<8x32xf32>
    %715 = arith.mulf %714, %194 : vector<8x32xf32>
    %716 = arith.addf %712, %715 : vector<8x32xf32>
    %717 = vector.extract_strided_slice %699 {offsets = [0, 4], sizes = [8, 1], strides = [1, 1]} : vector<8x8xf32> to vector<8x1xf32>
    %718 = vector.broadcast %717 : vector<8x1xf32> to vector<8x32xf32>
    %719 = arith.mulf %718, %234 : vector<8x32xf32>
    %720 = arith.addf %716, %719 : vector<8x32xf32>
    %721 = vector.extract_strided_slice %699 {offsets = [0, 5], sizes = [8, 1], strides = [1, 1]} : vector<8x8xf32> to vector<8x1xf32>
    %722 = vector.broadcast %721 : vector<8x1xf32> to vector<8x32xf32>
    %723 = arith.mulf %722, %274 : vector<8x32xf32>
    %724 = arith.addf %720, %723 : vector<8x32xf32>
    %725 = vector.extract_strided_slice %699 {offsets = [0, 6], sizes = [8, 1], strides = [1, 1]} : vector<8x8xf32> to vector<8x1xf32>
    %726 = vector.broadcast %725 : vector<8x1xf32> to vector<8x32xf32>
    %727 = arith.mulf %726, %314 : vector<8x32xf32>
    %728 = arith.addf %724, %727 : vector<8x32xf32>
    %729 = vector.extract_strided_slice %699 {offsets = [0, 7], sizes = [8, 1], strides = [1, 1]} : vector<8x8xf32> to vector<8x1xf32>
    %730 = vector.broadcast %729 : vector<8x1xf32> to vector<8x32xf32>
    %731 = arith.mulf %730, %354 : vector<8x32xf32>
    %732 = arith.addf %728, %731 : vector<8x32xf32>
    %733 = vector.extract_strided_slice %36 {offsets = [32, 0], sizes = [8, 96], strides = [1, 1]} : vector<56x96xf32> to vector<8x96xf32>
    %cst_131 = arith.constant dense<0.000000e+00> : vector<8x96xf32>
    %734 = tpu.matmul %732, %8, %cst_131 {dimension_numbers = #tpu.dot_dimension_numbers<[1], [0], [0], [1], [0, 0, 1, 1], [], []>} : vector<8x32xf32>, vector<32x96xf32>, vector<8x96xf32> -> vector<8x96xf32>
    %735 = arith.addf %733, %734 : vector<8x96xf32>
    %cst_132 = arith.constant dense<0.000000e+00> : vector<8x96xf32>
    %736 = tpu.matmul %684, %9, %cst_132 {dimension_numbers = #tpu.dot_dimension_numbers<[1], [0], [0], [1], [0, 0, 1, 1], [], []>} : vector<8x32xf32>, vector<32x96xf32>, vector<8x96xf32> -> vector<8x96xf32>
    %737 = vector.broadcast %10 : vector<1x96xf32> to vector<8x96xf32>
    %738 = arith.addf %736, %737 : vector<8x96xf32>
    %739 = vector.extract_strided_slice %735 {offsets = [0, 0], sizes = [8, 32], strides = [1, 1]} : vector<8x96xf32> to vector<8x32xf32>
    %740 = vector.extract_strided_slice %738 {offsets = [0, 0], sizes = [8, 32], strides = [1, 1]} : vector<8x96xf32> to vector<8x32xf32>
    %741 = arith.addf %739, %740 : vector<8x32xf32>
    %742 = arith.negf %741 : vector<8x32xf32>
    %743 = math.exp %742 : vector<8x32xf32>
    %cst_133 = arith.constant 1.000000e+00 : f32
    %744 = vector.broadcast %cst_133 : f32 to vector<8x32xf32>
    %745 = arith.addf %744, %743 : vector<8x32xf32>
    %746 = arith.divf %744, %745 : vector<8x32xf32>
    %747 = vector.extract_strided_slice %735 {offsets = [0, 32], sizes = [8, 32], strides = [1, 1]} : vector<8x96xf32> to vector<8x32xf32>
    %748 = vector.extract_strided_slice %738 {offsets = [0, 32], sizes = [8, 32], strides = [1, 1]} : vector<8x96xf32> to vector<8x32xf32>
    %749 = arith.addf %747, %748 : vector<8x32xf32>
    %750 = arith.negf %749 : vector<8x32xf32>
    %751 = math.exp %750 : vector<8x32xf32>
    %cst_134 = arith.constant 1.000000e+00 : f32
    %752 = vector.broadcast %cst_134 : f32 to vector<8x32xf32>
    %753 = arith.addf %752, %751 : vector<8x32xf32>
    %754 = arith.divf %752, %753 : vector<8x32xf32>
    %755 = vector.extract_strided_slice %735 {offsets = [0, 64], sizes = [8, 32], strides = [1, 1]} : vector<8x96xf32> to vector<8x32xf32>
    %756 = vector.extract_strided_slice %738 {offsets = [0, 64], sizes = [8, 32], strides = [1, 1]} : vector<8x96xf32> to vector<8x32xf32>
    %757 = arith.mulf %746, %756 : vector<8x32xf32>
    %758 = arith.addf %755, %757 : vector<8x32xf32>
    %759 = math.tanh %758 : vector<8x32xf32>
    %cst_135 = arith.constant 1.000000e+00 : f32
    %760 = vector.broadcast %cst_135 : f32 to vector<8x32xf32>
    %761 = arith.subf %760, %754 : vector<8x32xf32>
    %762 = arith.mulf %761, %759 : vector<8x32xf32>
    %763 = arith.mulf %754, %684 : vector<8x32xf32>
    %764 = arith.addf %762, %763 : vector<8x32xf32>
    %cst_136 = arith.constant dense<0.000000e+00> : vector<8x256xf32>
    %765 = tpu.matmul %764, %6, %cst_136 {dimension_numbers = #tpu.dot_dimension_numbers<[1], [0], [0], [1], [0, 0, 1, 1], [], []>} : vector<8x32xf32>, vector<32x256xf32>, vector<8x256xf32> -> vector<8x256xf32>
    %766 = arith.addf %358, %765 : vector<8x256xf32>
    %767 = math.tanh %766 : vector<8x256xf32>
    %cst_137 = arith.constant dense<0.000000e+00> : vector<8x8xf32>
    %768 = tpu.matmul %767, %7, %cst_137 {dimension_numbers = #tpu.dot_dimension_numbers<[1], [0], [0], [1], [0, 0, 1, 1], [], []>} : vector<8x256xf32>, vector<256x8xf32>, vector<8x8xf32> -> vector<8x8xf32>
    %769 = arith.addf %768, %1 : vector<8x8xf32>
    %cst_138 = arith.constant dense<0xFF800000> : vector<8xf32>
    %770 = vector.multi_reduction <maximumf>, %769, %cst_138 [1] : vector<8x8xf32> to vector<8xf32>
    %771 = vector.shape_cast %770 : vector<8xf32> to vector<8x1xf32>
    %772 = vector.broadcast %771 : vector<8x1xf32> to vector<8x8xf32>
    %773 = arith.subf %769, %772 : vector<8x8xf32>
    %774 = math.exp %773 : vector<8x8xf32>
    %cst_139 = arith.constant dense<0.000000e+00> : vector<8xf32>
    %775 = vector.multi_reduction <add>, %774, %cst_139 [1] : vector<8x8xf32> to vector<8xf32>
    %776 = vector.shape_cast %775 : vector<8xf32> to vector<8x1xf32>
    %777 = tpu.reciprocal %776 {approx = true} : vector<8x1xf32> -> vector<8x1xf32>
    %778 = vector.broadcast %777 : vector<8x1xf32> to vector<8x8xf32>
    %779 = arith.mulf %774, %778 : vector<8x8xf32>
    %cst_140 = arith.constant 0.000000e+00 : f32
    %780 = vector.broadcast %cst_140 : f32 to vector<8x32xf32>
    %781 = vector.extract_strided_slice %779 {offsets = [0, 0], sizes = [8, 1], strides = [1, 1]} : vector<8x8xf32> to vector<8x1xf32>
    %782 = vector.broadcast %781 : vector<8x1xf32> to vector<8x32xf32>
    %783 = arith.mulf %782, %74 : vector<8x32xf32>
    %784 = arith.addf %780, %783 : vector<8x32xf32>
    %785 = vector.extract_strided_slice %779 {offsets = [0, 1], sizes = [8, 1], strides = [1, 1]} : vector<8x8xf32> to vector<8x1xf32>
    %786 = vector.broadcast %785 : vector<8x1xf32> to vector<8x32xf32>
    %787 = arith.mulf %786, %114 : vector<8x32xf32>
    %788 = arith.addf %784, %787 : vector<8x32xf32>
    %789 = vector.extract_strided_slice %779 {offsets = [0, 2], sizes = [8, 1], strides = [1, 1]} : vector<8x8xf32> to vector<8x1xf32>
    %790 = vector.broadcast %789 : vector<8x1xf32> to vector<8x32xf32>
    %791 = arith.mulf %790, %154 : vector<8x32xf32>
    %792 = arith.addf %788, %791 : vector<8x32xf32>
    %793 = vector.extract_strided_slice %779 {offsets = [0, 3], sizes = [8, 1], strides = [1, 1]} : vector<8x8xf32> to vector<8x1xf32>
    %794 = vector.broadcast %793 : vector<8x1xf32> to vector<8x32xf32>
    %795 = arith.mulf %794, %194 : vector<8x32xf32>
    %796 = arith.addf %792, %795 : vector<8x32xf32>
    %797 = vector.extract_strided_slice %779 {offsets = [0, 4], sizes = [8, 1], strides = [1, 1]} : vector<8x8xf32> to vector<8x1xf32>
    %798 = vector.broadcast %797 : vector<8x1xf32> to vector<8x32xf32>
    %799 = arith.mulf %798, %234 : vector<8x32xf32>
    %800 = arith.addf %796, %799 : vector<8x32xf32>
    %801 = vector.extract_strided_slice %779 {offsets = [0, 5], sizes = [8, 1], strides = [1, 1]} : vector<8x8xf32> to vector<8x1xf32>
    %802 = vector.broadcast %801 : vector<8x1xf32> to vector<8x32xf32>
    %803 = arith.mulf %802, %274 : vector<8x32xf32>
    %804 = arith.addf %800, %803 : vector<8x32xf32>
    %805 = vector.extract_strided_slice %779 {offsets = [0, 6], sizes = [8, 1], strides = [1, 1]} : vector<8x8xf32> to vector<8x1xf32>
    %806 = vector.broadcast %805 : vector<8x1xf32> to vector<8x32xf32>
    %807 = arith.mulf %806, %314 : vector<8x32xf32>
    %808 = arith.addf %804, %807 : vector<8x32xf32>
    %809 = vector.extract_strided_slice %779 {offsets = [0, 7], sizes = [8, 1], strides = [1, 1]} : vector<8x8xf32> to vector<8x1xf32>
    %810 = vector.broadcast %809 : vector<8x1xf32> to vector<8x32xf32>
    %811 = arith.mulf %810, %354 : vector<8x32xf32>
    %812 = arith.addf %808, %811 : vector<8x32xf32>
    %813 = vector.extract_strided_slice %36 {offsets = [40, 0], sizes = [8, 96], strides = [1, 1]} : vector<56x96xf32> to vector<8x96xf32>
    %cst_141 = arith.constant dense<0.000000e+00> : vector<8x96xf32>
    %814 = tpu.matmul %812, %8, %cst_141 {dimension_numbers = #tpu.dot_dimension_numbers<[1], [0], [0], [1], [0, 0, 1, 1], [], []>} : vector<8x32xf32>, vector<32x96xf32>, vector<8x96xf32> -> vector<8x96xf32>
    %815 = arith.addf %813, %814 : vector<8x96xf32>
    %cst_142 = arith.constant dense<0.000000e+00> : vector<8x96xf32>
    %816 = tpu.matmul %764, %9, %cst_142 {dimension_numbers = #tpu.dot_dimension_numbers<[1], [0], [0], [1], [0, 0, 1, 1], [], []>} : vector<8x32xf32>, vector<32x96xf32>, vector<8x96xf32> -> vector<8x96xf32>
    %817 = vector.broadcast %10 : vector<1x96xf32> to vector<8x96xf32>
    %818 = arith.addf %816, %817 : vector<8x96xf32>
    %819 = vector.extract_strided_slice %815 {offsets = [0, 0], sizes = [8, 32], strides = [1, 1]} : vector<8x96xf32> to vector<8x32xf32>
    %820 = vector.extract_strided_slice %818 {offsets = [0, 0], sizes = [8, 32], strides = [1, 1]} : vector<8x96xf32> to vector<8x32xf32>
    %821 = arith.addf %819, %820 : vector<8x32xf32>
    %822 = arith.negf %821 : vector<8x32xf32>
    %823 = math.exp %822 : vector<8x32xf32>
    %cst_143 = arith.constant 1.000000e+00 : f32
    %824 = vector.broadcast %cst_143 : f32 to vector<8x32xf32>
    %825 = arith.addf %824, %823 : vector<8x32xf32>
    %826 = arith.divf %824, %825 : vector<8x32xf32>
    %827 = vector.extract_strided_slice %815 {offsets = [0, 32], sizes = [8, 32], strides = [1, 1]} : vector<8x96xf32> to vector<8x32xf32>
    %828 = vector.extract_strided_slice %818 {offsets = [0, 32], sizes = [8, 32], strides = [1, 1]} : vector<8x96xf32> to vector<8x32xf32>
    %829 = arith.addf %827, %828 : vector<8x32xf32>
    %830 = arith.negf %829 : vector<8x32xf32>
    %831 = math.exp %830 : vector<8x32xf32>
    %cst_144 = arith.constant 1.000000e+00 : f32
    %832 = vector.broadcast %cst_144 : f32 to vector<8x32xf32>
    %833 = arith.addf %832, %831 : vector<8x32xf32>
    %834 = arith.divf %832, %833 : vector<8x32xf32>
    %835 = vector.extract_strided_slice %815 {offsets = [0, 64], sizes = [8, 32], strides = [1, 1]} : vector<8x96xf32> to vector<8x32xf32>
    %836 = vector.extract_strided_slice %818 {offsets = [0, 64], sizes = [8, 32], strides = [1, 1]} : vector<8x96xf32> to vector<8x32xf32>
    %837 = arith.mulf %826, %836 : vector<8x32xf32>
    %838 = arith.addf %835, %837 : vector<8x32xf32>
    %839 = math.tanh %838 : vector<8x32xf32>
    %cst_145 = arith.constant 1.000000e+00 : f32
    %840 = vector.broadcast %cst_145 : f32 to vector<8x32xf32>
    %841 = arith.subf %840, %834 : vector<8x32xf32>
    %842 = arith.mulf %841, %839 : vector<8x32xf32>
    %843 = arith.mulf %834, %764 : vector<8x32xf32>
    %844 = arith.addf %842, %843 : vector<8x32xf32>
    %cst_146 = arith.constant dense<0.000000e+00> : vector<8x256xf32>
    %845 = tpu.matmul %844, %6, %cst_146 {dimension_numbers = #tpu.dot_dimension_numbers<[1], [0], [0], [1], [0, 0, 1, 1], [], []>} : vector<8x32xf32>, vector<32x256xf32>, vector<8x256xf32> -> vector<8x256xf32>
    %846 = arith.addf %358, %845 : vector<8x256xf32>
    %847 = math.tanh %846 : vector<8x256xf32>
    %cst_147 = arith.constant dense<0.000000e+00> : vector<8x8xf32>
    %848 = tpu.matmul %847, %7, %cst_147 {dimension_numbers = #tpu.dot_dimension_numbers<[1], [0], [0], [1], [0, 0, 1, 1], [], []>} : vector<8x256xf32>, vector<256x8xf32>, vector<8x8xf32> -> vector<8x8xf32>
    %849 = arith.addf %848, %1 : vector<8x8xf32>
    %cst_148 = arith.constant dense<0xFF800000> : vector<8xf32>
    %850 = vector.multi_reduction <maximumf>, %849, %cst_148 [1] : vector<8x8xf32> to vector<8xf32>
    %851 = vector.shape_cast %850 : vector<8xf32> to vector<8x1xf32>
    %852 = vector.broadcast %851 : vector<8x1xf32> to vector<8x8xf32>
    %853 = arith.subf %849, %852 : vector<8x8xf32>
    %854 = math.exp %853 : vector<8x8xf32>
    %cst_149 = arith.constant dense<0.000000e+00> : vector<8xf32>
    %855 = vector.multi_reduction <add>, %854, %cst_149 [1] : vector<8x8xf32> to vector<8xf32>
    %856 = vector.shape_cast %855 : vector<8xf32> to vector<8x1xf32>
    %857 = tpu.reciprocal %856 {approx = true} : vector<8x1xf32> -> vector<8x1xf32>
    %858 = vector.broadcast %857 : vector<8x1xf32> to vector<8x8xf32>
    %859 = arith.mulf %854, %858 : vector<8x8xf32>
    %cst_150 = arith.constant 0.000000e+00 : f32
    %860 = vector.broadcast %cst_150 : f32 to vector<8x32xf32>
    %861 = vector.extract_strided_slice %859 {offsets = [0, 0], sizes = [8, 1], strides = [1, 1]} : vector<8x8xf32> to vector<8x1xf32>
    %862 = vector.broadcast %861 : vector<8x1xf32> to vector<8x32xf32>
    %863 = arith.mulf %862, %74 : vector<8x32xf32>
    %864 = arith.addf %860, %863 : vector<8x32xf32>
    %865 = vector.extract_strided_slice %859 {offsets = [0, 1], sizes = [8, 1], strides = [1, 1]} : vector<8x8xf32> to vector<8x1xf32>
    %866 = vector.broadcast %865 : vector<8x1xf32> to vector<8x32xf32>
    %867 = arith.mulf %866, %114 : vector<8x32xf32>
    %868 = arith.addf %864, %867 : vector<8x32xf32>
    %869 = vector.extract_strided_slice %859 {offsets = [0, 2], sizes = [8, 1], strides = [1, 1]} : vector<8x8xf32> to vector<8x1xf32>
    %870 = vector.broadcast %869 : vector<8x1xf32> to vector<8x32xf32>
    %871 = arith.mulf %870, %154 : vector<8x32xf32>
    %872 = arith.addf %868, %871 : vector<8x32xf32>
    %873 = vector.extract_strided_slice %859 {offsets = [0, 3], sizes = [8, 1], strides = [1, 1]} : vector<8x8xf32> to vector<8x1xf32>
    %874 = vector.broadcast %873 : vector<8x1xf32> to vector<8x32xf32>
    %875 = arith.mulf %874, %194 : vector<8x32xf32>
    %876 = arith.addf %872, %875 : vector<8x32xf32>
    %877 = vector.extract_strided_slice %859 {offsets = [0, 4], sizes = [8, 1], strides = [1, 1]} : vector<8x8xf32> to vector<8x1xf32>
    %878 = vector.broadcast %877 : vector<8x1xf32> to vector<8x32xf32>
    %879 = arith.mulf %878, %234 : vector<8x32xf32>
    %880 = arith.addf %876, %879 : vector<8x32xf32>
    %881 = vector.extract_strided_slice %859 {offsets = [0, 5], sizes = [8, 1], strides = [1, 1]} : vector<8x8xf32> to vector<8x1xf32>
    %882 = vector.broadcast %881 : vector<8x1xf32> to vector<8x32xf32>
    %883 = arith.mulf %882, %274 : vector<8x32xf32>
    %884 = arith.addf %880, %883 : vector<8x32xf32>
    %885 = vector.extract_strided_slice %859 {offsets = [0, 6], sizes = [8, 1], strides = [1, 1]} : vector<8x8xf32> to vector<8x1xf32>
    %886 = vector.broadcast %885 : vector<8x1xf32> to vector<8x32xf32>
    %887 = arith.mulf %886, %314 : vector<8x32xf32>
    %888 = arith.addf %884, %887 : vector<8x32xf32>
    %889 = vector.extract_strided_slice %859 {offsets = [0, 7], sizes = [8, 1], strides = [1, 1]} : vector<8x8xf32> to vector<8x1xf32>
    %890 = vector.broadcast %889 : vector<8x1xf32> to vector<8x32xf32>
    %891 = arith.mulf %890, %354 : vector<8x32xf32>
    %892 = arith.addf %888, %891 : vector<8x32xf32>
    %893 = vector.extract_strided_slice %36 {offsets = [48, 0], sizes = [8, 96], strides = [1, 1]} : vector<56x96xf32> to vector<8x96xf32>
    %cst_151 = arith.constant dense<0.000000e+00> : vector<8x96xf32>
    %894 = tpu.matmul %892, %8, %cst_151 {dimension_numbers = #tpu.dot_dimension_numbers<[1], [0], [0], [1], [0, 0, 1, 1], [], []>} : vector<8x32xf32>, vector<32x96xf32>, vector<8x96xf32> -> vector<8x96xf32>
    %895 = arith.addf %893, %894 : vector<8x96xf32>
    %cst_152 = arith.constant dense<0.000000e+00> : vector<8x96xf32>
    %896 = tpu.matmul %844, %9, %cst_152 {dimension_numbers = #tpu.dot_dimension_numbers<[1], [0], [0], [1], [0, 0, 1, 1], [], []>} : vector<8x32xf32>, vector<32x96xf32>, vector<8x96xf32> -> vector<8x96xf32>
    %897 = vector.broadcast %10 : vector<1x96xf32> to vector<8x96xf32>
    %898 = arith.addf %896, %897 : vector<8x96xf32>
    %899 = vector.extract_strided_slice %895 {offsets = [0, 0], sizes = [8, 32], strides = [1, 1]} : vector<8x96xf32> to vector<8x32xf32>
    %900 = vector.extract_strided_slice %898 {offsets = [0, 0], sizes = [8, 32], strides = [1, 1]} : vector<8x96xf32> to vector<8x32xf32>
    %901 = arith.addf %899, %900 : vector<8x32xf32>
    %902 = arith.negf %901 : vector<8x32xf32>
    %903 = math.exp %902 : vector<8x32xf32>
    %cst_153 = arith.constant 1.000000e+00 : f32
    %904 = vector.broadcast %cst_153 : f32 to vector<8x32xf32>
    %905 = arith.addf %904, %903 : vector<8x32xf32>
    %906 = arith.divf %904, %905 : vector<8x32xf32>
    %907 = vector.extract_strided_slice %895 {offsets = [0, 32], sizes = [8, 32], strides = [1, 1]} : vector<8x96xf32> to vector<8x32xf32>
    %908 = vector.extract_strided_slice %898 {offsets = [0, 32], sizes = [8, 32], strides = [1, 1]} : vector<8x96xf32> to vector<8x32xf32>
    %909 = arith.addf %907, %908 : vector<8x32xf32>
    %910 = arith.negf %909 : vector<8x32xf32>
    %911 = math.exp %910 : vector<8x32xf32>
    %cst_154 = arith.constant 1.000000e+00 : f32
    %912 = vector.broadcast %cst_154 : f32 to vector<8x32xf32>
    %913 = arith.addf %912, %911 : vector<8x32xf32>
    %914 = arith.divf %912, %913 : vector<8x32xf32>
    %915 = vector.extract_strided_slice %895 {offsets = [0, 64], sizes = [8, 32], strides = [1, 1]} : vector<8x96xf32> to vector<8x32xf32>
    %916 = vector.extract_strided_slice %898 {offsets = [0, 64], sizes = [8, 32], strides = [1, 1]} : vector<8x96xf32> to vector<8x32xf32>
    %917 = arith.mulf %906, %916 : vector<8x32xf32>
    %918 = arith.addf %915, %917 : vector<8x32xf32>
    %919 = math.tanh %918 : vector<8x32xf32>
    %cst_155 = arith.constant 1.000000e+00 : f32
    %920 = vector.broadcast %cst_155 : f32 to vector<8x32xf32>
    %921 = arith.subf %920, %914 : vector<8x32xf32>
    %922 = arith.mulf %921, %919 : vector<8x32xf32>
    %923 = arith.mulf %914, %844 : vector<8x32xf32>
    %924 = arith.addf %922, %923 : vector<8x32xf32>
    %925 = tpu.concatenate %444, %524, %604, %684, %764, %844, %924 in 0 : vector<8x32xf32>, vector<8x32xf32>, vector<8x32xf32>, vector<8x32xf32>, vector<8x32xf32>, vector<8x32xf32>, vector<8x32xf32> -> vector<56x32xf32>
    %926 = tpu.concatenate %412, %492, %572, %652, %732, %812, %892 in 0 : vector<8x32xf32>, vector<8x32xf32>, vector<8x32xf32>, vector<8x32xf32>, vector<8x32xf32>, vector<8x32xf32>, vector<8x32xf32> -> vector<56x32xf32>
    %c0_156 = arith.constant 0 : index
    %c0_157 = arith.constant 0 : index
    %927 = vector.load %arg21[%c0_156, %c0_157] : memref<32x128xf32, #tpu.memory_space<vmem>>, vector<32x128xf32>
    %cst_158 = arith.constant dense<0.000000e+00> : vector<56x128xf32>
    %928 = tpu.matmul %925, %927, %cst_158 {dimension_numbers = #tpu.dot_dimension_numbers<[1], [0], [0], [1], [0, 0, 1, 1], [], []>} : vector<56x32xf32>, vector<32x128xf32>, vector<56x128xf32> -> vector<56x128xf32>
    %c0_159 = arith.constant 0 : index
    %c0_160 = arith.constant 0 : index
    %929 = vector.load %arg22[%c0_159, %c0_160] : memref<32x128xf32, #tpu.memory_space<vmem>>, vector<32x128xf32>
    %cst_161 = arith.constant dense<0.000000e+00> : vector<56x128xf32>
    %930 = tpu.matmul %926, %929, %cst_161 {dimension_numbers = #tpu.dot_dimension_numbers<[1], [0], [0], [1], [0, 0, 1, 1], [], []>} : vector<56x32xf32>, vector<32x128xf32>, vector<56x128xf32> -> vector<56x128xf32>
    %931 = arith.addf %928, %930 : vector<56x128xf32>
    %c0_162 = arith.constant 0 : index
    %c0_163 = arith.constant 0 : index
    %932 = vector.load %arg23[%c0_162, %c0_163] : memref<16x128xf32, #tpu.memory_space<vmem>>, vector<16x128xf32>
    %cst_164 = arith.constant dense<0.000000e+00> : vector<56x128xf32>
    %933 = tpu.matmul %31, %932, %cst_164 {dimension_numbers = #tpu.dot_dimension_numbers<[1], [0], [0], [1], [0, 0, 1, 1], [], []>} : vector<56x16xf32>, vector<16x128xf32>, vector<56x128xf32> -> vector<56x128xf32>
    %934 = arith.addf %931, %933 : vector<56x128xf32>
    %c0_165 = arith.constant 0 : index
    %c0_166 = arith.constant 0 : index
    %935 = vector.load %arg24[%c0_165, %c0_166] : memref<1x128xf32, #tpu.memory_space<vmem>>, vector<1x128xf32>
    %936 = vector.broadcast %935 : vector<1x128xf32> to vector<56x128xf32>
    %937 = arith.addf %934, %936 : vector<56x128xf32>
    %cst_167 = arith.constant dense<0xFF800000> : vector<56xf32>
    %938 = vector.multi_reduction <maximumf>, %937, %cst_167 [1] : vector<56x128xf32> to vector<56xf32>
    %939 = vector.shape_cast %938 : vector<56xf32> to vector<56x1xf32>
    %940 = vector.broadcast %939 : vector<56x1xf32> to vector<56x128xf32>
    %941 = arith.subf %937, %940 : vector<56x128xf32>
    %942 = math.exp %941 : vector<56x128xf32>
    %cst_168 = arith.constant dense<0.000000e+00> : vector<56xf32>
    %943 = vector.multi_reduction <add>, %942, %cst_168 [1] : vector<56x128xf32> to vector<56xf32>
    %944 = vector.shape_cast %943 : vector<56xf32> to vector<56x1xf32>
    %945 = math.log %944 : vector<56x1xf32>
    %946 = arith.addf %939, %945 : vector<56x1xf32>
    %947 = vector.broadcast %946 : vector<56x1xf32> to vector<56x128xf32>
    %948 = arith.subf %937, %947 : vector<56x128xf32>
    %c0_169 = arith.constant 0 : index
    %c0_170 = arith.constant 0 : index
    %949 = vector.load %arg25[%c0_169, %c0_170] : memref<56x128xf32, #tpu.memory_space<vmem>>, vector<56x128xf32>
    tpu.vector_store %arg25[%c0_169, %c0_170], %948 {strides = array<i32>} : memref<56x128xf32, #tpu.memory_space<vmem>>, vector<56x128xf32>,
    %950 = tpu.iota {dimensions = array<i32: 1>} : vector<56x128xi32>
    %951 = arith.sitofp %950 : vector<56x128xi32> to vector<56x128xf32>
    %952 = vector.broadcast %939 : vector<56x1xf32> to vector<56x128xf32>
    %953 = arith.cmpf oge, %937, %952 : vector<56x128xf32>
    %cst_171 = arith.constant 1.280000e+02 : f32
    %954 = vector.broadcast %cst_171 : f32 to vector<56x128xf32>
    %955 = arith.select %953, %951, %954 : vector<56x128xi1>, vector<56x128xf32>
    %cst_172 = arith.constant dense<0x7F800000> : vector<56xf32>
    %956 = vector.multi_reduction <minimumf>, %955, %cst_172 [1] : vector<56x128xf32> to vector<56xf32>
    %957 = vector.shape_cast %956 : vector<56xf32> to vector<56x1xf32>
    %958 = arith.fptosi %957 : vector<56x1xf32> to vector<56x1xi32>
    %c0_173 = arith.constant 0 : index
    %c0_174 = arith.constant 0 : index
    %959 = vector.load %arg26[%c0_173, %c0_174] : memref<56x1xi32, #tpu.memory_space<vmem>>, vector<56x1xi32>
    tpu.vector_store %arg26[%c0_173, %c0_174], %958 {strides = array<i32>} : memref<56x1xi32, #tpu.memory_space<vmem>>, vector<56x1xi32>,
    return
  }
}

</mosaic_0001>

<bundles_post_ra>
// kernel: tile.9
= control target key start
LH: loop header
LB: loop body
LE: loop exit
PB: predicated region body
PF: predicated region fallthrough
CT: control target
= control target key end

     0   :  { %vm92_vm0 = vcmask 1047556   ;;  %s459_s14 = smov 96   ;;  %s460_s22 = smov 64   ;;  %vm3_vm1 = vcmask 261120   ;;  %vm96_vm2 = vcmask 1048320   ;;  %vm183_vm3 = vcmask 785920   ;;  %s896_s0 = inlined_call_operand.vmem [shape: f32[32,8,32], index: 0, kind: input, shape index: {}]   ;;  %s897_s1 = inlined_call_operand.vmem [shape: f32[32,256], index: 1, kind: output, shape index: {}]  }
   0x1   :  { %v392_v0 = vld [vmem:[%s896_s0 + $0x7] ss:$8 sm:$0xf]   ;;  %v387_v3 = vld [vmem:[%s896_s0 + $0x3] ss:$8 sm:$0xf]  }
   0x2   :  { %v393_v1 = vld [vmem:[%s896_s0 + $0x7] ss:$8 sm:$0xf0]   ;;  %v388_v4 = vld [vmem:[%s896_s0 + $0x3] ss:$8 sm:$0xf0]  }
   0x3   :  { %v114_v2 = vsel %vm92_vm0, %v393_v1, %v392_v0  ;;  %v93_v5 = vsel %vm92_vm0, %v388_v4, %v387_v3  ;;  %v395_v6 = vld [vmem:[%s896_s0 + $0x87] ss:$8 sm:$0xf]   ;;  %v389_v8 = vld [vmem:[%s896_s0 + $0x83] ss:$8 sm:$0xf]  }
   0x4   :  { %115 = vrot.lane.b32.xlu1 %v114_v2, %s459_s14  ;;  %94 = vrot.lane.b32.xlu0 %v93_v5, %s459_s14  ;;  %v396_v7 = vld [vmem:[%s896_s0 + $0x87] ss:$8 sm:$0xf0]   ;;  %v390_v9 = vld [vmem:[%s896_s0 + $0x83] ss:$8 sm:$0xf0]  }
   0x5   :  { %v398_v10 = vld [vmem:[%s896_s0 + $0x43] ss:$8 sm:$0xf]   ;;  %v125_v12 = vsel %vm92_vm0, %v396_v7, %v395_v6  ;;  %v103_v14 = vsel %vm92_vm0, %v390_v9, %v389_v8  ;;  %v407_v17 = vld [vmem:[%s896_s0 + $0xc7] ss:$8 sm:$0xf]  }
   0x6   :  { %v399_v11 = vld [vmem:[%s896_s0 + $0x43] ss:$8 sm:$0xf0]   ;;  %v408_v18 = vld [vmem:[%s896_s0 + $0xc7] ss:$8 sm:$0xf0]  }
   0x7   :  { %v136_v13 = vsel %vm92_vm0, %v399_v11, %v398_v10  ;;  %v401_v15 = vld [vmem:[%s896_s0 + $0xc3] ss:$8 sm:$0xf]   ;;  %v404_v19 = vld [vmem:[%s896_s0 + $0x47] ss:$8 sm:$0xf]   ;;  %v169_v22 = vsel %vm92_vm0, %v408_v18, %v407_v17 }
   0x8   :  { %137 = vrot.lane.b32.xlu2 %v136_v13, %s459_s14  ;;  %v402_v16 = vld [vmem:[%s896_s0 + $0xc3] ss:$8 sm:$0xf0]   ;;  %v405_v20 = vld [vmem:[%s896_s0 + $0x47] ss:$8 sm:$0xf0]  }
   0x9   :  { %v147_v21 = vsel %vm92_vm0, %v402_v16, %v401_v15  ;;  %v158_v23 = vsel %vm92_vm0, %v405_v20, %v404_v19  ;;  %v410_v24 = vld [vmem:[%s896_s0 + $0x2] ss:$8 sm:$0xf]   ;;  %v415_v26 = vld [vmem:[%s896_s0 + $0x6] ss:$8 sm:$0xf]  }
   0xa   :  { %v411_v25 = vld [vmem:[%s896_s0 + $0x2] ss:$8 sm:$0xf0]   ;;  %v416_v27 = vld [vmem:[%s896_s0 + $0x6] ss:$8 sm:$0xf0]  }
   0xb   :  { %v412_v28 = vld [vmem:[%s896_s0 + $0x82] ss:$8 sm:$0xf]   ;;  %v180_v30 = vsel %vm92_vm0, %v411_v25, %v410_v24  ;;  %v201_v31 = vsel %vm92_vm0, %v416_v27, %v415_v26  ;;  %v418_v33 = vld [vmem:[%s896_s0 + $0x86] ss:$8 sm:$0xf]  }
   0xc   :  { %126 = vrot.lane.b32.xlu1 %v125_v12, %s459_s14  ;;  %104 = vrot.lane.b32.xlu0 %v103_v14, %s459_s14  ;;  %v413_v29 = vld [vmem:[%s896_s0 + $0x82] ss:$8 sm:$0xf0]   ;;  %v419_v34 = vld [vmem:[%s896_s0 + $0x86] ss:$8 sm:$0xf0]  }
   0xd   :  { %v190_v32 = vsel %vm92_vm0, %v413_v29, %v412_v28  ;;  %v424_v35 = vld [vmem:[%s896_s0 + $0xc2] ss:$8 sm:$0xf]   ;;  %v212_v39 = vsel %vm92_vm0, %v419_v34, %v418_v33  ;;  %v427_v42 = vld [vmem:[%s896_s0 + $0x46] ss:$8 sm:$0xf]  }
   0xe   :  { %v425_v36 = vld [vmem:[%s896_s0 + $0xc2] ss:$8 sm:$0xf0]   ;;  %v428_v43 = vld [vmem:[%s896_s0 + $0x46] ss:$8 sm:$0xf0]  }
   0xf   :  { %v421_v37 = vld [vmem:[%s896_s0 + $0x42] ss:$8 sm:$0xf]   ;;  %v234_v40 = vsel %vm92_vm0, %v425_v36, %v424_v35  ;;  %v433_v44 = vld [vmem:[%s896_s0 + $0x1] ss:$8 sm:$0xf]   ;;  %v245_v48 = vsel %vm92_vm0, %v428_v43, %v427_v42 }
  0x10   :  { %148 = vrot.lane.b32.xlu2 %v147_v21, %s459_s14  ;;  %v422_v38 = vld [vmem:[%s896_s0 + $0x42] ss:$8 sm:$0xf0]   ;;  %v434_v45 = vld [vmem:[%s896_s0 + $0x1] ss:$8 sm:$0xf0]  }
  0x11   :  { %v223_v41 = vsel %vm92_vm0, %v422_v38, %v421_v37  ;;  %v430_v46 = vld [vmem:[%s896_s0 + $0xc6] ss:$8 sm:$0xf]   ;;  %v267_v49 = vsel %vm92_vm0, %v434_v45, %v433_v44  ;;  %s461_s18 = smov 32   ;;  %v2_v8 = vld [vmem:[%s896_s0] ss:$4 sm:$0xff]  }
  0x12   :  { %v431_v47 = vld [vmem:[%s896_s0 + $0xc6] ss:$8 sm:$0xf0]   ;;  %v435_v51 = vld [vmem:[%s896_s0 + $0x81] ss:$8 sm:$0xf]  }
  0x13   :  { %v256_v50 = vsel %vm92_vm0, %v431_v47, %v430_v46  ;;  %v436_v52 = vld [vmem:[%s896_s0 + $0x81] ss:$8 sm:$0xf0]   ;;  %v441_v53 = vld [vmem:[%s896_s0 + $0x85] ss:$8 sm:$0xf]  }
  0x14   :  { %170 = vrot.lane.b32.xlu1 %v169_v22, %s459_s14  ;;  %159 = vrot.lane.b32.xlu0 %v158_v23, %s459_s14  ;;  %v442_v54 = vld [vmem:[%s896_s0 + $0x85] ss:$8 sm:$0xf0]   ;;  %v277_v57 = vsel %vm92_vm0, %v436_v52, %v435_v51  ;;  %v444_v60 = vld [vmem:[%s896_s0 + $0x41] ss:$8 sm:$0xf]  }
  0x15   :  { %v438_v55 = vld [vmem:[%s896_s0 + $0x5] ss:$8 sm:$0xf]   ;;  %v299_v58 = vsel %vm92_vm0, %v442_v54, %v441_v53  ;;  %v445_v61 = vld [vmem:[%s896_s0 + $0x41] ss:$8 sm:$0xf0]  }
  0x16   :  { %v439_v56 = vld [vmem:[%s896_s0 + $0x5] ss:$8 sm:$0xf0]   ;;  %v447_v0 = vld [vmem:[%s896_s0 + $0xc1] ss:$8 sm:$0xf]   ;;  %v310_v2 = vsel %vm92_vm0, %v445_v61, %v444_v60 }
  0x17   :  { %v288_v59 = vsel %vm92_vm0, %v439_v56, %v438_v55  ;;  %v450_v62 = vld [vmem:[%s896_s0 + $0x45] ss:$8 sm:$0xf]   ;;  %v448_v1 = vld [vmem:[%s896_s0 + $0xc1] ss:$8 sm:$0xf0]  }
  0x18   :  { %181 = vrot.lane.b32.xlu2 %v180_v30, %s460_s22  ;;  %v451_v63 = vld [vmem:[%s896_s0 + $0x45] ss:$8 sm:$0xf0]   ;;  %v321_v4 = vsel %vm92_vm0, %v448_v1, %v447_v0  ;;  %4 = vst.msk [vmem:[%s897_s1] ss:$8 sm:$0x3] %vm3_vm1, %v2_v8  }
  0x19   :  { %v332_v3 = vsel %vm92_vm0, %v451_v63, %v450_v62  ;;  %v453_v5 = vld [vmem:[%s896_s0 + $0xc5] ss:$8 sm:$0xf]   ;;  %349 = vst.msk [vmem:[%s897_s1 - $0xf] ss:$8 sm:$0xc] %vm3_vm1, %v2_v8  }
  0x1a   :  { %v454_v6 = vld [vmem:[%s896_s0 + $0xc5] ss:$8 sm:$0xf0]   ;;  %v352_v9 = vld [vmem:[%s896_s0 + $0x20] ss:$4 sm:$0xff]   ;;  %vm270_vm4 = vcmask 523520  }
  0x1b   :  { %v343_v7 = vsel %vm92_vm0, %v454_v6, %v453_v5  ;;  %350 = vst.msk [vmem:[%s897_s1 - $0x1e] ss:$8 sm:$0x30] %vm3_vm1, %v2_v8   ;;  %v367_v10 = vld [vmem:[%s896_s0 + $0x80] ss:$4 sm:$0xff]  }
  0x1c   :  { %202 = vrot.lane.b32.xlu1 %v201_v31, %s460_s22  ;;  %191 = vrot.lane.b32.xlu0 %v190_v32, %s460_s22  ;;  %351 = vst.msk [vmem:[%s897_s1 - $0x2d] ss:$8 sm:$0xc0] %vm3_vm1, %v2_v8   ;;  %v372_v11 = vld [vmem:[%s896_s0 + $0xa0] ss:$4 sm:$0xff]  }
  0x1d   :  { %353 = vst.msk [vmem:[%s897_s1 + $0x4] ss:$8 sm:$0x3] %vm3_vm1, %v352_v9   ;;  %v357_v13 = vld [vmem:[%s896_s0 + $0x40] ss:$4 sm:$0xff]  }
  0x1e   :  { %354 = vst.msk [vmem:[%s897_s1 - $0xb] ss:$8 sm:$0xc] %vm3_vm1, %v352_v9   ;;  %v362_v14 = vld [vmem:[%s896_s0 + $0x60] ss:$4 sm:$0xff]  }
  0x1f   :  { %355 = vst.msk [vmem:[%s897_s1 - $0x1a] ss:$8 sm:$0x30] %vm3_vm1, %v352_v9   ;;  %v377_v16 = vld [vmem:[%s896_s0 + $0xc0] ss:$4 sm:$0xff]  }
  0x20   :  { %213 = vrot.lane.b32.xlu2 %v212_v39, %s460_s22  ;;  %356 = vst.msk [vmem:[%s897_s1 - $0x29] ss:$8 sm:$0xc0] %vm3_vm1, %v352_v9   ;;  %v382_v17 = vld [vmem:[%s896_s0 + $0xe0] ss:$4 sm:$0xff]  }
  0x21   :  { %368 = vst.msk [vmem:[%s897_s1 + $0x20] ss:$8 sm:$0x3] %vm3_vm1, %v367_v10  }
  0x22   :  { %369 = vst.msk [vmem:[%s897_s1 + $0x11] ss:$8 sm:$0xc] %vm3_vm1, %v367_v10  }
  0x23   :  { %370 = vst.msk [vmem:[%s897_s1 + $0x2] ss:$8 sm:$0x30] %vm3_vm1, %v367_v10  }
  0x24   :  { %235 = vrot.lane.b32.xlu1 %v234_v40, %s460_s22  ;;  %224 = vrot.lane.b32.xlu0 %v223_v41, %s460_s22  ;;  %371 = vst.msk [vmem:[%s897_s1 - $0xd] ss:$8 sm:$0xc0] %vm3_vm1, %v367_v10  }
  0x25   :  { %373 = vst.msk [vmem:[%s897_s1 + $0x24] ss:$8 sm:$0x3] %vm3_vm1, %v372_v11  }
  0x26   :  { %374 = vst.msk [vmem:[%s897_s1 + $0x15] ss:$8 sm:$0xc] %vm3_vm1, %v372_v11  }
  0x27   :  { %375 = vst.msk [vmem:[%s897_s1 + $0x6] ss:$8 sm:$0x30] %vm3_vm1, %v372_v11  }
  0x28   :  { %246 = vrot.lane.b32.xlu2 %v245_v48, %s460_s22  ;;  %376 = vst.msk [vmem:[%s897_s1 - $0x9] ss:$8 sm:$0xc0] %vm3_vm1, %v372_v11  }
  0x29   :  { %358 = vst.msk [vmem:[%s897_s1 + $0x10] ss:$8 sm:$0x3] %vm3_vm1, %v357_v13  }
  0x2a   :  { %359 = vst.msk [vmem:[%s897_s1 + $0x1] ss:$8 sm:$0xc] %vm3_vm1, %v357_v13  }
  0x2b   :  { %360 = vst.msk [vmem:[%s897_s1 - $0xe] ss:$8 sm:$0x30] %vm3_vm1, %v357_v13  }
  0x2c   :  { %268 = vrot.lane.b32.xlu1 %v267_v49, %s461_s18  ;;  %257 = vrot.lane.b32.xlu0 %v256_v50, %s460_s22  ;;  %361 = vst.msk [vmem:[%s897_s1 - $0x1d] ss:$8 sm:$0xc0] %vm3_vm1, %v357_v13  }
  0x2d   :  { %363 = vst.msk [vmem:[%s897_s1 + $0x14] ss:$8 sm:$0x3] %vm3_vm1, %v362_v14  }
  0x2e   :  { %364 = vst.msk [vmem:[%s897_s1 + $0x5] ss:$8 sm:$0xc] %vm3_vm1, %v362_v14  }
  0x2f   :  { %365 = vst.msk [vmem:[%s897_s1 - $0xa] ss:$8 sm:$0x30] %vm3_vm1, %v362_v14  }
  0x30   :  { %278 = vrot.lane.b32.xlu2 %v277_v57, %s461_s18  ;;  %366 = vst.msk [vmem:[%s897_s1 - $0x19] ss:$8 sm:$0xc0] %vm3_vm1, %v362_v14  }
  0x31   :  { %378 = vst.msk [vmem:[%s897_s1 + $0x30] ss:$8 sm:$0x3] %vm3_vm1, %v377_v16  }
  0x32   :  { %379 = vst.msk [vmem:[%s897_s1 + $0x21] ss:$8 sm:$0xc] %vm3_vm1, %v377_v16  }
  0x33   :  { %380 = vst.msk [vmem:[%s897_s1 + $0x12] ss:$8 sm:$0x30] %vm3_vm1, %v377_v16  }
  0x34   :  { %300 = vrot.lane.b32.xlu1 %v299_v58, %s461_s18  ;;  %289 = vrot.lane.b32.xlu0 %v288_v59, %s461_s18  ;;  %381 = vst.msk [vmem:[%s897_s1 + $0x3] ss:$8 sm:$0xc0] %vm3_vm1, %v377_v16  }
  0x35   :  { %383 = vst.msk [vmem:[%s897_s1 + $0x34] ss:$8 sm:$0x3] %vm3_vm1, %v382_v17  }
  0x36   :  { %384 = vst.msk [vmem:[%s897_s1 + $0x25] ss:$8 sm:$0xc] %vm3_vm1, %v382_v17  }
  0x37   :  { %385 = vst.msk [vmem:[%s897_s1 + $0x16] ss:$8 sm:$0x30] %vm3_vm1, %v382_v17  }
  0x38   :  { %311 = vrot.lane.b32.xlu2 %v310_v2, %s461_s18  ;;  %386 = vst.msk [vmem:[%s897_s1 + $0x7] ss:$8 sm:$0xc0] %vm3_vm1, %v382_v17  }
  0x3c   :  { %333 = vrot.lane.b32.xlu1 %v332_v3, %s461_s18  ;;  %322 = vrot.lane.b32.xlu0 %v321_v4, %s461_s18 }
  0x40   :  { %344 = vrot.lane.b32.xlu2 %v343_v7, %s461_s18 }
  0x62   :  { %v138_v12 = vpop.permute.xlu2 %137  }
  0x63   :  { %400 = vst.msk [vmem:[%s897_s1 + $0x10] sm:$0xff] %vm96_vm2, %v138_v12  }
  0x6a   :  { %v149_v15 = vpop.permute.xlu2 %148  }
  0x6b   :  { %403 = vst.msk [vmem:[%s897_s1 + $0x30] sm:$0xff] %vm96_vm2, %v149_v15  }
  0x72   :  { %v182_v18 = vpop.permute.xlu2 %181  }
  0x76   :  { %v116_v19 = vpop.permute.xlu1 %115   ;;  %v95_v20 = vpop.permute.xlu0 %94  }
  0x77   :  { %394 = vst.msk [vmem:[%s897_s1 + $0x8] sm:$0xff] %vm96_vm2, %v116_v19  }
  0x78   :  { %97 = vst.msk [vmem:[%s897_s1] sm:$0xff] %vm96_vm2, %v95_v20  }
  0x79   :  { %184 = vst.msk [vmem:[%s897_s1] sm:$0xff] %vm183_vm3, %v182_v18  }
  0x7a   :  { %v214_v21 = vpop.permute.xlu2 %213  }
  0x7e   :  { %v127_v22 = vpop.permute.xlu1 %126   ;;  %v105_v23 = vpop.permute.xlu0 %104  }
  0x7f   :  { %397 = vst.msk [vmem:[%s897_s1 + $0x28] sm:$0xff] %vm96_vm2, %v127_v22  }
  0x80   :  { %420 = vst.msk [vmem:[%s897_s1 + $0x28] sm:$0xff] %vm183_vm3, %v214_v21  }
  0x81   :  { %391 = vst.msk [vmem:[%s897_s1 + $0x20] sm:$0xff] %vm96_vm2, %v105_v23  }
  0x82   :  { %v247_v24 = vpop.permute.xlu2 %246  }
  0x86   :  { %v171_v25 = vpop.permute.xlu1 %170   ;;  %v160_v26 = vpop.permute.xlu0 %159  }
  0x87   :  { %409 = vst.msk [vmem:[%s897_s1 + $0x38] sm:$0xff] %vm96_vm2, %v171_v25  }
  0x88   :  { %406 = vst.msk [vmem:[%s897_s1 + $0x18] sm:$0xff] %vm96_vm2, %v160_v26  }
  0x89   :  { %429 = vst.msk [vmem:[%s897_s1 + $0x18] sm:$0xff] %vm183_vm3, %v247_v24  }
  0x8a   :  { %v279_v27 = vpop.permute.xlu2 %278  }
  0x8e   :  { %v203_v28 = vpop.permute.xlu1 %202   ;;  %v192_v29 = vpop.permute.xlu0 %191  }
  0x8f   :  { %417 = vst.msk [vmem:[%s897_s1 + $0x8] sm:$0xff] %vm183_vm3, %v203_v28  }
  0x90   :  { %414 = vst.msk [vmem:[%s897_s1 + $0x20] sm:$0xff] %vm183_vm3, %v192_v29  }
  0x91   :  { %437 = vst.msk [vmem:[%s897_s1 + $0x20] sm:$0xff] %vm270_vm4, %v279_v27  }
  0x92   :  { %v312_v30 = vpop.permute.xlu2 %311  }
  0x96   :  { %v236_v31 = vpop.permute.xlu1 %235   ;;  %v225_v32 = vpop.permute.xlu0 %224  }
  0x97   :  { %426 = vst.msk [vmem:[%s897_s1 + $0x30] sm:$0xff] %vm183_vm3, %v236_v31  }
  0x98   :  { %423 = vst.msk [vmem:[%s897_s1 + $0x10] sm:$0xff] %vm183_vm3, %v225_v32  }
  0x99   :  { %446 = vst.msk [vmem:[%s897_s1 + $0x10] sm:$0xff] %vm270_vm4, %v312_v30  }
  0x9a   :  { %v345_v33 = vpop.permute.xlu2 %344  }
  0x9e   :  { %v269_v34 = vpop.permute.xlu1 %268   ;;  %v258_v35 = vpop.permute.xlu0 %257  }
  0x9f   :  { %271 = vst.msk [vmem:[%s897_s1] sm:$0xff] %vm270_vm4, %v269_v34  }
  0xa0   :  { %432 = vst.msk [vmem:[%s897_s1 + $0x38] sm:$0xff] %vm183_vm3, %v258_v35  }
  0xa1   :  { %455 = vst.msk [vmem:[%s897_s1 + $0x38] sm:$0xff] %vm270_vm4, %v345_v33  }
  0xa6   :  { %v301_v36 = vpop.permute.xlu1 %300   ;;  %v290_v37 = vpop.permute.xlu0 %289  }
  0xa7   :  { %443 = vst.msk [vmem:[%s897_s1 + $0x28] sm:$0xff] %vm270_vm4, %v301_v36  }
  0xa8   :  { %440 = vst.msk [vmem:[%s897_s1 + $0x8] sm:$0xff] %vm270_vm4, %v290_v37  }
  0xae   :  { %v334_v38 = vpop.permute.xlu1 %333   ;;  %v323_v39 = vpop.permute.xlu0 %322  }
  0xaf   :  { %452 = vst.msk [vmem:[%s897_s1 + $0x18] sm:$0xff] %vm270_vm4, %v334_v38  }
  0xb0   :  { %449 = vst.msk [vmem:[%s897_s1 + $0x30] sm:$0xff] %vm270_vm4, %v323_v39  }

// kernel: seq2seq_forward.1
= control target key start
LH: loop header
LB: loop body
LE: loop exit
PB: predicated region body
PF: predicated region fallthrough
CT: control target
= control target key end

     0   :  { %v5895_v0 = vmov 0   ;;  %v167_v44 = vlaneseq  ;;  %v3743_v48 = vmov 1.0   ;;  %vm264_vm10 = vcmask 130048   ;;  %s5851_s1 = inlined_call_operand.vmem [shape: s32[56,1], index: 1, kind: input, shape index: {}]   ;;  %s5852_s5 = inlined_call_operand.vmem [shape: f32[128,16], index: 5, kind: input, shape index: {}]   ;;  %s5853_s4 = inlined_call_operand.vmem [shape: f32[128,16], index: 4, kind: input, shape index: {}]   ;;  %s5854_s0 = inlined_call_operand.vmem [shape: s32[64,1], index: 0, kind: input, shape index: {}]   ;;  %s5855_s2 = inlined_call_operand.vmem [shape: f32[8,8], index: 2, kind: input, shape index: {}]   ;;  %s5856_s16 = inlined_call_operand.vmem [shape: f32[16,96], index: 16, kind: input, shape index: {}]   ;;  %s5857_s19 = inlined_call_operand.vmem [shape: f32[1,96], index: 19, kind: input, shape index: {}]   ;;  %s5858_s7 = inlined_call_operand.vmem [shape: f32[32,96], index: 7, kind: input, shape index: {}]   ;;  %s5859_s6 = inlined_call_operand.vmem [shape: f32[16,96], index: 6, kind: input, shape index: {}]   ;;  %s5860_s8 = inlined_call_operand.vmem [shape: f32[1,96], index: 8, kind: input, shape index: {}]   ;;  %s5861_s9 = inlined_call_operand.vmem [shape: f32[1,96], index: 9, kind: input, shape index: {}]   ;;  %s5862_s12 = inlined_call_operand.vmem [shape: f32[32,32], index: 12, kind: input, shape index: {}]   ;;  %s5863_s13 = inlined_call_operand.vmem [shape: f32[1,32], index: 13, kind: input, shape index: {}]   ;;  %s5864_s10 = inlined_call_operand.vmem [shape: f32[32,32], index: 10, kind: input, shape index: {}]   ;;  %s5865_s11 = inlined_call_operand.vmem [shape: f32[1,32], index: 11, kind: input, shape index: {}]   ;;  %s5866_s14 = inlined_call_operand.vmem [shape: f32[32,256], index: 14, kind: input, shape index: {}]   ;;  %s5867_s18 = inlined_call_operand.vmem [shape: f32[32,96], index: 18, kind: input, shape index: {}]   ;;  %s5868_s15 = inlined_call_operand.vmem [shape: f32[256,8], index: 15, kind: input, shape index: {}]   ;;  %s5869_s20 = inlined_call_operand.vmem [shape: f32[1,96], index: 20, kind: input, shape index: {}]   ;;  %s5870_s3 = inlined_call_operand.vmem [shape: f32[8,8], index: 3, kind: input, shape index: {}]   ;;  %s5871_s17 = inlined_call_operand.vmem [shape: f32[32,96], index: 17, kind: input, shape index: {}]   ;;  %s5872_s21 = inlined_call_operand.vmem [shape: f32[32,128], index: 21, kind: input, shape index: {}]   ;;  %s5873_s23 = inlined_call_operand.vmem [shape: f32[16,128], index: 23, kind: input, shape index: {}]   ;;  %s5874_s22 = inlined_call_operand.vmem [shape: f32[32,128], index: 22, kind: input, shape index: {}]   ;;  %s5875_s24 = inlined_call_operand.vmem [shape: f32[1,128], index: 24, kind: input, shape index: {}]   ;;  %s5876_s25 = inlined_call_operand.vmem [shape: f32[56,128], index: 25, kind: output, shape index: {0}]   ;;  %s5877_s26 = inlined_call_operand.vmem [shape: s32[56,1], index: 26, kind: output, shape index: {1}]  }
   0x1   :  { %5989 = sst [smem:[#allocation40_spill]] %s5851_s1  ;;  %3445 = vset.pattern.permute.xlu1 %v5895_v0  ;;  %3444 = vset.pattern.permute.xlu0 %v5895_v0  ;;  %vm501_vm15 = vcmask 261120  }
   0x2   :  { %5990 = sst [smem:[#allocation41_spill]] %s5852_s5  ;;  %3446 = vset.pattern.permute.xlu2 %v5895_v0  ;;  %v4025_v45 = vand.u32 127, %v167_v44 }
   0x3   :  { %5991 = sst [smem:[#allocation42_spill]] %s5853_s4 }
   0x4   :  { %5992 = sst [smem:[#allocation43_spill]] %s5854_s0  ;;  %6005 = vst [vmem:[#allocation2_spill] sm:$0xff] %v4025_v45  ;;  %s3745_s0 = smov 64  }
   0x5   :  { %5993 = sst [smem:[#allocation44_spill]] %s5855_s2 }
   0x6   :  { %5994 = sst [smem:[#allocation45_spill]] %s5856_s16 }
   0x7   :  { %5995 = sst [smem:[#allocation46_spill]] %s5857_s19 }
   0x8   :  { %5996 = sst [smem:[#allocation47_spill]] %s5858_s7 }
   0x9   :  { %5997 = sst [smem:[#allocation48_spill]] %s5859_s6 }
   0xa   :  { %5998 = sst [smem:[#allocation49_spill]] %s5860_s8 }
   0xb   :  { %5999 = sst [smem:[#allocation50_spill]] %s5861_s9 }
   0xc   :  { %s6000_s7 = sld [smem:[#allocation40_spill]] }
   0xd   :  { %s6001_s19 = sld [smem:[#allocation41_spill]] }
   0xe   :  { %s6002_s29 = sld [smem:[#allocation42_spill]] }
   0xf   :  { %s6003_s5 = sld [smem:[#allocation43_spill]] }
  0x10   :  { %s6004_s9 = sld [smem:[#allocation44_spill]] }
  0x11   :  { %s6006_s1 = sld [smem:[#allocation45_spill]] }
  0x12   :  { %v332_v1 = vld [vmem:[%s6000_s7 + $0x10] sm:$0xff]  ;;  %v330_v2 = vld [vmem:[%s6000_s7] sm:$0xff]  ;;  %v333_v3 = vld [vmem:[%s6000_s7 + $0x18] sm:$0xff]  ;;  %s6007_s16 = sld [smem:[#allocation47_spill]] }
  0x13   :  { %360 = vperm.xlu1 %3445, %v332_v1   ;;  %354 = vperm.xlu0 %3444, %v330_v2   ;;  %v331_v4 = vld [vmem:[%s6000_s7 + $0x8] sm:$0xff]  ;;  %v334_v5 = vld [vmem:[%s6000_s7 + $0x20] sm:$0xff]  ;;  %v352_v6 = vld [vmem:[%s6001_s19 + $0x78] sm:$0xff]  ;;  %s6008_s27 = sld [smem:[#allocation48_spill]] }
  0x14   :  { %366 = vperm.xlu2 %3446, %v334_v5   ;;  %395 = vmatpush.msra.mxu2 %v352_v6  ;;  %v351_v7 = vld [vmem:[%s6001_s19 + $0x70] sm:$0xff]  ;;  %v350_v8 = vld [vmem:[%s6001_s19 + $0x68] sm:$0xff]  ;;  %v166_v9 = vld [vmem:[%s6002_s29 + $0x78] sm:$0xff]  ;;  %s6023_s6 = sld [smem:[#allocation49_spill]] }
  0x15   :  { %v349_v10 = vld [vmem:[%s6001_s19 + $0x60] sm:$0xff]  ;;  %217 = vmatpush.msra.mxu0 %v166_v9  ;;  %v165_v11 = vld [vmem:[%s6002_s29 + $0x70] sm:$0xff]  ;;  %v335_v14 = vld [vmem:[%s6000_s7 + $0x28] sm:$0xff]  ;;  %s6053_s28 = sld [smem:[#allocation46_spill]] }
  0x16   :  { %396 = vmatpush.msra.mxu2 %v351_v7  ;;  %v336_v12 = vld [vmem:[%s6000_s7 + $0x30] sm:$0xff]  ;;  %v143_v13 = vld [vmem:[%s6003_s5] sm:$0xff]  ;;  %v348_v15 = vld [vmem:[%s6001_s19 + $0x58] sm:$0xff]  ;;  %s6022_s7 = sld [smem:[#allocation50_spill]] }
  0x17   :  { %218 = vmatpush.msra.mxu0 %v165_v11  ;;  %v164_v16 = vld [vmem:[%s6002_s29 + $0x68] sm:$0xff]  ;;  %v347_v17 = vld [vmem:[%s6001_s19 + $0x50] sm:$0xff]  ;;  %v163_v18 = vld [vmem:[%s6002_s29 + $0x60] sm:$0xff] }
  0x18   :  { %397 = vmatpush.msra.mxu2 %v350_v8  ;;  %v346_v19 = vld [vmem:[%s6001_s19 + $0x48] sm:$0xff]  ;;  %v162_v20 = vld [vmem:[%s6002_s29 + $0x58] sm:$0xff]  ;;  %v345_v21 = vld [vmem:[%s6001_s19 + $0x40] sm:$0xff] }
  0x19   :  { %219 = vmatpush.msra.mxu0 %v164_v16  ;;  %v144_v22 = vld [vmem:[%s6003_s5 + $0x8] sm:$0xff]  ;;  %v161_v23 = vld [vmem:[%s6002_s29 + $0x50] sm:$0xff]  ;;  %v344_v24 = vld [vmem:[%s6001_s19 + $0x38] sm:$0xff] }
  0x1a   :  { %398 = vmatpush.msra.mxu2 %v349_v10  ;;  %v160_v25 = vld [vmem:[%s6002_s29 + $0x48] sm:$0xff]  ;;  %v343_v26 = vld [vmem:[%s6001_s19 + $0x30] sm:$0xff]  ;;  %v341_v28 = vld [vmem:[%s6001_s19 + $0x20] sm:$0xff] }
  0x1b   :  { %363 = vperm.xlu1 %3445, %v333_v3   ;;  %357 = vperm.xlu0 %3444, %v331_v4   ;;  %v342_v27 = vld [vmem:[%s6001_s19 + $0x28] sm:$0xff]  ;;  %v3980_v29 = vld [vmem:[%s6004_s9] sm:$0xff]  ;;  %v340_v30 = vld [vmem:[%s6001_s19 + $0x18] sm:$0xff] }
  0x1c   :  { %369 = vperm.xlu2 %3446, %v335_v14   ;;  %399 = vmatpush.msra.mxu2 %v348_v15  ;;  %v339_v31 = vld [vmem:[%s6001_s19 + $0x10] sm:$0xff]  ;;  %v338_v32 = vld [vmem:[%s6001_s19 + $0x8] sm:$0xff]  ;;  %v159_v34 = vld [vmem:[%s6002_s29 + $0x40] sm:$0xff] }
  0x1d   :  { %220 = vmatpush.msra.mxu0 %v163_v18  ;;  %v145_v33 = vld [vmem:[%s6003_s5 + $0x10] sm:$0xff]  ;;  %v337_v35 = vld [vmem:[%s6001_s19] sm:$0xff]  ;;  %v158_v36 = vld [vmem:[%s6002_s29 + $0x38] sm:$0xff] }
  0x1e   :  { %400 = vmatpush.msra.mxu2 %v347_v17  ;;  %v157_v37 = vld [vmem:[%s6002_s29 + $0x30] sm:$0xff]  ;;  %v156_v38 = vld [vmem:[%s6002_s29 + $0x28] sm:$0xff]  ;;  %v155_v39 = vld [vmem:[%s6002_s29 + $0x20] sm:$0xff] }
  0x1f   :  { %221 = vmatpush.msra.mxu0 %v162_v20  ;;  %v154_v40 = vld [vmem:[%s6002_s29 + $0x18] sm:$0xff]  ;;  %v153_v41 = vld [vmem:[%s6002_s29 + $0x10] sm:$0xff]  ;;  %v152_v42 = vld [vmem:[%s6002_s29 + $0x8] sm:$0xff] }
  0x20   :  { %401 = vmatpush.msra.mxu2 %v346_v19  ;;  %v151_v43 = vld [vmem:[%s6002_s29] sm:$0xff]  ;;  %v434_v53 = vld [vmem:[%s6006_s1 + $0x8] sm:$0xff]  ;;  %v4058_v60 = vld [vmem:[%s6007_s16 + $0x18] sm:$0xff]  ;;  %s3746_s29 = smov 96  }
  0x21   :  { %222 = vmatpush.msra.mxu0 %v161_v23  ;;  %474 = vmatpush.msra.mxu3 %v434_v53  ;;  %v433_v59 = vld [vmem:[%s6006_s1] sm:$0xff]  ;;  %v259_v61 = vld [vmem:[%s6008_s27 + $0x8] sm:$0xff]  ;;  %v4071_v63 = vld [vmem:[%s6007_s16 + $0x10] sm:$0xff] }
  0x22   :  { %402 = vmatpush.msra.mxu2 %v345_v21  ;;  %303 = vmatpush.msra.mxu1 %v259_v61  ;;  %v258_v62 = vld [vmem:[%s6008_s27] sm:$0xff]  ;;  %v4078_v1 = vld [vmem:[%s6007_s16 + $0x8] sm:$0xff] }
  0x23   :  { %372 = vperm.xlu0 %3444, %v336_v12   ;;  %170 = vperm.xlu1 %3445, %v143_v13   ;;  %v4093_v4 = vld [vmem:[%s6007_s16] sm:$0xff]  ;;  %v3744_v13 = vmov 0.0  }
  0x24   :  { %403 = vmatpush.msra.mxu2 %v344_v24  ;;  %223 = vmatpush.msra.mxu0 %v160_v25  ;;  %v4145_v21 = vld [vmem:[%s6022_s7] ss:$0 sm:$0xff] }
  0x25   :  { %475 = vmatpush.msra.mxu3 %v433_v59  ;;  %304 = vmatpush.msra.mxu1 %v258_v62  ;;  %v4152_v24 = vld [vmem:[%s6023_s6] ss:$0 sm:$0xff] }
  0x26   :  { %404 = vmatpush.msra.mxu2 %v343_v26  ;;  %224 = vmatpush.msra.mxu0 %v159_v34 }
  0x27   :  { %517 = vmatpush.msrb.mxu3 %v4058_v60 }
  0x28   :  { %405 = vmatpush.msra.mxu2 %v342_v27  ;;  %225 = vmatpush.msra.mxu0 %v158_v36 }
  0x29   :  { %518 = vmatpush.msrb.mxu3 %v4071_v63 }
  0x2a   :  { %406 = vmatpush.msra.mxu2 %v341_v28  ;;  %226 = vmatpush.msra.mxu0 %v157_v37 }
  0x2b   :  { %173 = vperm.xlu0 %3444, %v144_v22   ;;  %519 = vmatpush.msrb.mxu3 %v4078_v1 }
  0x2c   :  { %407 = vmatpush.msra.mxu2 %v340_v30  ;;  %227 = vmatpush.msra.mxu0 %v156_v38 }
  0x2d   :  { %520 = vmatpush.msrb.mxu3 %v4093_v4 }
  0x2e   :  { %408 = vmatpush.msra.mxu2 %v339_v31  ;;  %228 = vmatpush.msra.mxu0 %v155_v39 }
  0x30   :  { %409 = vmatpush.msra.mxu2 %v338_v32  ;;  %229 = vmatpush.msra.mxu0 %v154_v40 }
  0x32   :  { %410 = vmatpush.msra.mxu2 %v337_v35  ;;  %230 = vmatpush.msra.mxu0 %v153_v41 }
  0x33   :  { %566 = vperm.xlu0 %3444, %v3980_v29  }
  0x34   :  { %231 = vmatpush.msra.mxu0 %v152_v42 }
  0x36   :  { %232 = vmatpush.msra.mxu0 %v151_v43 }
  0x38   :  { %1199 = vmatpush.msrb.mxu0 %v4058_v60 }
  0x3a   :  { %1200 = vmatpush.msrb.mxu0 %v4071_v63 }
  0x3b   :  { %176 = vperm.xlu0 %3444, %v145_v33  }
  0x3c   :  { %1201 = vmatpush.msrb.mxu0 %v4078_v1 }
  0x3e   :  { %1202 = vmatpush.msrb.mxu0 %v4093_v4 }
  0x6e   :  { %v367_v55 = vpop.permute.xlu2 %366 }
  0x6f   :  { %vm378_vm6 = vcmp.eq.s32.totalorder %v4025_v45, %v367_v55 }
  0x76   :  { %v370_v57 = vpop.permute.xlu2 %369 }
  0x77   :  { %vm379_vm8 = vcmp.eq.s32.totalorder %v4025_v45, %v370_v57 }
  0x85   :  { %v361_v46 = vpop.permute.xlu1 %360  ;;  %v355_v47 = vpop.permute.xlu0 %354 }
  0x86   :  { %vm374_vm0 = vcmp.eq.s32.totalorder %v4025_v45, %v355_v47  ;;  %vm376_vm2 = vcmp.eq.s32.totalorder %v4025_v45, %v361_v46 }
  0x87   :  { %3302 = vmatmul.msk.f32.vlgmr.msra.gmra.mxu2 %vm374_vm0, %v3743_v48 }
  0x8d   :  { %v364_v49 = vpop.permute.xlu1 %363  ;;  %v358_v50 = vpop.permute.xlu0 %357 }
  0x8e   :  { %vm375_vm1 = vcmp.eq.s32.totalorder %v4025_v45, %v358_v50  ;;  %vm377_vm5 = vcmp.eq.s32.totalorder %v4025_v45, %v364_v49 }
  0x8f   :  { %3303 = vmatmul.msk.f32.gmra.mxu2 %vm375_vm1, %v3743_v48 }
  0x95   :  { %v373_v51 = vpop.permute.xlu0 %372  ;;  %v171_v52 = vpop.permute.xlu1 %170 }
  0x96   :  { %vm193_vm3 = vcmp.eq.s32.totalorder %v4025_v45, %v171_v52  ;;  %vm380_vm9 = vcmp.eq.s32.totalorder %v4025_v45, %v373_v51 }
  0x97   :  { %3279 = vmatmul.msk.f32.vlgmr.msra.gmra.mxu0 %vm193_vm3, %v3743_v48  ;;  %3304 = vmatmul.msk.f32.gmra.mxu2 %vm376_vm2, %v3743_v48 }
  0x9d   :  { %v174_v54 = vpop.permute.xlu0 %173 }
  0x9e   :  { %vm194_vm4 = vcmp.eq.s32.totalorder %v4025_v45, %v174_v54 }
  0x9f   :  { %3280 = vmatmul.msk.f32.gmra.mxu0 %vm194_vm4, %v3743_v48  ;;  %3305 = vmatmul.msk.f32.gmra.mxu2 %vm377_vm5, %v3743_v48 }
  0xa5   :  { %v4043_v56 = vpop.permute.xlu0 %566 }
  0xa7   :  { %3306 = vmatmul.msk.f32.gmra.mxu2 %vm378_vm6, %v3743_v48 }
  0xad   :  { %v177_v58 = vpop.permute.xlu0 %176 }
  0xae   :  { %vm195_vm7 = vcmp.eq.s32.totalorder %v4025_v45, %v177_v58 }
  0xaf   :  { %3281 = vmatmul.msk.f32.gmra.mxu0 %vm195_vm7, %v3743_v48  ;;  %3307 = vmatmul.msk.f32.gmra.mxu2 %vm379_vm8, %v3743_v48 }
  0xb7   :  { %3308 = vmatmul.msk.f32.gmra.mxu2 %vm380_vm9, %v3743_v48 }
 0x10a   :  { %v4082_v2 = vpop.f32.mrf.mxu2 }
 0x10b   :  { %6009 = vst [vmem:[#allocation3_spill] sm:$0xff] %v4082_v2  ;;  %3309 = vmatmul.msk.f32.vlgmr.msra.gmra.mxu3 %vm264_vm10, %v4082_v2 }
 0x10c   :  { %617 = vmatpush.msra.mxu3 %v4058_v60 }
 0x10e   :  { %618 = vmatpush.msra.mxu3 %v4071_v63 }
 0x110   :  { %619 = vmatpush.msra.mxu3 %v4078_v1 }
 0x112   :  { %v4086_v3 = vpop.f32.mrf.mxu2  ;;  %620 = vmatpush.msra.mxu3 %v4093_v4 }
 0x113   :  { %6010 = vst [vmem:[#allocation4_spill] sm:$0xff] %v4086_v3  ;;  %3310 = vmatmul.msk.f32.gmra.mxu3 %vm264_vm10, %v4086_v3 }
 0x114   :  { %v234_v5 = vpop.f32.mrf.mxu0 }
 0x115   :  { %3287 = vmatmul.msk.f32.vlgmr.msra.gmra.mxu1 %vm264_vm10, %v234_v5 }
 0x11a   :  { %v4101_v6 = vpop.f32.mrf.mxu2 }
 0x11b   :  { %6011 = vst [vmem:[#allocation5_spill] sm:$0xff] %v4101_v6  ;;  %3311 = vmatmul.msk.f32.gmra.mxu3 %vm264_vm10, %v4101_v6  ;;  %v4772_v6 = vld [vmem:[%s5868_s15 + $0x80] sm:$0xff] }
 0x11c   :  { %v237_v7 = vpop.f32.mrf.mxu0  ;;  %6041 = vst [vmem:[#allocation33_spill] sm:$0xff] %v4772_v6 }
 0x11d   :  { %3288 = vmatmul.msk.f32.gmra.mxu1 %vm264_vm10, %v237_v7 }
 0x122   :  { %v4107_v8 = vpop.f32.mrf.mxu2 }
 0x123   :  { %6012 = vst [vmem:[#allocation6_spill] sm:$0xff] %v4107_v8  ;;  %3312 = vmatmul.msk.f32.gmra.mxu3 %vm264_vm10, %v4107_v8  ;;  %v4765_v8 = vld [vmem:[%s5868_s15 + $0x88] sm:$0xff] }
 0x124   :  { %6040 = vst [vmem:[#allocation32_spill] sm:$0xff] %v4765_v8 }
 0x12a   :  { %v4111_v9 = vpop.f32.mrf.mxu2 }
 0x12b   :  { %6013 = vst [vmem:[#allocation7_spill] sm:$0xff] %v4111_v9  ;;  %3313 = vmatmul.msk.f32.gmra.mxu3 %vm264_vm10, %v4111_v9  ;;  %v4758_v9 = vld [vmem:[%s5868_s15 + $0x90] sm:$0xff] }
 0x12c   :  { %v240_v10 = vpop.f32.mrf.mxu0  ;;  %6039 = vst [vmem:[#allocation31_spill] sm:$0xff] %v4758_v9 }
 0x12d   :  { %3289 = vmatmul.msk.f32.gmra.mxu1 %vm264_vm10, %v240_v10 }
 0x132   :  { %v4116_v11 = vpop.f32.mrf.mxu2 }
 0x133   :  { %6014 = vst [vmem:[#allocation8_spill] sm:$0xff] %v4116_v11  ;;  %3314 = vmatmul.msk.f32.gmra.mxu3 %vm264_vm10, %v4116_v11  ;;  %v4753_v11 = vld [vmem:[%s5868_s15 + $0x98] sm:$0xff] }
 0x134   :  { %6038 = vst [vmem:[#allocation30_spill] sm:$0xff] %v4753_v11 }
 0x13a   :  { %v4120_v12 = vpop.f32.mrf.mxu2 }
 0x13b   :  { %6015 = vst [vmem:[#allocation9_spill] sm:$0xff] %v4120_v12  ;;  %3315 = vmatmul.msk.f32.gmra.mxu3 %vm264_vm10, %v4120_v12  ;;  %v4744_v12 = vld [vmem:[%s5868_s15 + $0xa0] sm:$0xff] }
 0x13c   :  { %6037 = vst [vmem:[#allocation29_spill] sm:$0xff] %v4744_v12 }
 0x143   :  { %521 = vmatmul.f32.vlgmr.msrb.gmra.mxu3 %v3744_v13  ;;  %v5897_v13 = vmov 1  }
 0x144   :  { %714 = vmatpush.msrb.mxu3 %v4058_v60  ;;  %3447 = vset.pattern.permute.xlu0 %v5897_v13  ;;  %v4711_v13 = vld [vmem:[%s5868_s15 + $0xc8] sm:$0xff] }
 0x145   :  { %666 = vperm.xlu0 %3447, %v3980_v29  }
 0x146   :  { %715 = vmatpush.msrb.mxu3 %v4071_v63 }
 0x148   :  { %716 = vmatpush.msrb.mxu3 %v4078_v1 }
 0x14a   :  { %717 = vmatpush.msrb.mxu3 %v4093_v4 }
 0x14d   :  { %3449 = vset.pattern.permute.xlu0 %v5895_v0 }
 0x18e   :  { %v4128_v14 = vpop.f32.mrf.mxu3 }
 0x192   :  { %v306_v25 = vpop.f32.mrf.mxu1 }
 0x193   :  { %v307_v26 = vadd.f32 %v4152_v24, %v306_v25 }
 0x196   :  { %v4130_v15 = vpop.f32.mrf.mxu3 }
 0x197   :  { %6016 = vst [vmem:[#allocation10_spill] sm:$0xff] %v4130_v15 }
 0x19a   :  { %v309_v59 = vpop.f32.mrf.mxu1 }
 0x19b   :  { %v310_v61 = vadd.f32 %v4152_v24, %v309_v59 }
 0x19e   :  { %v4132_v16 = vpop.f32.mrf.mxu3 }
 0x19f   :  { %6017 = vst [vmem:[#allocation11_spill] sm:$0xff] %v4132_v16 }
 0x1a6   :  { %v4134_v17 = vpop.f32.mrf.mxu3 }
 0x1a7   :  { %6018 = vst [vmem:[#allocation12_spill] sm:$0xff] %v4134_v17 }
 0x1ae   :  { %v4136_v18 = vpop.f32.mrf.mxu3 }
 0x1af   :  { %6019 = vst [vmem:[#allocation13_spill] sm:$0xff] %v4136_v18 }
 0x1b6   :  { %v4138_v19 = vpop.f32.mrf.mxu3 }
 0x1b7   :  { %6020 = vst [vmem:[#allocation14_spill] sm:$0xff] %v4138_v19 }
 0x1be   :  { %v4140_v20 = vpop.f32.mrf.mxu3 }
 0x1bf   :  { %6021 = vst [vmem:[#allocation15_spill] sm:$0xff] %v4140_v20  ;;  %v4737_v20 = vld [vmem:[%s5868_s15 + $0xa8] sm:$0xff] }
 0x1c0   :  { %6036 = vst [vmem:[#allocation28_spill] sm:$0xff] %v4737_v20 }
 0x1c6   :  { %v522_v22 = vpop.f32.mrf.mxu3 }
 0x1c7   :  { %v523_v23 = vadd.f32 %v4145_v21, %v522_v22 }
 0x1c9   :  { %546 = vrot.lane.b32.xlu2 %v523_v23, %s3745_s0  ;;  %v525_v27 = vadd.f32 %v523_v23, %v307_v26 }
 0x1cb   :  { %v3316_v28 = vmul.f32 -1.442695, %v525_v27 }
 0x1cd   :  { %3514 = vpow2.f32 %v3316_v28 }
 0x1d3   :  { %v3515_v30 = vpop.eup %3514 }
 0x1d4   :  { %v529_v31 = vadd.f32 1.0, %v3515_v30 }
 0x1d6   :  { %3516 = vrcp.f32 %v529_v31  ;;  %v541_v37 = vand.u32 2147483648, %v529_v31  ;;  %vm535_vm12 = vweird.f32 %v529_v31  ;;  %v539_v38 = vand.u32 2147483647, %v529_v31 }
 0x1d8   :  { %v542_v40 = vor.u32 1.1754944e-38, %v541_v37  ;;  %vm540_vm14 = vcmp.eq.f32.partialorder %v539_v38, 8.507059e+37 }
 0x1dc   :  { %v3517_v32 = vpop.eup %3516 }
 0x1dd   :  { %v531_v33 = vmul.f32 %v3517_v32, %v529_v31  ;;  %vm536_vm11 = vweird.f32 %v3517_v32 }
 0x1de   :  { %vm537_vm13 = vmor %vm535_vm12, %vm536_vm11 }
 0x1df   :  { %v532_v34 = vsub.f32 1.0, %v531_v33 }
 0x1e1   :  { %v533_v35 = vmul.f32 %v3517_v32, %v532_v34 }
 0x1e3   :  { %v534_v36 = vadd.f32 %v3517_v32, %v533_v35 }
 0x1e5   :  { %v538_v39 = vsel %vm537_vm13, %v3517_v32, %v534_v36 }
 0x1e6   :  { %v543_v42 = vsel %vm540_vm14, %v542_v40, %v538_v39 }
 0x1e7   :  { %v556_v49 = vsub.f32 1.0, %v543_v42  ;;  %v562_v51 = vmul.f32 0.0, %v543_v42 }
 0x223   :  { %v547_v41 = vpop.permute.xlu2 %546 }
 0x224   :  { %v549_v43 = vmul.f32 %v547_v41, %v543_v42 }
 0x226   :  { %551 = vrot.lane.b32.xlu1 %v549_v43, %s3745_s0 }
 0x298   :  { %v552_v44 = vpop.permute.xlu1 %551 }
 0x299   :  { %v554_v46 = vadd.f32 %v552_v44, %v307_v26  ;;  %v4176_v44 = vpop.permute.xlu0 %666 }
 0x29b   :  { %3518 = vtanh.f32 %v554_v46 }
 0x2a1   :  { %v3519_v47 = vpop.eup %3518 }
 0x2a2   :  { %558 = vrot.lane.b32.xlu2 %v3519_v47, %s3746_s29 }
 0x2fc   :  { %v559_v50 = vpop.permute.xlu2 %558 }
 0x2fd   :  { %v561_v52 = vmul.f32 %v559_v50, %v556_v49  ;;  %v146_v50 = vld [vmem:[%s6003_s5 + $0x18] sm:$0xff] }
 0x2ff   :  { %v563_v53 = vadd.f32 %v562_v51, %v561_v52 }
 0x301   :  { %v4158_v54 = vmul.f32 %v4043_v56, %v563_v53 }
 0x303   :  { %601 = vrot.lane.b32.xlu1 %v4158_v54, %s3746_s29 }
 0x375   :  { %v602_v55 = vpop.permute.xlu1 %601 }
 0x376   :  { %3318 = vmatmul.msk.f32.vlgmr.msra.gmra.mxu3 %vm501_vm15, %v602_v55 }
 0x377   :  { %811 = vmatpush.msra.mxu3 %v4058_v60 }
 0x379   :  { %812 = vmatpush.msra.mxu3 %v4071_v63 }
 0x37b   :  { %813 = vmatpush.msra.mxu3 %v4078_v1 }
 0x37d   :  { %814 = vmatpush.msra.mxu3 %v4093_v4 }
 0x3f9   :  { %v622_v57 = vpop.f32.mrf.mxu3 }
 0x3fa   :  { %v623_v58 = vadd.f32 %v4145_v21, %v622_v57 }
 0x3fc   :  { %646 = vrot.lane.b32.xlu2 %v623_v58, %s3745_s0  ;;  %v625_v62 = vadd.f32 %v623_v58, %v310_v61  ;;  %v312_v58 = vpop.f32.mrf.mxu1 }
 0x3fd   :  { %v313_v59 = vadd.f32 %v4152_v24, %v312_v58 }
 0x3fe   :  { %v3319_v5 = vmul.f32 -1.442695, %v625_v62 }
 0x400   :  { %3520 = vpow2.f32 %v3319_v5 }
 0x406   :  { %v3521_v7 = vpop.eup %3520 }
 0x407   :  { %v629_v10 = vadd.f32 1.0, %v3521_v7 }
 0x409   :  { %3522 = vrcp.f32 %v629_v10  ;;  %v641_v28 = vand.u32 2147483648, %v629_v10  ;;  %vm635_vm1 = vweird.f32 %v629_v10  ;;  %v639_v30 = vand.u32 2147483647, %v629_v10 }
 0x40b   :  { %v642_v32 = vor.u32 1.1754944e-38, %v641_v28  ;;  %vm640_vm3 = vcmp.eq.f32.partialorder %v639_v30, 8.507059e+37 }
 0x40f   :  { %v3523_v22 = vpop.eup %3522 }
 0x410   :  { %v631_v23 = vmul.f32 %v3523_v22, %v629_v10  ;;  %vm636_vm0 = vweird.f32 %v3523_v22 }
 0x411   :  { %vm637_vm2 = vmor %vm635_vm1, %vm636_vm0 }
 0x412   :  { %v632_v25 = vsub.f32 1.0, %v631_v23 }
 0x414   :  { %v633_v26 = vmul.f32 %v3523_v22, %v632_v25 }
 0x416   :  { %v634_v27 = vadd.f32 %v3523_v22, %v633_v26 }
 0x418   :  { %v638_v31 = vsel %vm637_vm2, %v3523_v22, %v634_v27 }
 0x419   :  { %v643_v34 = vsel %vm640_vm3, %v642_v32, %v638_v31 }
 0x41a   :  { %v656_v39 = vsub.f32 1.0, %v643_v34  ;;  %v662_v41 = vmul.f32 %v643_v34, %v4158_v54 }
 0x456   :  { %v647_v33 = vpop.permute.xlu2 %646 }
 0x457   :  { %v649_v35 = vmul.f32 %v647_v33, %v643_v34 }
 0x459   :  { %651 = vrot.lane.b32.xlu1 %v649_v35, %s3745_s0  ;;  %v5893_v35 = vmov 2  }
 0x4cb   :  { %v652_v36 = vpop.permute.xlu1 %651 }
 0x4cc   :  { %v654_v37 = vadd.f32 %v652_v36, %v310_v61  ;;  %v148_v36 = vld [vmem:[%s6003_s5 + $0x28] sm:$0xff] }
 0x4ce   :  { %3524 = vtanh.f32 %v654_v37 }
 0x4d4   :  { %v3525_v38 = vpop.eup %3524 }
 0x4d5   :  { %658 = vrot.lane.b32.xlu2 %v3525_v38, %s3746_s29 }
 0x52f   :  { %v659_v40 = vpop.permute.xlu2 %658 }
 0x530   :  { %v661_v42 = vmul.f32 %v659_v40, %v656_v39  ;;  %v147_v40 = vld [vmem:[%s6003_s5 + $0x20] sm:$0xff] }
 0x532   :  { %v663_v43 = vadd.f32 %v662_v41, %v661_v42 }
 0x534   :  { %v664_v46 = vsub.f32 %v663_v43, %v4158_v54 }
 0x536   :  { %v669_v47 = vmul.f32 %v4176_v44, %v664_v46 }
 0x538   :  { %v4181_v49 = vadd.f32 %v669_v47, %v4158_v54 }
 0x53a   :  { %698 = vrot.lane.b32.xlu1 %v4181_v49, %s3746_s29 }
 0x542   :  { %179 = vperm.xlu1 %3445, %v146_v50  }
 0x54a   :  { %3448 = vset.pattern.permute.xlu1 %v5893_v35  ;;  %v4683_v35 = vld [vmem:[%s5868_s15 + $0xe8] sm:$0xff] }
 0x54b   :  { %763 = vperm.xlu1 %3448, %v3980_v29  }
 0x553   :  { %3450 = vset.pattern.permute.xlu1 %v5895_v0 }
 0x554   :  { %185 = vperm.xlu1 %3450, %v148_v36  }
 0x5ac   :  { %v699_v51 = vpop.permute.xlu1 %698 }
 0x5ad   :  { %3321 = vmatmul.msk.f32.vlgmr.msrb.gmra.mxu3 %vm501_vm15, %v699_v51 }
 0x5b4   :  { %v180_v52 = vpop.permute.xlu1 %179 }
 0x5b5   :  { %vm196_vm4 = vcmp.eq.s32.totalorder %v4025_v45, %v180_v52 }
 0x5b6   :  { %3282 = vmatmul.msk.f32.gmra.mxu0 %vm196_vm4, %v3743_v48 }
 0x5bd   :  { %v764_v50 = vpop.permute.xlu1 %763 }
 0x5c6   :  { %v186_v58 = vpop.permute.xlu1 %185 }
 0x5c7   :  { %vm198_vm11 = vcmp.eq.s32.totalorder %v4025_v45, %v186_v58 }
 0x630   :  { %v719_v53 = vpop.f32.mrf.mxu3 }
 0x631   :  { %v720_v55 = vadd.f32 %v4145_v21, %v719_v53 }
 0x633   :  { %743 = vrot.lane.b32.xlu2 %v720_v55, %s3745_s0  ;;  %v243_v57 = vpop.f32.mrf.mxu0  ;;  %v722_v61 = vadd.f32 %v720_v55, %v313_v59 }
 0x634   :  { %3290 = vmatmul.msk.f32.gmra.mxu1 %vm264_vm10, %v243_v57  ;;  %v149_v57 = vld [vmem:[%s6003_s5 + $0x30] sm:$0xff] }
 0x635   :  { %v3322_v62 = vmul.f32 -1.442695, %v722_v61 }
 0x637   :  { %3526 = vpow2.f32 %v3322_v62 }
 0x63d   :  { %v3527_v5 = vpop.eup %3526 }
 0x63e   :  { %v726_v7 = vadd.f32 1.0, %v3527_v5 }
 0x640   :  { %3528 = vrcp.f32 %v726_v7  ;;  %v738_v27 = vand.u32 2147483648, %v726_v7  ;;  %vm732_vm6 = vweird.f32 %v726_v7  ;;  %v736_v28 = vand.u32 2147483647, %v726_v7 }
 0x642   :  { %v739_v31 = vor.u32 1.1754944e-38, %v738_v27  ;;  %vm737_vm8 = vcmp.eq.f32.partialorder %v736_v28, 8.507059e+37 }
 0x646   :  { %v3529_v10 = vpop.eup %3528 }
 0x647   :  { %v728_v22 = vmul.f32 %v3529_v10, %v726_v7  ;;  %vm733_vm5 = vweird.f32 %v3529_v10 }
 0x648   :  { %vm734_vm7 = vmor %vm732_vm6, %vm733_vm5 }
 0x649   :  { %v729_v23 = vsub.f32 1.0, %v728_v22 }
 0x64b   :  { %v730_v25 = vmul.f32 %v3529_v10, %v729_v23 }
 0x64d   :  { %v731_v26 = vadd.f32 %v3529_v10, %v730_v25 }
 0x64f   :  { %v735_v30 = vsel %vm734_vm7, %v3529_v10, %v731_v26  ;;  %v5889_v10 = vmov 3  }
 0x650   :  { %v740_v33 = vsel %vm737_vm8, %v739_v31, %v735_v30 }
 0x651   :  { %v753_v41 = vsub.f32 1.0, %v740_v33  ;;  %v759_v43 = vmul.f32 %v740_v33, %v4181_v49 }
 0x68d   :  { %v744_v32 = vpop.permute.xlu2 %743 }
 0x68e   :  { %v746_v34 = vmul.f32 %v744_v32, %v740_v33 }
 0x690   :  { %748 = vrot.lane.b32.xlu2 %v746_v34, %s3745_s0 }
 0x6b1   :  { %v315_v28 = vpop.f32.mrf.mxu1 }
 0x6b2   :  { %v316_v30 = vadd.f32 %v4152_v24, %v315_v28 }
 0x6ea   :  { %v749_v37 = vpop.permute.xlu2 %748 }
 0x6eb   :  { %v751_v38 = vadd.f32 %v749_v37, %v313_v59  ;;  %v150_v59 = vld [vmem:[%s6003_s5 + $0x38] sm:$0xff] }
 0x6ec   :  { %191 = vperm.xlu1 %3450, %v150_v59  }
 0x6ed   :  { %3530 = vtanh.f32 %v751_v38 }
 0x6f3   :  { %v3531_v39 = vpop.eup %3530 }
 0x6f4   :  { %755 = vrot.lane.b32.xlu0 %v3531_v39, %s3746_s29 }
 0x6fc   :  { %182 = vperm.xlu0 %3449, %v147_v40  }
 0x75e   :  { %v192_v22 = vpop.permute.xlu1 %191 }
 0x75f   :  { %vm200_vm13 = vcmp.eq.s32.totalorder %v4025_v45, %v192_v22 }
 0x766   :  { %v756_v42 = vpop.permute.xlu0 %755 }
 0x767   :  { %v758_v46 = vmul.f32 %v756_v42, %v753_v41 }
 0x769   :  { %v760_v47 = vadd.f32 %v759_v43, %v758_v46 }
 0x76b   :  { %v761_v51 = vsub.f32 %v760_v47, %v4181_v49 }
 0x76d   :  { %v766_v52 = vmul.f32 %v764_v50, %v761_v51  ;;  %v4244_v51 = vmul.f32 %v4158_v54, %v4043_v56  ;;  %v4259_v56 = vld [vmem:[%s5862_s12 + $0x10] sm:$0xff]  ;;  %v4264_v54 = vld [vmem:[%s5862_s12 + $0x8] sm:$0xff] }
 0x76e   :  { %v183_v53 = vpop.permute.xlu0 %182 }
 0x76f   :  { %v4209_v55 = vadd.f32 %v766_v52, %v4181_v49  ;;  %vm197_vm9 = vcmp.eq.s32.totalorder %v4025_v45, %v183_v53  ;;  %6024 = vst [vmem:[#allocation16_spill] sm:$0xff] %v4244_v51  ;;  %v4252_v53 = vld [vmem:[%s5862_s12 + $0x18] sm:$0xff] }
 0x770   :  { %3283 = vmatmul.msk.f32.gmra.mxu0 %vm197_vm9, %v3743_v48  ;;  %592 = vmatpush.msrb.mxu1 %v4252_v53 }
 0x771   :  { %795 = vrot.lane.b32.xlu2 %v4209_v55, %s3746_s29  ;;  %v4236_v27 = vmul.f32 %v4209_v55, %v764_v50  ;;  %883 = vmatpush.msrb.mxu2 %v4252_v53 }
 0x772   :  { %980 = vmatpush.msrb.mxu3 %v4252_v53  ;;  %593 = vmatpush.msrb.mxu1 %v4259_v56 }
 0x773   :  { %884 = vmatpush.msrb.mxu2 %v4259_v56 }
 0x774   :  { %981 = vmatpush.msrb.mxu3 %v4259_v56  ;;  %594 = vmatpush.msrb.mxu1 %v4264_v54 }
 0x775   :  { %885 = vmatpush.msrb.mxu2 %v4264_v54 }
 0x776   :  { %982 = vmatpush.msrb.mxu3 %v4264_v54 }
 0x778   :  { %3284 = vmatmul.msk.f32.gmra.mxu0 %vm198_vm11, %v3743_v48 }
 0x779   :  { %188 = vperm.xlu2 %3446, %v149_v57   ;;  %v4272_v57 = vld [vmem:[%s5862_s12] sm:$0xff] }
 0x77a   :  { %595 = vmatpush.msrb.mxu1 %v4272_v57  ;;  %886 = vmatpush.msrb.mxu2 %v4272_v57 }
 0x77b   :  { %983 = vmatpush.msrb.mxu3 %v4272_v57 }
 0x77c   :  { %689 = vmatpush.msra.mxu1 %v4252_v53  ;;  %1005 = vmatpush.msra.mxu2 %v4058_v60 }
 0x77e   :  { %690 = vmatpush.msra.mxu1 %v4259_v56  ;;  %1006 = vmatpush.msra.mxu2 %v4071_v63 }
 0x780   :  { %691 = vmatpush.msra.mxu1 %v4264_v54  ;;  %1007 = vmatpush.msra.mxu2 %v4078_v1 }
 0x781   :  { %3451 = vset.pattern.permute.xlu2 %v5889_v10  ;;  %v4671_v10 = vld [vmem:[%s5868_s15] sm:$0xff] }
 0x782   :  { %692 = vmatpush.msra.mxu1 %v4272_v57  ;;  %1008 = vmatpush.msra.mxu2 %v4093_v4 }
 0x7cb   :  { %v796_v61 = vpop.permute.xlu2 %795 }
 0x7cc   :  { %3324 = vmatmul.msk.f32.vlgmr.msra.gmra.mxu3 %vm501_vm15, %v796_v61 }
 0x7cd   :  { %1174 = vmatpush.msra.mxu3 %v4252_v53 }
 0x7cf   :  { %1175 = vmatpush.msra.mxu3 %v4259_v56 }
 0x7d1   :  { %1176 = vmatpush.msra.mxu3 %v4264_v54 }
 0x7d3   :  { %v189_v62 = vpop.permute.xlu2 %188  ;;  %1177 = vmatpush.msra.mxu3 %v4272_v57 }
 0x7d4   :  { %vm199_vm12 = vcmp.eq.s32.totalorder %v4025_v45, %v189_v62  ;;  %v4731_v45 = vld [vmem:[%s5868_s15 + $0xb0] sm:$0xff] }
 0x7d5   :  { %3285 = vmatmul.msk.f32.gmra.mxu0 %vm199_vm12, %v3743_v48  ;;  %6035 = vst [vmem:[#allocation27_spill] sm:$0xff] %v4731_v45 }
 0x7dd   :  { %3286 = vmatmul.msk.f32.gmra.mxu0 %vm200_vm13, %v3743_v48 }
 0x7ed   :  { %v246_v5 = vpop.f32.mrf.mxu0 }
 0x7ee   :  { %3291 = vmatmul.msk.f32.gmra.mxu1 %vm264_vm10, %v246_v5  ;;  %v4300_v5 = vmul.f32 %v4181_v49, %v4176_v44 }
 0x7f0   :  { %6025 = vst [vmem:[#allocation17_spill] sm:$0xff] %v4300_v5 }
 0x7f5   :  { %v249_v7 = vpop.f32.mrf.mxu0 }
 0x7f6   :  { %3292 = vmatmul.msk.f32.gmra.mxu1 %vm264_vm10, %v249_v7 }
 0x84f   :  { %v816_v23 = vpop.f32.mrf.mxu3 }
 0x850   :  { %v817_v25 = vadd.f32 %v4145_v21, %v816_v23 }
 0x852   :  { %840 = vrot.lane.b32.xlu2 %v817_v25, %s3745_s0  ;;  %v252_v26 = vpop.f32.mrf.mxu0  ;;  %v819_v48 = vadd.f32 %v817_v25, %v316_v30 }
 0x853   :  { %3293 = vmatmul.msk.f32.gmra.mxu1 %vm264_vm10, %v252_v26 }
 0x854   :  { %v3325_v31 = vmul.f32 -1.442695, %v819_v48 }
 0x856   :  { %3532 = vpow2.f32 %v3325_v31 }
 0x85a   :  { %860 = vperm.xlu2 %3451, %v3980_v29   ;;  %v255_v52 = vpop.f32.mrf.mxu0 }
 0x85b   :  { %3294 = vmatmul.msk.f32.gmra.mxu1 %vm264_vm10, %v255_v52 }
 0x85c   :  { %v3533_v32 = vpop.eup %3532 }
 0x85d   :  { %v823_v33 = vadd.f32 1.0, %v3533_v32 }
 0x85f   :  { %3534 = vrcp.f32 %v823_v33  ;;  %v835_v40 = vand.u32 2147483648, %v823_v33  ;;  %vm829_vm0 = vweird.f32 %v823_v33  ;;  %v833_v41 = vand.u32 2147483647, %v823_v33 }
 0x861   :  { %v836_v43 = vor.u32 1.1754944e-38, %v835_v40  ;;  %vm834_vm2 = vcmp.eq.f32.partialorder %v833_v41, 8.507059e+37 }
 0x862   :  { %770 = vrot.lane.b32.xlu2 %v4236_v27, %s3746_s29 }
 0x865   :  { %v3535_v34 = vpop.eup %3534 }
 0x866   :  { %v825_v36 = vmul.f32 %v3535_v34, %v823_v33  ;;  %vm830_vm14 = vweird.f32 %v3535_v34 }
 0x867   :  { %vm831_vm1 = vmor %vm829_vm0, %vm830_vm14 }
 0x868   :  { %v826_v37 = vsub.f32 1.0, %v825_v36 }
 0x86a   :  { %v827_v38 = vmul.f32 %v3535_v34, %v826_v37 }
 0x86c   :  { %v828_v39 = vadd.f32 %v3535_v34, %v827_v38 }
 0x86e   :  { %v832_v42 = vsel %vm831_vm1, %v3535_v34, %v828_v39 }
 0x86f   :  { %v837_v47 = vsel %vm834_vm2, %v836_v43, %v832_v42 }
 0x870   :  { %v850_v7 = vsub.f32 1.0, %v837_v47  ;;  %v856_v23 = vmul.f32 %v837_v47, %v4209_v55 }
 0x8ac   :  { %v841_v46 = vpop.permute.xlu2 %840 }
 0x8ad   :  { %v843_v50 = vmul.f32 %v841_v46, %v837_v47 }
 0x8af   :  { %845 = vrot.lane.b32.xlu0 %v843_v50, %s3745_s0 }
 0x8b7   :  { %576 = vrot.lane.b32.xlu0 %v4244_v51, %s3746_s29 }
 0x921   :  { %v846_v58 = vpop.permute.xlu0 %845 }
 0x922   :  { %v848_v59 = vadd.f32 %v846_v58, %v316_v30  ;;  %v861_v30 = vpop.permute.xlu2 %860 }
 0x924   :  { %3536 = vtanh.f32 %v848_v59 }
 0x929   :  { %v577_v61 = vpop.permute.xlu0 %576 }
 0x92a   :  { %v3537_v62 = vpop.eup %3536  ;;  %3317 = vmatmul.msk.f32.vlgmr.msrb.gmra.mxu1 %vm501_vm15, %v577_v61  ;;  %v771_v44 = vpop.permute.xlu2 %770 }
 0x92b   :  { %852 = vrot.lane.b32.xlu1 %v3537_v62, %s3746_s29  ;;  %786 = vmatpush.msrb.mxu1 %v4252_v53 }
 0x92d   :  { %787 = vmatpush.msrb.mxu1 %v4259_v56 }
 0x92f   :  { %788 = vmatpush.msrb.mxu1 %v4264_v54 }
 0x931   :  { %789 = vmatpush.msrb.mxu1 %v4272_v57 }
 0x933   :  { %673 = vrot.lane.b32.xlu1 %v4300_v5, %s3746_s29 }
 0x99d   :  { %v853_v22 = vpop.permute.xlu1 %852 }
 0x99e   :  { %v855_v25 = vmul.f32 %v853_v22, %v850_v7 }
 0x9a0   :  { %v857_v26 = vadd.f32 %v856_v23, %v855_v25 }
 0x9a2   :  { %v858_v28 = vsub.f32 %v857_v26, %v4209_v55  ;;  %v5887_v26 = vmov 4  }
 0x9a3   :  { %3452 = vset.pattern.permute.xlu1 %v5887_v26 }
 0x9a4   :  { %v863_v48 = vmul.f32 %v861_v30, %v858_v28 }
 0x9a5   :  { %v674_v31 = vpop.permute.xlu1 %673 }
 0x9a6   :  { %v4308_v32 = vadd.f32 %v863_v48, %v4209_v55  ;;  %3320 = vmatmul.msk.f32.vlgmr.msra.gmra.mxu1 %vm501_vm15, %v674_v31  ;;  %v318_v55 = vpop.f32.mrf.mxu1 }
 0x9a7   :  { %908 = vmatpush.msra.mxu1 %v4058_v60 }
 0x9a8   :  { %892 = vrot.lane.b32.xlu0 %v4308_v32, %s3746_s29  ;;  %v4340_v25 = vmul.f32 %v4308_v32, %v861_v30 }
 0x9a9   :  { %909 = vmatpush.msra.mxu1 %v4071_v63 }
 0x9ab   :  { %910 = vmatpush.msra.mxu1 %v4078_v1 }
 0x9ad   :  { %911 = vmatpush.msra.mxu1 %v4093_v4 }
 0x9ae   :  { %3323 = vmatmul.msk.f32.vlgmr.msrb.gmra.mxu1 %vm501_vm15, %v771_v44  ;;  %v4323_v33 = vpop.f32.mrf.mxu1 }
 0x9af   :  { %1102 = vmatpush.msrb.mxu1 %v4058_v60 }
 0x9b1   :  { %1103 = vmatpush.msrb.mxu1 %v4071_v63 }
 0x9b3   :  { %1104 = vmatpush.msrb.mxu1 %v4078_v1 }
 0x9b5   :  { %1105 = vmatpush.msrb.mxu1 %v4093_v4  ;;  %v319_v4 = vadd.f32 %v4152_v24, %v318_v55 }
 0x9b6   :  { %v4325_v34 = vpop.f32.mrf.mxu1 }
 0x9be   :  { %v4327_v36 = vpop.f32.mrf.mxu1 }
 0x9c6   :  { %v4329_v37 = vpop.f32.mrf.mxu1 }
 0xa1a   :  { %v893_v49 = vpop.permute.xlu0 %892 }
 0xa1b   :  { %3327 = vmatmul.msk.f32.vlgmr.msra.gmra.mxu1 %vm501_vm15, %v893_v49 }
 0xa23   :  { %v4331_v38 = vpop.f32.mrf.mxu1 }
 0xa2b   :  { %v4333_v60 = vpop.f32.mrf.mxu1 }
 0xa98   :  { %v913_v63 = vpop.f32.mrf.mxu1 }
 0xa99   :  { %v914_v1 = vadd.f32 %v4145_v21, %v913_v63 }
 0xa9b   :  { %937 = vrot.lane.b32.xlu1 %v914_v1, %s3745_s0  ;;  %v916_v39 = vadd.f32 %v914_v1, %v319_v4 }
 0xa9d   :  { %v3328_v40 = vmul.f32 -1.442695, %v916_v39 }
 0xa9f   :  { %3538 = vpow2.f32 %v3328_v40 }
 0xaa3   :  { %957 = vperm.xlu1 %3452, %v3980_v29  }
 0xaa5   :  { %v3539_v41 = vpop.eup %3538 }
 0xaa6   :  { %v920_v42 = vadd.f32 1.0, %v3539_v41 }
 0xaa8   :  { %3540 = vrcp.f32 %v920_v42  ;;  %v932_v58 = vand.u32 2147483648, %v920_v42  ;;  %vm926_vm4 = vweird.f32 %v920_v42  ;;  %v930_v59 = vand.u32 2147483647, %v920_v42 }
 0xaaa   :  { %v933_v62 = vor.u32 1.1754944e-38, %v932_v58  ;;  %vm931_vm6 = vcmp.eq.f32.partialorder %v930_v59, 8.507059e+37 }
 0xaae   :  { %v3541_v43 = vpop.eup %3540 }
 0xaaf   :  { %v922_v46 = vmul.f32 %v3541_v43, %v920_v42  ;;  %vm927_vm3 = vweird.f32 %v3541_v43 }
 0xab0   :  { %vm928_vm5 = vmor %vm926_vm4, %vm927_vm3 }
 0xab1   :  { %v923_v47 = vsub.f32 1.0, %v922_v46  ;;  %v322_v46 = vadd.f32 %v4152_v24, %v4323_v33 }
 0xab3   :  { %v924_v50 = vmul.f32 %v3541_v43, %v923_v47 }
 0xab5   :  { %v925_v52 = vadd.f32 %v3541_v43, %v924_v50 }
 0xab7   :  { %v929_v61 = vsel %vm928_vm5, %v3541_v43, %v925_v52  ;;  %vm1304_vm5 = vcmask 523264  }
 0xab8   :  { %v934_v22 = vsel %vm931_vm6, %v933_v62, %v929_v61  ;;  %vm1306_vm6 = vcmask 785408  }
 0xab9   :  { %v947_v30 = vsub.f32 1.0, %v934_v22  ;;  %v953_v29 = vmul.f32 %v934_v22, %v4308_v32 }
 0xb0d   :  { %v938_v7 = vpop.permute.xlu1 %937 }
 0xb0e   :  { %v940_v23 = vmul.f32 %v938_v7, %v934_v22 }
 0xb10   :  { %942 = vrot.lane.b32.xlu2 %v940_v23, %s3745_s0 }
 0xb15   :  { %v4353_v1 = vpop.permute.xlu1 %957 }
 0xb18   :  { %867 = vrot.lane.b32.xlu2 %v4340_v25, %s3746_s29 }
 0xb6a   :  { %v943_v28 = vpop.permute.xlu2 %942 }
 0xb6b   :  { %v945_v48 = vadd.f32 %v943_v28, %v319_v4 }
 0xb6d   :  { %3542 = vtanh.f32 %v945_v48  ;;  %v5891_v48 = vmov 5  }
 0xb6e   :  { %3453 = vset.pattern.permute.xlu1 %v5891_v48 }
 0xb72   :  { %v868_v31 = vpop.permute.xlu2 %867 }
 0xb73   :  { %v3543_v44 = vpop.eup %3542  ;;  %3326 = vmatmul.msk.f32.vlgmr.msrb.gmra.mxu2 %vm501_vm15, %v868_v31  ;;  %v4378_v31 = vld [vmem:[%s6004_s9] sm:$0xff] }
 0xb74   :  { %949 = vrot.lane.b32.xlu0 %v3543_v44, %s3746_s29  ;;  %1077 = vmatpush.msrb.mxu2 %v4252_v53 }
 0xb76   :  { %1078 = vmatpush.msrb.mxu2 %v4259_v56 }
 0xb78   :  { %1079 = vmatpush.msrb.mxu2 %v4264_v54 }
 0xb7a   :  { %1080 = vmatpush.msrb.mxu2 %v4272_v57 }
 0xbe6   :  { %v950_v49 = vpop.permute.xlu0 %949 }
 0xbe7   :  { %v952_v55 = vmul.f32 %v950_v49, %v947_v30 }
 0xbe9   :  { %v954_v63 = vadd.f32 %v953_v29, %v952_v55 }
 0xbeb   :  { %v955_v4 = vsub.f32 %v954_v63, %v4308_v32 }
 0xbed   :  { %v960_v39 = vmul.f32 %v4353_v1, %v955_v4 }
 0xbef   :  { %v4358_v40 = vadd.f32 %v960_v39, %v4308_v32 }
 0xbf1   :  { %989 = vrot.lane.b32.xlu0 %v4358_v40, %s3746_s29 }
 0xbf6   :  { %v4367_v42 = vpop.f32.mrf.mxu2 }
 0xc63   :  { %v990_v41 = vpop.permute.xlu0 %989 }
 0xc64   :  { %3330 = vmatmul.msk.f32.vlgmr.msra.gmra.mxu2 %vm501_vm15, %v990_v41 }
 0xc65   :  { %1271 = vmatpush.msra.mxu2 %v4252_v53 }
 0xc67   :  { %1272 = vmatpush.msra.mxu2 %v4259_v56 }
 0xc69   :  { %1273 = vmatpush.msra.mxu2 %v4264_v54 }
 0xc6b   :  { %1274 = vmatpush.msra.mxu2 %v4272_v57 }
 0xce7   :  { %v1010_v43 = vpop.f32.mrf.mxu2 }
 0xce8   :  { %v1011_v32 = vadd.f32 %v4145_v21, %v1010_v43 }
 0xcea   :  { %1034 = vrot.lane.b32.xlu1 %v1011_v32, %s3745_s0  ;;  %v1013_v47 = vadd.f32 %v1011_v32, %v322_v46 }
 0xcec   :  { %v3331_v50 = vmul.f32 -1.442695, %v1013_v47 }
 0xcee   :  { %3544 = vpow2.f32 %v3331_v50 }
 0xcf2   :  { %1054 = vperm.xlu1 %3453, %v4378_v31  }
 0xcf4   :  { %v3545_v53 = vpop.eup %3544 }
 0xcf5   :  { %v1017_v52 = vadd.f32 1.0, %v3545_v53 }
 0xcf7   :  { %3546 = vrcp.f32 %v1017_v52  ;;  %v1029_v61 = vand.u32 2147483648, %v1017_v52  ;;  %vm1023_vm8 = vweird.f32 %v1017_v52  ;;  %v1027_v62 = vand.u32 2147483647, %v1017_v52 }
 0xcf9   :  { %v1030_v22 = vor.u32 1.1754944e-38, %v1029_v61  ;;  %vm1028_vm11 = vcmp.eq.f32.partialorder %v1027_v62, 8.507059e+37 }
 0xcfa   :  { %3459 = vset.pattern.permute.xlu1 %v5887_v26 }
 0xcfd   :  { %v3547_v56 = vpop.eup %3546 }
 0xcfe   :  { %v1019_v54 = vmul.f32 %v3547_v56, %v1017_v52  ;;  %vm1024_vm7 = vweird.f32 %v3547_v56  ;;  %v325_v52 = vadd.f32 %v4152_v24, %v4325_v34 }
 0xcff   :  { %vm1025_vm9 = vmor %vm1023_vm8, %vm1024_vm7  ;;  %vm1432_vm7 = vcmask 64512  }
 0xd00   :  { %v1020_v58 = vsub.f32 1.0, %v1019_v54 }
 0xd02   :  { %v1021_v57 = vmul.f32 %v3547_v56, %v1020_v58 }
 0xd04   :  { %v1022_v59 = vadd.f32 %v3547_v56, %v1021_v57 }
 0xd06   :  { %v1026_v7 = vsel %vm1025_vm9, %v3547_v56, %v1022_v59  ;;  %v5899_v59 = vmov 6  }
 0xd07   :  { %v1031_v23 = vsel %vm1028_vm11, %v1030_v22, %v1026_v7  ;;  %3454 = vset.pattern.permute.xlu0 %v5899_v59  ;;  %v4718_v59 = vld [vmem:[%s5868_s15 + $0xc0] sm:$0xff] }
 0xd08   :  { %v1044_v29 = vsub.f32 1.0, %v1031_v23  ;;  %v1050_v63 = vmul.f32 %v1031_v23, %v4358_v40 }
 0xd5c   :  { %v1035_v33 = vpop.permute.xlu1 %1034 }
 0xd5d   :  { %v1037_v28 = vmul.f32 %v1035_v33, %v1031_v23 }
 0xd5f   :  { %1039 = vrot.lane.b32.xlu2 %v1037_v28, %s3745_s0 }
 0xd64   :  { %v4384_v41 = vpop.permute.xlu1 %1054 }
 0xdb9   :  { %v1040_v44 = vpop.permute.xlu2 %1039 }
 0xdba   :  { %v1042_v30 = vadd.f32 %v1040_v44, %v322_v46 }
 0xdbc   :  { %3548 = vtanh.f32 %v1042_v30 }
 0xdc2   :  { %v3549_v49 = vpop.eup %3548 }
 0xdc3   :  { %1046 = vrot.lane.b32.xlu0 %v3549_v49, %s3746_s29 }
 0xe35   :  { %v1047_v55 = vpop.permute.xlu0 %1046 }
 0xe36   :  { %v1049_v4 = vmul.f32 %v1047_v55, %v1044_v29 }
 0xe38   :  { %v1051_v39 = vadd.f32 %v1050_v63, %v1049_v4 }
 0xe3a   :  { %v1052_v43 = vsub.f32 %v1051_v39, %v4358_v40 }
 0xe3c   :  { %v1057_v32 = vmul.f32 %v4384_v41, %v1052_v43 }
 0xe3e   :  { %v4389_v47 = vadd.f32 %v1057_v32, %v4358_v40 }
 0xe40   :  { %1086 = vrot.lane.b32.xlu2 %v4389_v47, %s3746_s29 }
 0xe9a   :  { %v1087_v46 = vpop.permute.xlu2 %1086 }
 0xe9b   :  { %3333 = vmatmul.msk.f32.vlgmr.msrb.gmra.mxu1 %vm501_vm15, %v1087_v46 }
 0xf18   :  { %v1107_v50 = vpop.f32.mrf.mxu1 }
 0xf19   :  { %v1108_v53 = vadd.f32 %v4145_v21, %v1107_v50 }
 0xf1b   :  { %1131 = vrot.lane.b32.xlu0 %v1108_v53, %s3745_s0  ;;  %v1110_v56 = vadd.f32 %v1108_v53, %v325_v52 }
 0xf1d   :  { %v3334_v54 = vmul.f32 -1.442695, %v1110_v56 }
 0xf1f   :  { %3550 = vpow2.f32 %v3334_v54 }
 0xf23   :  { %1151 = vperm.xlu0 %3454, %v4378_v31  }
 0xf25   :  { %v3551_v58 = vpop.eup %3550 }
 0xf26   :  { %v1114_v57 = vadd.f32 1.0, %v3551_v58 }
 0xf28   :  { %3552 = vrcp.f32 %v1114_v57  ;;  %v1126_v23 = vand.u32 2147483648, %v1114_v57  ;;  %vm1120_vm13 = vweird.f32 %v1114_v57  ;;  %v1124_v34 = vand.u32 2147483647, %v1114_v57 }
 0xf2a   :  { %v1127_v44 = vor.u32 1.1754944e-38, %v1126_v23  ;;  %vm1125_vm0 = vcmp.eq.f32.partialorder %v1124_v34, 8.507059e+37  ;;  %v5901_v34 = vmov 7  }
 0xf2b   :  { %3455 = vset.pattern.permute.xlu0 %v5901_v34  ;;  %v4725_v34 = vld [vmem:[%s5868_s15 + $0xb8] sm:$0xff] }
 0xf2c   :  { %1248 = vperm.xlu0 %3455, %v4378_v31   ;;  %6034 = vst [vmem:[#allocation26_spill] sm:$0xff] %v4725_v34 }
 0xf2e   :  { %v3553_v61 = vpop.eup %3552 }
 0xf2f   :  { %v1116_v62 = vmul.f32 %v3553_v61, %v1114_v57  ;;  %vm1121_vm12 = vweird.f32 %v3553_v61 }
 0xf30   :  { %vm1122_vm14 = vmor %vm1120_vm13, %vm1121_vm12 }
 0xf31   :  { %v1117_v7 = vsub.f32 1.0, %v1116_v62  ;;  %v328_v62 = vadd.f32 %v4152_v24, %v4327_v36 }
 0xf33   :  { %v1118_v22 = vmul.f32 %v3553_v61, %v1117_v7 }
 0xf34   :  { %3456 = vset.pattern.permute.xlu0 %v5895_v0  ;;  %v4702_v0 = vld [vmem:[%s5868_s15 + $0xd0] sm:$0xff] }
 0xf35   :  { %v1119_v33 = vadd.f32 %v3553_v61, %v1118_v22 }
 0xf37   :  { %v1123_v28 = vsel %vm1122_vm14, %v3553_v61, %v1119_v33 }
 0xf38   :  { %v1128_v49 = vsel %vm1125_vm0, %v1127_v44, %v1123_v28 }
 0xf39   :  { %v1141_v39 = vsub.f32 1.0, %v1128_v49  ;;  %v1147_v32 = vmul.f32 %v1128_v49, %v4389_v47 }
 0xf8d   :  { %v1132_v30 = vpop.permute.xlu0 %1131 }
 0xf8e   :  { %v1134_v29 = vmul.f32 %v1132_v30, %v1128_v49 }
 0xf90   :  { %1136 = vrot.lane.b32.xlu1 %v1134_v29, %s3745_s0 }
 0xf95   :  { %v1152_v53 = vpop.permute.xlu0 %1151 }
0x1002   :  { %v1137_v55 = vpop.permute.xlu1 %1136 }
0x1003   :  { %v1139_v63 = vadd.f32 %v1137_v55, %v325_v52 }
0x1005   :  { %3554 = vtanh.f32 %v1139_v63 }
0x100b   :  { %v3555_v4 = vpop.eup %3554 }
0x100c   :  { %1143 = vrot.lane.b32.xlu2 %v3555_v4, %s3746_s29 }
0x1066   :  { %v1144_v43 = vpop.permute.xlu2 %1143 }
0x1067   :  { %v1146_v46 = vmul.f32 %v1144_v43, %v1141_v39 }
0x1069   :  { %v1148_v50 = vadd.f32 %v1147_v32, %v1146_v46  ;;  %v4421_v46 = vmul.f32 %v4358_v40, %v4353_v1  ;;  %v1314_v1 = vld [vmem:[%s5864_s10 + $0x18] sm:$0xff]  ;;  %v1313_v40 = vld [vmem:[%s5864_s10 + $0x10] sm:$0xff] }
0x106a   :  { %1336 = vmatpush.msra.mxu1 %v1314_v1  ;;  %v4530_v1 = vld [vmem:[%s5867_s18 + $0x18] sm:$0xff] }
0x106b   :  { %v1149_v56 = vsub.f32 %v1148_v50, %v4389_v47 }
0x106c   :  { %1337 = vmatpush.msra.mxu1 %v1313_v40  ;;  %v4535_v40 = vld [vmem:[%s5867_s18 + $0x10] sm:$0xff] }
0x106d   :  { %v1154_v54 = vmul.f32 %v1152_v53, %v1149_v56  ;;  %v4433_v56 = vld [vmem:[%s5863_s13] ss:$0 sm:$0xff] }
0x106e   :  { %v598_v2 = vadd.f32 %v4433_v56, %v4329_v37 }
0x106f   :  { %v4405_v58 = vadd.f32 %v1154_v54, %v4389_v47  ;;  %v792_v54 = vadd.f32 %v4433_v56, %v4333_v60  ;;  %v1311_v60 = vld [vmem:[%s5864_s10] sm:$0xff] }
0x1071   :  { %1183 = vrot.lane.b32.xlu1 %v4405_v58, %s3746_s29  ;;  %v4426_v50 = vmul.f32 %v4405_v58, %v1152_v53  ;;  %v1312_v53 = vld [vmem:[%s5864_s10 + $0x8] sm:$0xff]  ;;  %s3754_s10 = smov 32  }
0x1072   :  { %1338 = vmatpush.msra.mxu1 %v1312_v53  ;;  %v4542_v53 = vld [vmem:[%s5867_s18 + $0x8] sm:$0xff] }
0x1074   :  { %1339 = vmatpush.msra.mxu1 %v1311_v60  ;;  %v4554_v60 = vld [vmem:[%s5868_s15 + $0x78] sm:$0xff] }
0x1076   :  { %1392 = vmatpush.msrb.mxu1 %v4554_v60 }
0x10e3   :  { %v1184_v52 = vpop.permute.xlu1 %1183 }
0x10e4   :  { %3336 = vmatmul.msk.f32.vlgmr.msrb.gmra.mxu0 %vm501_vm15, %v1184_v52 }
0x1161   :  { %v1204_v57 = vpop.f32.mrf.mxu0 }
0x1162   :  { %v1205_v61 = vadd.f32 %v4145_v21, %v1204_v57 }
0x1164   :  { %1228 = vrot.lane.b32.xlu2 %v1205_v61, %s3745_s0  ;;  %v1207_v7 = vadd.f32 %v1205_v61, %v328_v62 }
0x1166   :  { %v3337_v22 = vmul.f32 -1.442695, %v1207_v7 }
0x1168   :  { %3556 = vpow2.f32 %v3337_v22  ;;  %v1249_v22 = vpop.permute.xlu0 %1248 }
0x116e   :  { %v3557_v33 = vpop.eup %3556 }
0x116f   :  { %v1211_v23 = vadd.f32 1.0, %v3557_v33 }
0x1171   :  { %3558 = vrcp.f32 %v1211_v23  ;;  %v1223_v24 = vand.u32 2147483648, %v1211_v23  ;;  %vm1217_vm2 = vweird.f32 %v1211_v23  ;;  %v1221_v36 = vand.u32 2147483647, %v1211_v23 }
0x1173   :  { %v1224_v55 = vor.u32 1.1754944e-38, %v1223_v24  ;;  %vm1222_vm4 = vcmp.eq.f32.partialorder %v1221_v36, 8.507059e+37  ;;  %v889_v24 = vadd.f32 %v4433_v56, %v4367_v42 }
0x1177   :  { %v3559_v28 = vpop.eup %3558 }
0x1178   :  { %v1213_v44 = vmul.f32 %v3559_v28, %v1211_v23  ;;  %vm1218_vm1 = vweird.f32 %v3559_v28 }
0x1179   :  { %vm1219_vm3 = vmor %vm1217_vm2, %vm1218_vm1 }
0x117a   :  { %v1214_v21 = vsub.f32 1.0, %v1213_v44 }
0x117c   :  { %v1215_v30 = vmul.f32 %v3559_v28, %v1214_v21 }
0x117e   :  { %v1216_v49 = vadd.f32 %v3559_v28, %v1215_v30 }
0x1180   :  { %v1220_v29 = vsel %vm1219_vm3, %v3559_v28, %v1216_v49  ;;  %v4461_v49 = vmul.f32 %v4389_v47, %v4384_v41 }
0x1181   :  { %v1225_v4 = vsel %vm1222_vm4, %v1224_v55, %v1220_v29 }
0x1182   :  { %v1238_v52 = vsub.f32 1.0, %v1225_v4  ;;  %v1244_v61 = vmul.f32 %v1225_v4, %v4405_v58 }
0x11be   :  { %v1229_v63 = vpop.permute.xlu2 %1228 }
0x11bf   :  { %v1231_v39 = vmul.f32 %v1229_v63, %v1225_v4  ;;  %v4487_v63 = vld [vmem:[%s5866_s14 + $0x38] sm:$0xff]  ;;  %v4494_v4 = vld [vmem:[%s5866_s14 + $0x20] sm:$0xff] }
0x11c0   :  { %6027 = vst [vmem:[#allocation19_spill] sm:$0xff] %v4487_v63  ;;  %1380 = vmatpush.msra.mxu0 %v4487_v63 }
0x11c1   :  { %1233 = vrot.lane.b32.xlu1 %v1231_v39, %s3745_s0  ;;  %6028 = vst [vmem:[#allocation20_spill] sm:$0xff] %v4494_v4  ;;  %v4499_v39 = vld [vmem:[%s5866_s14 + $0x28] sm:$0xff] }
0x11c2   :  { %6029 = vst [vmem:[#allocation21_spill] sm:$0xff] %v4499_v39  ;;  %1381 = vmatpush.msra.mxu0 %v4499_v39 }
0x1233   :  { %v1234_v31 = vpop.permute.xlu1 %1233 }
0x1234   :  { %v1236_v43 = vadd.f32 %v1234_v31, %v328_v62  ;;  %v4504_v31 = vld [vmem:[%s5866_s14 + $0x10] sm:$0xff] }
0x1235   :  { %6030 = vst [vmem:[#allocation22_spill] sm:$0xff] %v4504_v31 }
0x1236   :  { %3560 = vtanh.f32 %v1236_v43  ;;  %v4509_v43 = vld [vmem:[%s5866_s14 + $0x18] sm:$0xff] }
0x1237   :  { %6031 = vst [vmem:[#allocation23_spill] sm:$0xff] %v4509_v43  ;;  %1382 = vmatpush.msra.mxu0 %v4509_v43 }
0x123c   :  { %v3561_v32 = vpop.eup %3560 }
0x123d   :  { %1240 = vrot.lane.b32.xlu2 %v3561_v32, %s3746_s29  ;;  %v4516_v32 = vld [vmem:[%s5866_s14] sm:$0xff] }
0x123e   :  { %6032 = vst [vmem:[#allocation24_spill] sm:$0xff] %v4516_v32 }
0x1245   :  { %964 = vrot.lane.b32.xlu2 %v4421_v46, %s3746_s29 }
0x124d   :  { %1158 = vrot.lane.b32.xlu2 %v4426_v50, %s3746_s29 }
0x1255   :  { %1284 = vrot.lane.b32.xlu2 %v792_v54, %s3745_s0  ;;  %v4521_v54 = vld [vmem:[%s5866_s14 + $0x8] sm:$0xff] }
0x1256   :  { %6033 = vst [vmem:[#allocation25_spill] sm:$0xff] %v4521_v54  ;;  %1383 = vmatpush.msra.mxu0 %v4521_v54 }
0x1258   :  { %1534 = vmatpush.msrb.mxu0 %v4530_v1 }
0x125a   :  { %1535 = vmatpush.msrb.mxu0 %v4535_v40 }
0x125c   :  { %1536 = vmatpush.msrb.mxu0 %v4542_v53 }
0x1297   :  { %v1241_v57 = vpop.permute.xlu2 %1240 }
0x1298   :  { %v1243_v62 = vmul.f32 %v1241_v57, %v1238_v52  ;;  %v4548_v52 = vld [vmem:[%s5867_s18] sm:$0xff]  ;;  %v4559_v57 = vld [vmem:[%s5868_s15 + $0x70] sm:$0xff] }
0x1299   :  { %1537 = vmatpush.msrb.mxu0 %v4548_v52  ;;  %1393 = vmatpush.msrb.mxu1 %v4559_v57 }
0x129a   :  { %v1245_v7 = vadd.f32 %v1244_v61, %v1243_v62  ;;  %v4565_v61 = vld [vmem:[%s5868_s15 + $0x68] sm:$0xff]  ;;  %v3511_v62 = vld [vmem:[%s5865_s11] ss:$0 sm:$0xff] }
0x129b   :  { %1394 = vmatpush.msrb.mxu1 %v4565_v61 }
0x129c   :  { %v1246_v33 = vsub.f32 %v1245_v7, %v4405_v58  ;;  %v4574_v7 = vld [vmem:[%s5868_s15 + $0x60] sm:$0xff] }
0x129d   :  { %1395 = vmatpush.msrb.mxu1 %v4574_v7 }
0x129e   :  { %v1251_v23 = vmul.f32 %v1249_v22, %v1246_v33 }
0x129f   :  { %v965_v28 = vpop.permute.xlu2 %964 }
0x12a0   :  { %v1252_v44 = vadd.f32 %v1251_v23, %v4405_v58  ;;  %3329 = vmatmul.msk.f32.vlgmr.msrb.gmra.mxu3 %vm501_vm15, %v965_v28  ;;  %v695_v58 = vadd.f32 %v4433_v56, %v4331_v38  ;;  %v4482_v38 = vld [vmem:[%s5866_s14 + $0x30] sm:$0xff] }
0x12a1   :  { %6026 = vst [vmem:[#allocation18_spill] sm:$0xff] %v4482_v38  ;;  %1360 = vmatpush.msrb.mxu3 %v4482_v38  ;;  %v4586_v28 = vld [vmem:[%s5868_s15 + $0x50] sm:$0xff] }
0x12a2   :  { %v4454_v21 = vmul.f32 %v1252_v44, %v1249_v22  ;;  %1320 = vrot.lane.b32.xlu1 %v1252_v44, %s3746_s29  ;;  %v4580_v22 = vld [vmem:[%s5868_s15 + $0x58] sm:$0xff]  ;;  %v4592_v44 = vld [vmem:[%s5868_s15 + $0x48] sm:$0xff] }
0x12a3   :  { %1361 = vmatpush.msrb.mxu3 %v4494_v4  ;;  %1396 = vmatpush.msrb.mxu1 %v4580_v22 }
0x12a4   :  { %1255 = vrot.lane.b32.xlu0 %v4454_v21, %s3746_s29 }
0x12a5   :  { %1362 = vmatpush.msrb.mxu3 %v4504_v31  ;;  %1397 = vmatpush.msrb.mxu1 %v4586_v28 }
0x12a7   :  { %v1159_v30 = vpop.permute.xlu2 %1158  ;;  %1363 = vmatpush.msrb.mxu3 %v4516_v32  ;;  %1398 = vmatpush.msrb.mxu1 %v4592_v44 }
0x12a8   :  { %3335 = vmatmul.msk.f32.vlgmr.msra.gmra.mxu3 %vm501_vm15, %v1159_v30  ;;  %v4598_v30 = vld [vmem:[%s5868_s15 + $0x40] sm:$0xff] }
0x12a9   :  { %1399 = vmatpush.msrb.mxu1 %v4598_v30 }
0x12aa   :  { %1061 = vrot.lane.b32.xlu1 %v4461_v49, %s3746_s29 }
0x12ac   :  { %1288 = vrot.lane.b32.xlu0 %v889_v24, %s3746_s29  ;;  %v4605_v24 = vld [vmem:[%s5868_s15 + $0x38] sm:$0xff] }
0x12ad   :  { %1400 = vmatpush.msrb.mxu1 %v4605_v24 }
0x12af   :  { %v1285_v18 = vpop.permute.xlu2 %1284 }
0x12b2   :  { %1280 = vrot.lane.b32.xlu1 %v695_v58, %s3754_s10 }
0x1314   :  { %v1321_v36 = vpop.permute.xlu1 %1320 }
0x1315   :  { %3339 = vmatmul.msk.f32.vlgmr.msra.gmra.mxu1 %vm501_vm15, %v1321_v36  ;;  %v4616_v36 = vld [vmem:[%s5868_s15 + $0x30] sm:$0xff] }
0x1316   :  { %v1256_v42 = vpop.permute.xlu0 %1255  ;;  %1401 = vmatpush.msrb.mxu1 %v4616_v36 }
0x131c   :  { %v1062_v41 = vpop.permute.xlu1 %1061 }
0x131d   :  { %3332 = vmatmul.msk.f32.vlgmr.msrb.gmra.mxu2 %vm501_vm15, %v1062_v41  ;;  %v4623_v41 = vld [vmem:[%s5868_s15 + $0x28] sm:$0xff] }
0x131e   :  { %1402 = vmatpush.msrb.mxu1 %v4623_v41  ;;  %v1289_v19 = vpop.permute.xlu0 %1288 }
0x1323   :  { %v4474_v47 = vpop.f32.mrf.mxu3 }
0x1324   :  { %v1281_v3 = vpop.permute.xlu1 %1280 }
0x1325   :  { %3338 = vmatmul.msk.f32.vlgmr.msra.gmra.mxu2 %vm501_vm15, %v1256_v42  ;;  %v1303_v17 = vsel %vm501_vm15, %v598_v2, %v1281_v3 }
0x1326   :  { %v1305_v16 = vsel %vm1304_vm5, %v1303_v17, %v1285_v18 }
0x132b   :  { %v1179_v29 = vpop.f32.mrf.mxu3 }
0x132c   :  { %v1180_v55 = vadd.f32 %v4433_v56, %v1179_v29  ;;  %v4630_v29 = vld [vmem:[%s5868_s15 + $0x20] sm:$0xff] }
0x132d   :  { %1403 = vmatpush.msrb.mxu1 %v4630_v29 }
0x132e   :  { %1296 = vrot.lane.b32.xlu2 %v1180_v55, %s3745_s0 }
0x1388   :  { %v1297_v37 = vpop.permute.xlu2 %1296 }
0x1392   :  { %v1341_v33 = vpop.f32.mrf.mxu1 }
0x1393   :  { %v1342_v23 = vadd.f32 %v3511_v62, %v1341_v33  ;;  %v4638_v62 = vld [vmem:[%s5868_s15 + $0x18] sm:$0xff]  ;;  %v4647_v33 = vld [vmem:[%s5868_s15 + $0x10] sm:$0xff] }
0x1394   :  { %1404 = vmatpush.msrb.mxu1 %v4638_v62 }
0x1395   :  { %3562 = vtanh.f32 %v1342_v23  ;;  %v4653_v23 = vld [vmem:[%s5868_s15 + $0xf8] sm:$0xff] }
0x1396   :  { %1405 = vmatpush.msrb.mxu1 %v4647_v33 }
0x139b   :  { %v4607_v58 = vpop.eup %3562 }
0x139c   :  { %3340 = vmatmul.msk.f32.vlgmr.msrb.gmra.mxu3 %vm501_vm15, %v4607_v58  ;;  %3341 = vmatmul.msk.f32.vlgmr.msra.gmra.mxu0 %vm501_vm15, %v4607_v58 }
0x139d   :  { %1621 = vmatpush.msra.mxu0 %v4487_v63 }
0x139f   :  { %1622 = vmatpush.msra.mxu0 %v4499_v39 }
0x13a0   :  { %v1082_v42 = vpop.f32.mrf.mxu2 }
0x13a1   :  { %v1083_v55 = vadd.f32 %v4433_v56, %v1082_v42  ;;  %1623 = vmatpush.msra.mxu0 %v4509_v43  ;;  %v4659_v42 = vld [vmem:[%s5868_s15 + $0x8] sm:$0xff] }
0x13a2   :  { %1406 = vmatpush.msrb.mxu1 %v4659_v42 }
0x13a3   :  { %1292 = vrot.lane.b32.xlu1 %v1083_v55, %s3754_s10  ;;  %1624 = vmatpush.msra.mxu0 %v4521_v54  ;;  %v4666_v55 = vld [vmem:[%s5868_s15 + $0xf0] sm:$0xff] }
0x13a4   :  { %3343 = vmatmul.msk.f32.vlgmr.msrb.gmra.mxu0 %vm501_vm15, %v4607_v58  ;;  %1407 = vmatpush.msrb.mxu1 %v4671_v10 }
0x13a5   :  { %1653 = vmatpush.msrb.mxu0 %v4653_v23 }
0x13a6   :  { %1412 = vmatpush.msra.mxu1 %v4653_v23 }
0x13a7   :  { %1654 = vmatpush.msrb.mxu0 %v4666_v55 }
0x13a8   :  { %v1276_v26 = vpop.f32.mrf.mxu2  ;;  %1413 = vmatpush.msra.mxu1 %v4666_v55 }
0x13a9   :  { %v1277_v48 = vadd.f32 %v4433_v56, %v1276_v26  ;;  %v4689_v26 = vld [vmem:[%s5868_s15 + $0xe0] sm:$0xff]  ;;  %1655 = vmatpush.msrb.mxu0 %v4683_v35 }
0x13aa   :  { %1414 = vmatpush.msra.mxu1 %v4683_v35 }
0x13ab   :  { %1300 = vrot.lane.b32.xlu0 %v1277_v48, %s3746_s29  ;;  %1656 = vmatpush.msrb.mxu0 %v4689_v26  ;;  %v4697_v48 = vld [vmem:[%s5868_s15 + $0xd8] sm:$0xff] }
0x13ac   :  { %1415 = vmatpush.msra.mxu1 %v4689_v26 }
0x13ad   :  { %1657 = vmatpush.msrb.mxu0 %v4697_v48 }
0x13ae   :  { %1416 = vmatpush.msra.mxu1 %v4697_v48 }
0x13af   :  { %1658 = vmatpush.msrb.mxu0 %v4702_v0 }
0x13b0   :  { %1417 = vmatpush.msra.mxu1 %v4702_v0 }
0x13b1   :  { %1659 = vmatpush.msrb.mxu0 %v4711_v13 }
0x13b2   :  { %1418 = vmatpush.msra.mxu1 %v4711_v13 }
0x13b3   :  { %1660 = vmatpush.msrb.mxu0 %v4718_v59 }
0x13b4   :  { %1419 = vmatpush.msra.mxu1 %v4718_v59 }
0x13b5   :  { %1661 = vmatpush.msrb.mxu0 %v4725_v34 }
0x13b6   :  { %1420 = vmatpush.msra.mxu1 %v4725_v34 }
0x13b7   :  { %1662 = vmatpush.msrb.mxu0 %v4731_v45 }
0x13b8   :  { %1421 = vmatpush.msra.mxu1 %v4731_v45 }
0x13b9   :  { %1663 = vmatpush.msrb.mxu0 %v4737_v20 }
0x13ba   :  { %1422 = vmatpush.msra.mxu1 %v4737_v20 }
0x13bb   :  { %1664 = vmatpush.msrb.mxu0 %v4744_v12 }
0x13bc   :  { %1423 = vmatpush.msra.mxu1 %v4744_v12 }
0x13bd   :  { %1665 = vmatpush.msrb.mxu0 %v4753_v11 }
0x13be   :  { %1424 = vmatpush.msra.mxu1 %v4753_v11  ;;  %v4784_v11 = vsel %vm1306_vm6, %v1305_v16, %v1289_v19 }
0x13bf   :  { %1666 = vmatpush.msrb.mxu0 %v4758_v9  ;;  %6042 = vst [vmem:[#allocation34_spill] sm:$0xff] %v4784_v11 }
0x13c0   :  { %1425 = vmatpush.msra.mxu1 %v4758_v9  ;;  %v986_v9 = vadd.f32 %v4433_v56, %v4474_v47 }
0x13c1   :  { %1667 = vmatpush.msrb.mxu0 %v4765_v8 }
0x13c2   :  { %1426 = vmatpush.msra.mxu1 %v4765_v8 }
0x13c3   :  { %1668 = vmatpush.msrb.mxu0 %v4772_v6 }
0x13c4   :  { %1427 = vmatpush.msra.mxu1 %v4772_v6 }
0x1415   :  { %v1293_v15 = vpop.permute.xlu1 %1292 }
0x1416   :  { %v1308_v8 = vsel %vm501_vm15, %v986_v9, %v1293_v15 }
0x1417   :  { %v1309_v45 = vsel %vm1304_vm5, %v1308_v8, %v1297_v37 }
0x1419   :  { %v1385_v2 = vpop.f32.mrf.mxu0 }
0x141d   :  { %v1301_v12 = vpop.permute.xlu0 %1300 }
0x141e   :  { %v4787_v34 = vsel %vm1306_vm6, %v1309_v45, %v1301_v12 }
0x141f   :  { %v1365_v6 = vpop.f32.mrf.mxu3  ;;  %6043 = vst [vmem:[#allocation35_spill] sm:$0xff] %v4787_v34  ;;  %v1389_v3 = vadd.f32 %v1385_v2, %v4787_v34 }
0x1420   :  { %v1388_v20 = vadd.f32 %v1365_v6, %v4784_v11  ;;  %v4801_v6 = vld [vmem:[%s5870_s3] sm:$0xff] }
0x1421   :  { %6044 = vst [vmem:[#allocation36_spill] sm:$0xff] %v4801_v6 }
0x1422   :  { %3564 = vtanh.f32 %v1388_v20 }
0x1423   :  { %3566 = vtanh.f32 %v1389_v3 }
0x1428   :  { %v3565_v17 = vpop.eup %3564 }
0x1429   :  { %1408 = vmatmul.f32.vlgmr.msrb.gmra.mxu1 %v3565_v17  ;;  %v3567_v9 = vpop.eup %3566  ;;  %v6045_v17 = vmov 7  }
0x142a   :  { %1771 = vmatpush.msrb.mxu1 %v4530_v1 }
0x142c   :  { %1772 = vmatpush.msrb.mxu1 %v4535_v40 }
0x142e   :  { %1773 = vmatpush.msrb.mxu1 %v4542_v53 }
0x1430   :  { %1774 = vmatpush.msrb.mxu1 %v4548_v52 }
0x1431   :  { %1428 = vmatmul.f32.vlgmr.msra.gmra.mxu1 %v3567_v9  ;;  %v6046_v9 = vmov 6  }
0x1432   :  { %1855 = vmatpush.msra.mxu1 %v4487_v63 }
0x1434   :  { %1856 = vmatpush.msra.mxu1 %v4499_v39 }
0x1436   :  { %1857 = vmatpush.msra.mxu1 %v4509_v43 }
0x1438   :  { %1858 = vmatpush.msra.mxu1 %v4521_v54 }
0x14a6   :  { %v1409_v45 = vpop.f32.mrf.mxu1 }
0x14a7   :  { %v1410_v8 = vadd.f32 %v1409_v45, %v4801_v6  ;;  %v6047_v45 = vmov 1  }
0x14ae   :  { %v1429_v12 = vpop.f32.mrf.mxu1 }
0x14af   :  { %v1430_v15 = vadd.f32 %v1429_v12, %v1410_v8  ;;  %v4812_v8 = vld [vmem:[%s5869_s20] ss:$0 sm:$0xff]  ;;  %v1539_v12 = vpop.f32.mrf.mxu0 }
0x14b0   :  { %6048 = vst [vmem:[#allocation37_spill] sm:$0xff] %v4812_v8 }
0x14b1   :  { %v1433_v16 = vsel %vm1432_vm7, %v1430_v15, -inf }
0x14b2   :  { %1434 = vmax.xlane.f32.xlu1 %v1433_v16  ;;  %v6049_v16 = vmov 0  }
0x1525   :  { %v1435_v18 = vpop.xlane.xlu1 %1434 }
0x1526   :  { %v1436_v19 = vsub.f32 %v1430_v15, %v1435_v18  ;;  %v4815_v15 = vadd.f32 %v4812_v8, %v1539_v12  ;;  %v6050_v18 = vmov 2  }
0x1528   :  { %v1437_v20 = vmul.f32 1.442695, %v1436_v19  ;;  %v6051_v19 = vmov 5  }
0x152a   :  { %3568 = vpow2.f32 %v1437_v20 }
0x1530   :  { %v3569_v56 = vpop.eup %3568 }
0x1531   :  { %v1439_v47 = vsel %vm1432_vm7, %v3569_v56, 0.0 }
0x1532   :  { %1440 = vadd.xlane.f32.xlu2 %v1439_v47  ;;  %v4832_v47 = vld [vmem:[%s5871_s17 + $0x10] sm:$0xff] }
0x15a5   :  { %v1441_v37 = vpop.xlane.xlu2 %1440 }
0x15a6   :  { %3570 = vrcp.f32 %v1441_v37  ;;  %v4846_v37 = vld [vmem:[%s5871_s17] sm:$0xff] }
0x15ac   :  { %v3571_v2 = vpop.eup %3570 }
0x15ad   :  { %v1443_v3 = vmul.f32 %v3571_v2, %v3569_v56  ;;  %v4827_v56 = vld [vmem:[%s5871_s17 + $0x18] sm:$0xff] }
0x15ae   :  { %1510 = vmatpush.msra.mxu3 %v4827_v56  ;;  %1750 = vmatpush.msrb.mxu2 %v4827_v56 }
0x15af   :  { %1470 = vperm.xlu1 %3459, %v1443_v3   ;;  %1464 = vperm.xlu2 %3451, %v1443_v3  }
0x15b0   :  { %1446 = vperm.xlu0 %3456, %v1443_v3   ;;  %1511 = vmatpush.msra.mxu3 %v4832_v47 }
0x15b1   :  { %1751 = vmatpush.msrb.mxu2 %v4832_v47 }
0x15b7   :  { %3462 = vset.pattern.permute.xlu1 %v6045_v17  ;;  %3461 = vset.pattern.permute.xlu2 %v6046_v9 }
0x15b8   :  { %3457 = vset.pattern.permute.xlu0 %v6047_v45  ;;  %1488 = vperm.xlu1 %3462, %v1443_v3  }
0x15b9   :  { %1482 = vperm.xlu2 %3461, %v1443_v3   ;;  %1452 = vperm.xlu0 %3457, %v1443_v3  }
0x15c0   :  { %3463 = vset.pattern.permute.xlu1 %v6049_v16 }
0x15c1   :  { %1563 = vrot.lane.b32.xlu2 %v4815_v15, %s3745_s0  ;;  %3458 = vset.pattern.permute.xlu0 %v6050_v18 }
0x15c2   :  { %1458 = vperm.xlu0 %3458, %v1443_v3  }
0x15c9   :  { %1579 = vrot.lane.b32.xlu2 %v4607_v58, %s3754_s10  ;;  %v4839_v58 = vld [vmem:[%s5871_s17 + $0x8] sm:$0xff] }
0x15ca   :  { %3460 = vset.pattern.permute.xlu0 %v6051_v19  ;;  %1512 = vmatpush.msra.mxu3 %v4839_v58 }
0x15cb   :  { %1476 = vperm.xlu0 %3460, %v1443_v3   ;;  %1752 = vmatpush.msrb.mxu2 %v4839_v58 }
0x15cc   :  { %1513 = vmatpush.msra.mxu3 %v4846_v37 }
0x15cd   :  { %1753 = vmatpush.msrb.mxu2 %v4846_v37 }
0x15ce   :  { %1601 = vmatpush.msrb.mxu3 %v4482_v38 }
0x15cf   :  { %1835 = vmatpush.msra.mxu2 %v4482_v38 }
0x15d0   :  { %1602 = vmatpush.msrb.mxu3 %v4494_v4 }
0x15d1   :  { %1836 = vmatpush.msra.mxu2 %v4494_v4 }
0x15d2   :  { %1603 = vmatpush.msrb.mxu3 %v4504_v31 }
0x15d3   :  { %1837 = vmatpush.msra.mxu2 %v4504_v31 }
0x15d4   :  { %1604 = vmatpush.msrb.mxu3 %v4516_v32 }
0x15d5   :  { %1838 = vmatpush.msra.mxu2 %v4516_v32 }
0x1609   :  { %v1465_v12 = vpop.permute.xlu2 %1464 }
0x160a   :  { %v1467_v17 = vmul.f32 %v1465_v12, %v4340_v25 }
0x1613   :  { %v1483_v6 = vpop.permute.xlu2 %1482 }
0x1614   :  { %v1485_v54 = vmul.f32 %v1483_v6, %v4426_v50 }
0x1621   :  { %v1471_v8 = vpop.permute.xlu1 %1470 }
0x1622   :  { %v1447_v20 = vpop.permute.xlu0 %1446 }
0x1623   :  { %v1449_v19 = vmul.f32 %v1447_v20, %v4244_v51 }
0x162a   :  { %v1489_v51 = vpop.permute.xlu1 %1488 }
0x162b   :  { %v1453_v2 = vpop.permute.xlu0 %1452  ;;  %v1491_v32 = vmul.f32 %v1489_v51, %v4454_v21  ;;  %v4892_v51 = vld [vmem:[%s6053_s28] ss:$0 sm:$0xff] }
0x162c   :  { %v1455_v3 = vmul.f32 %v1453_v2, %v4300_v5  ;;  %v1473_v5 = vmul.f32 %v1471_v8, %v4421_v46 }
0x162e   :  { %v1456_v16 = vadd.f32 %v1455_v3, %v1449_v19 }
0x1634   :  { %v1459_v9 = vpop.permute.xlu0 %1458 }
0x1635   :  { %v1461_v18 = vmul.f32 %v1459_v9, %v4236_v27 }
0x1637   :  { %v1462_v45 = vadd.f32 %v1461_v18, %v1456_v16 }
0x1639   :  { %v1468_v2 = vadd.f32 %v1467_v17, %v1462_v45 }
0x163b   :  { %v1474_v4 = vadd.f32 %v1473_v5, %v1468_v2  ;;  %v478_v5 = vadd.f32 %v4892_v51, %v4128_v14 }
0x163d   :  { %v1477_v31 = vpop.permute.xlu0 %1476 }
0x163e   :  { %v1479_v20 = vmul.f32 %v1477_v31, %v4461_v49 }
0x1640   :  { %v1480_v38 = vadd.f32 %v1479_v20, %v1474_v4 }
0x1642   :  { %v1486_v19 = vadd.f32 %v1485_v54, %v1480_v38 }
0x1644   :  { %v1492_v3 = vadd.f32 %v1491_v32, %v1486_v19  ;;  %v1564_v19 = vpop.permute.xlu2 %1563 }
0x1646   :  { %1494 = vrot.lane.b32.xlu0 %v1492_v3, %s3746_s29 }
0x16b8   :  { %v4869_v9 = vpop.permute.xlu0 %1494 }
0x16b9   :  { %6052 = vst [vmem:[#allocation38_spill] sm:$0xff] %v4869_v9  ;;  %3342 = vmatmul.msk.f32.vlgmr.msra.gmra.mxu3 %vm501_vm15, %v4869_v9 }
0x16ba   :  { %1633 = vmatpush.msra.mxu3 %v4554_v60 }
0x16bc   :  { %1634 = vmatpush.msra.mxu3 %v4559_v57 }
0x16be   :  { %1635 = vmatpush.msra.mxu3 %v4565_v61 }
0x16c0   :  { %1636 = vmatpush.msra.mxu3 %v4574_v7 }
0x16c2   :  { %1637 = vmatpush.msra.mxu3 %v4580_v22 }
0x16c4   :  { %1638 = vmatpush.msra.mxu3 %v4586_v28 }
0x16c6   :  { %1639 = vmatpush.msra.mxu3 %v4592_v44 }
0x16c8   :  { %1640 = vmatpush.msra.mxu3 %v4598_v30 }
0x16ca   :  { %1641 = vmatpush.msra.mxu3 %v4605_v24 }
0x16cc   :  { %1642 = vmatpush.msra.mxu3 %v4616_v36 }
0x16ce   :  { %1643 = vmatpush.msra.mxu3 %v4623_v41 }
0x16d0   :  { %1644 = vmatpush.msra.mxu3 %v4630_v29 }
0x16d2   :  { %1645 = vmatpush.msra.mxu3 %v4638_v62 }
0x16d4   :  { %1646 = vmatpush.msra.mxu3 %v4647_v33 }
0x16d6   :  { %1647 = vmatpush.msra.mxu3 %v4659_v42 }
0x16d8   :  { %1648 = vmatpush.msra.mxu3 %v4671_v10 }
0x173c   :  { %v1515_v38 = vpop.f32.mrf.mxu3 }
0x173d   :  { %v1518_v4 = vadd.f32 %v1515_v38, %v478_v5 }
0x173f   :  { %v1542_v31 = vadd.f32 %v4815_v15, %v1518_v4 }
0x1741   :  { %v3344_v32 = vmul.f32 -1.442695, %v1542_v31 }
0x1743   :  { %3572 = vpow2.f32 %v3344_v32 }
0x1749   :  { %v3573_v54 = vpop.eup %3572 }
0x174a   :  { %v1546_v6 = vadd.f32 1.0, %v3573_v54  ;;  %v1580_v54 = vpop.permute.xlu2 %1579 }
0x174c   :  { %3574 = vrcp.f32 %v1546_v6  ;;  %v1558_v16 = vand.u32 2147483648, %v1546_v6  ;;  %v1556_v12 = vand.u32 2147483647, %v1546_v6  ;;  %vm1552_vm9 = vweird.f32 %v1546_v6 }
0x174e   :  { %v1559_v14 = vor.u32 1.1754944e-38, %v1558_v16  ;;  %vm1557_vm12 = vcmp.eq.f32.partialorder %v1556_v12, 8.507059e+37  ;;  %v6056_v16 = vld [vmem:[#allocation27_spill] sm:$0xff]  ;;  %v6057_v12 = vld [vmem:[#allocation28_spill] sm:$0xff] }
0x1752   :  { %v3575_v17 = vpop.eup %3574 }
0x1753   :  { %v1548_v45 = vmul.f32 %v3575_v17, %v1546_v6  ;;  %vm1553_vm8 = vweird.f32 %v3575_v17 }
0x1754   :  { %vm1554_vm11 = vmor %vm1552_vm9, %vm1553_vm8 }
0x1755   :  { %v1549_v8 = vsub.f32 1.0, %v1548_v45 }
0x1757   :  { %v1550_v18 = vmul.f32 %v3575_v17, %v1549_v8 }
0x1759   :  { %v1551_v2 = vadd.f32 %v3575_v17, %v1550_v18 }
0x175b   :  { %v1555_v20 = vsel %vm1554_vm11, %v3575_v17, %v1551_v2  ;;  %v6058_v2 = vld [vmem:[#allocation29_spill] sm:$0xff] }
0x175c   :  { %v1560_v15 = vsel %vm1557_vm12, %v1559_v14, %v1555_v20  ;;  %v6059_v14 = vld [vmem:[#allocation30_spill] sm:$0xff]  ;;  %v6060_v20 = vld [vmem:[#allocation31_spill] sm:$0xff] }
0x175d   :  { %v1566_v3 = vmul.f32 %v1564_v19, %v1560_v15  ;;  %v1573_v32 = vsub.f32 1.0, %v1560_v15  ;;  %v1582_v8 = vmul.f32 %v1580_v54, %v1560_v15  ;;  %v6061_v19 = vld [vmem:[#allocation32_spill] sm:$0xff]  ;;  %v6062_v15 = vld [vmem:[#allocation33_spill] sm:$0xff] }
0x175f   :  { %1568 = vrot.lane.b32.xlu1 %v1566_v3, %s3745_s0 }
0x17d1   :  { %v1569_v5 = vpop.permute.xlu1 %1568 }
0x17d2   :  { %v1571_v38 = vadd.f32 %v1569_v5, %v1518_v4  ;;  %v6055_v4 = vld [vmem:[#allocation26_spill] sm:$0xff] }
0x17d4   :  { %3576 = vtanh.f32 %v1571_v38 }
0x17da   :  { %v3577_v31 = vpop.eup %3576 }
0x17db   :  { %1575 = vrot.lane.b32.xlu0 %v3577_v31, %s3746_s29 }
0x184d   :  { %v1576_v45 = vpop.permute.xlu0 %1575 }
0x184e   :  { %v1578_v6 = vmul.f32 %v1576_v45, %v1573_v32  ;;  %v6063_v45 = vld [vmem:[#allocation18_spill] sm:$0xff] }
0x1850   :  { %v4899_v18 = vadd.f32 %v1582_v8, %v1578_v6  ;;  %v6064_v8 = vld [vmem:[#allocation25_spill] sm:$0xff]  ;;  %v6065_v6 = vld [vmem:[#allocation20_spill] sm:$0xff] }
0x1852   :  { %1585 = vrot.lane.b32.xlu1 %v4899_v18, %s3746_s29 }
0x18c4   :  { %v4903_v17 = vpop.permute.xlu1 %1585 }
0x18c5   :  { %6054 = vst [vmem:[#allocation39_spill] sm:$0xff] %v4903_v17  ;;  %3345 = vmatmul.msk.f32.vlgmr.msrb.gmra.mxu3 %vm501_vm15, %v4903_v17  ;;  %3346 = vmatmul.msk.f32.vlgmr.msra.gmra.mxu0 %vm501_vm15, %v4903_v17 }
0x18c6   :  { %3348 = vmatmul.msk.f32.vlgmr.msrb.gmra.mxu1 %vm501_vm15, %v4903_v17  ;;  %2005 = vmatpush.msra.mxu0 %v4530_v1 }
0x18c7   :  { %1887 = vmatpush.msrb.mxu1 %v4653_v23  ;;  %1984 = vmatpush.msrb.mxu3 %v4827_v56 }
0x18c8   :  { %2006 = vmatpush.msra.mxu0 %v4535_v40 }
0x18c9   :  { %1888 = vmatpush.msrb.mxu1 %v4666_v55  ;;  %1985 = vmatpush.msrb.mxu3 %v4832_v47 }
0x18ca   :  { %2007 = vmatpush.msra.mxu0 %v4542_v53 }
0x18cb   :  { %1889 = vmatpush.msrb.mxu1 %v4683_v35  ;;  %1986 = vmatpush.msrb.mxu3 %v4839_v58 }
0x18cc   :  { %2008 = vmatpush.msra.mxu0 %v4548_v52 }
0x18cd   :  { %1890 = vmatpush.msrb.mxu1 %v4689_v26  ;;  %1987 = vmatpush.msrb.mxu3 %v4846_v37 }
0x18cf   :  { %1891 = vmatpush.msrb.mxu1 %v4697_v48 }
0x18d1   :  { %1892 = vmatpush.msrb.mxu1 %v4702_v0 }
0x18d3   :  { %1893 = vmatpush.msrb.mxu1 %v4711_v13 }
0x18d5   :  { %1894 = vmatpush.msrb.mxu1 %v4718_v59 }
0x18d7   :  { %1895 = vmatpush.msrb.mxu1 %v6055_v4 }
0x18d9   :  { %1896 = vmatpush.msrb.mxu1 %v6056_v16 }
0x18db   :  { %1897 = vmatpush.msrb.mxu1 %v6057_v12 }
0x18dd   :  { %1898 = vmatpush.msrb.mxu1 %v6058_v2 }
0x18df   :  { %1899 = vmatpush.msrb.mxu1 %v6059_v14 }
0x18e1   :  { %1900 = vmatpush.msrb.mxu1 %v6060_v20 }
0x18e3   :  { %1901 = vmatpush.msrb.mxu1 %v6061_v19 }
0x18e5   :  { %1902 = vmatpush.msrb.mxu1 %v6062_v15 }
0x1942   :  { %v1626_v3 = vpop.f32.mrf.mxu0 }
0x1943   :  { %v1630_v5 = vadd.f32 %v1626_v3, %v4787_v34  ;;  %v6066_v3 = vld [vmem:[#allocation22_spill] sm:$0xff] }
0x1945   :  { %3578 = vtanh.f32 %v1630_v5  ;;  %v6067_v5 = vld [vmem:[#allocation24_spill] sm:$0xff] }
0x1948   :  { %v1606_v38 = vpop.f32.mrf.mxu3 }
0x1949   :  { %v1629_v31 = vadd.f32 %v1606_v38, %v4784_v11 }
0x194b   :  { %v3579_v32 = vpop.eup %3578  ;;  %3580 = vtanh.f32 %v1629_v31  ;;  %v6068_v31 = vld [vmem:[#allocation36_spill] sm:$0xff] }
0x194c   :  { %1669 = vmatmul.f32.vlgmr.msrb.gmra.mxu0 %v3579_v32 }
0x194d   :  { %2089 = vmatpush.msrb.mxu0 %v4487_v63 }
0x194f   :  { %2090 = vmatpush.msrb.mxu0 %v4499_v39 }
0x1951   :  { %v3581_v54 = vpop.eup %3580  ;;  %2091 = vmatpush.msrb.mxu0 %v4509_v43 }
0x1952   :  { %1649 = vmatmul.f32.vlgmr.msra.gmra.mxu3 %v3581_v54 }
0x1953   :  { %2069 = vmatpush.msra.mxu3 %v6063_v45  ;;  %2092 = vmatpush.msrb.mxu0 %v6064_v8 }
0x1955   :  { %2070 = vmatpush.msra.mxu3 %v6065_v6 }
0x1957   :  { %2071 = vmatpush.msra.mxu3 %v6066_v3 }
0x1959   :  { %2072 = vmatpush.msra.mxu3 %v6067_v5 }
0x19c9   :  { %v1670_v9 = vpop.f32.mrf.mxu0 }
0x19d5   :  { %v1650_v38 = vpop.f32.mrf.mxu3 }
0x19d6   :  { %v1651_v32 = vadd.f32 %v1650_v38, %v6068_v31  ;;  %v6069_v38 = vmov 7  }
0x19d8   :  { %v1671_v17 = vadd.f32 %v1670_v9, %v1651_v32  ;;  %v6070_v9 = vmov 1   ;;  %v6075_v32 = vld [vmem:[#allocation17_spill] sm:$0xff] }
0x19da   :  { %v1673_v39 = vsel %vm1432_vm7, %v1671_v17, -inf }
0x19db   :  { %1674 = vmax.xlane.f32.xlu0 %v1673_v39  ;;  %v6071_v39 = vmov 2  }
0x1a4e   :  { %v1675_v43 = vpop.xlane.xlu0 %1674 }
0x1a4f   :  { %v1676_v54 = vsub.f32 %v1671_v17, %v1675_v43  ;;  %v6073_v43 = vmov 4   ;;  %v6074_v17 = vmov 0  }
0x1a51   :  { %v1677_v63 = vmul.f32 1.442695, %v1676_v54 }
0x1a53   :  { %3582 = vpow2.f32 %v1677_v63  ;;  %v6072_v63 = vmov 3  }
0x1a59   :  { %v3583_v45 = vpop.eup %3582 }
0x1a5a   :  { %v1679_v8 = vsel %vm1432_vm7, %v3583_v45, 0.0 }
0x1a5b   :  { %1680 = vadd.xlane.f32.xlu2 %v1679_v8 }
0x1ace   :  { %v1681_v6 = vpop.xlane.xlu2 %1680 }
0x1acf   :  { %3584 = vrcp.f32 %v1681_v6 }
0x1ad5   :  { %v3585_v3 = vpop.eup %3584 }
0x1ad6   :  { %v1683_v5 = vmul.f32 %v3585_v3, %v3583_v45 }
0x1ad8   :  { %1722 = vperm.xlu2 %3461, %v1683_v5   ;;  %1716 = vperm.xlu0 %3460, %v1683_v5  }
0x1ad9   :  { %1686 = vperm.xlu1 %3463, %v1683_v5  }
0x1ae0   :  { %3475 = vset.pattern.permute.xlu2 %v6069_v38 }
0x1ae1   :  { %3464 = vset.pattern.permute.xlu1 %v6070_v9  ;;  %v6076_v9 = vld [vmem:[#allocation16_spill] sm:$0xff] }
0x1ae2   :  { %1692 = vperm.xlu1 %3464, %v1683_v5  }
0x1aea   :  { %3465 = vset.pattern.permute.xlu1 %v6071_v39 }
0x1aeb   :  { %1698 = vperm.xlu1 %3465, %v1683_v5  }
0x1af3   :  { %3466 = vset.pattern.permute.xlu1 %v6072_v63 }
0x1af4   :  { %1704 = vperm.xlu1 %3466, %v1683_v5  }
0x1afc   :  { %3467 = vset.pattern.permute.xlu1 %v6073_v43 }
0x1afd   :  { %1710 = vperm.xlu1 %3467, %v1683_v5  }
0x1b05   :  { %3468 = vset.pattern.permute.xlu1 %v6069_v38 }
0x1b06   :  { %1728 = vperm.xlu1 %3468, %v1683_v5  }
0x1b0e   :  { %3469 = vset.pattern.permute.xlu1 %v6074_v17 }
0x1b32   :  { %v1723_v20 = vpop.permute.xlu2 %1722 }
0x1b4a   :  { %v1717_v15 = vpop.permute.xlu0 %1716 }
0x1b4b   :  { %v1687_v45 = vpop.permute.xlu1 %1686  ;;  %v1719_v19 = vmul.f32 %v1717_v15, %v4461_v49 }
0x1b4c   :  { %v1689_v39 = vmul.f32 %v1687_v45, %v6076_v9 }
0x1b54   :  { %v1693_v8 = vpop.permute.xlu1 %1692 }
0x1b55   :  { %v1695_v54 = vmul.f32 %v1693_v8, %v6075_v32  ;;  %v1725_v8 = vmul.f32 %v1723_v20, %v4426_v50 }
0x1b57   :  { %v1696_v63 = vadd.f32 %v1695_v54, %v1689_v39 }
0x1b5d   :  { %v1699_v6 = vpop.permute.xlu1 %1698 }
0x1b5e   :  { %v1701_v31 = vmul.f32 %v1699_v6, %v4236_v27 }
0x1b60   :  { %v1702_v43 = vadd.f32 %v1701_v31, %v1696_v63  ;;  %v1776_v31 = vpop.f32.mrf.mxu1  ;;  %v6077_v63 = vld [vmem:[#allocation37_spill] sm:$0xff] }
0x1b66   :  { %v1705_v3 = vpop.permute.xlu1 %1704 }
0x1b67   :  { %v1707_v11 = vmul.f32 %v1705_v3, %v4340_v25  ;;  %v1777_v3 = vadd.f32 %v6077_v63, %v1776_v31  ;;  %v6092_v31 = vld [vmem:[#allocation20_spill] sm:$0xff] }
0x1b69   :  { %v1708_v38 = vadd.f32 %v1707_v11, %v1702_v43 }
0x1b6f   :  { %v1711_v34 = vpop.permute.xlu1 %1710 }
0x1b70   :  { %v1713_v5 = vmul.f32 %v1711_v34, %v4421_v46  ;;  %v6079_v34 = vld [vmem:[#allocation10_spill] sm:$0xff] }
0x1b72   :  { %v1714_v17 = vadd.f32 %v1713_v5, %v1708_v38 }
0x1b74   :  { %v1720_v14 = vadd.f32 %v1719_v19, %v1714_v17 }
0x1b76   :  { %v1726_v45 = vadd.f32 %v1725_v8, %v1720_v14 }
0x1b78   :  { %v1729_v32 = vpop.permute.xlu1 %1728 }
0x1b79   :  { %v1731_v6 = vmul.f32 %v1729_v32, %v4454_v21 }
0x1b7b   :  { %v1732_v39 = vadd.f32 %v1731_v6, %v1726_v45 }
0x1b7d   :  { %1734 = vrot.lane.b32.xlu1 %v1732_v39, %s3746_s29 }
0x1b85   :  { %1800 = vrot.lane.b32.xlu1 %v1777_v3, %s3745_s0 }
0x1bef   :  { %v4966_v11 = vpop.permute.xlu1 %1734 }
0x1bf0   :  { %6078 = vst [vmem:[#allocation26_spill] sm:$0xff] %v4966_v11  ;;  %3347 = vmatmul.msk.f32.vlgmr.msrb.gmra.mxu2 %vm501_vm15, %v4966_v11  ;;  %v5300_v11 = vld [vmem:[%s5866_s14 + $0x28] sm:$0xff] }
0x1bf1   :  { %1867 = vmatpush.msrb.mxu2 %v4554_v60  ;;  %v481_v60 = vadd.f32 %v4892_v51, %v6079_v34  ;;  %v6094_v34 = vld [vmem:[#allocation24_spill] sm:$0xff] }
0x1bf3   :  { %1868 = vmatpush.msrb.mxu2 %v4559_v57 }
0x1bf5   :  { %1869 = vmatpush.msrb.mxu2 %v4565_v61 }
0x1bf7   :  { %1870 = vmatpush.msrb.mxu2 %v4574_v7  ;;  %v1801_v19 = vpop.permute.xlu1 %1800 }
0x1bf9   :  { %1871 = vmatpush.msrb.mxu2 %v4580_v22 }
0x1bfb   :  { %1872 = vmatpush.msrb.mxu2 %v4586_v28 }
0x1bfd   :  { %1873 = vmatpush.msrb.mxu2 %v4592_v44 }
0x1bff   :  { %1874 = vmatpush.msrb.mxu2 %v4598_v30 }
0x1c01   :  { %1875 = vmatpush.msrb.mxu2 %v4605_v24 }
0x1c03   :  { %1876 = vmatpush.msrb.mxu2 %v4616_v36 }
0x1c05   :  { %1877 = vmatpush.msrb.mxu2 %v4623_v41 }
0x1c07   :  { %1878 = vmatpush.msrb.mxu2 %v4630_v29 }
0x1c09   :  { %1879 = vmatpush.msrb.mxu2 %v4638_v62 }
0x1c0b   :  { %1880 = vmatpush.msrb.mxu2 %v4647_v33 }
0x1c0d   :  { %1881 = vmatpush.msrb.mxu2 %v4659_v42 }
0x1c0f   :  { %1882 = vmatpush.msrb.mxu2 %v4671_v10 }
0x1c73   :  { %v1755_v57 = vpop.f32.mrf.mxu2 }
0x1c74   :  { %v1758_v61 = vadd.f32 %v1755_v57, %v481_v60  ;;  %v6095_v57 = vld [vmem:[#allocation36_spill] sm:$0xff] }
0x1c76   :  { %v1779_v7 = vadd.f32 %v1777_v3, %v1758_v61  ;;  %v6093_v3 = vld [vmem:[#allocation22_spill] sm:$0xff] }
0x1c78   :  { %v3349_v22 = vmul.f32 -1.442695, %v1779_v7 }
0x1c7a   :  { %3586 = vpow2.f32 %v3349_v22 }
0x1c80   :  { %v3587_v28 = vpop.eup %3586 }
0x1c81   :  { %v1783_v44 = vadd.f32 1.0, %v3587_v28 }
0x1c83   :  { %3588 = vrcp.f32 %v1783_v44  ;;  %v1795_v41 = vand.u32 2147483648, %v1783_v44  ;;  %v1793_v62 = vand.u32 2147483647, %v1783_v44  ;;  %vm1789_vm14 = vweird.f32 %v1783_v44 }
0x1c85   :  { %v1796_v14 = vor.u32 1.1754944e-38, %v1795_v41  ;;  %vm1794_vm1 = vcmp.eq.f32.partialorder %v1793_v62, 8.507059e+37 }
0x1c89   :  { %v3589_v30 = vpop.eup %3588 }
0x1c8a   :  { %v1785_v24 = vmul.f32 %v3589_v30, %v1783_v44  ;;  %vm1790_vm13 = vweird.f32 %v3589_v30 }
0x1c8b   :  { %vm1791_vm0 = vmor %vm1789_vm14, %vm1790_vm13 }
0x1c8c   :  { %v1786_v36 = vsub.f32 1.0, %v1785_v24 }
0x1c8e   :  { %v1787_v29 = vmul.f32 %v3589_v30, %v1786_v36 }
0x1c90   :  { %v1788_v33 = vadd.f32 %v3589_v30, %v1787_v29 }
0x1c92   :  { %v1792_v20 = vsel %vm1791_vm0, %v3589_v30, %v1788_v33 }
0x1c93   :  { %v1797_v15 = vsel %vm1794_vm1, %v1796_v14, %v1792_v20  ;;  %v6096_v14 = vmov 0   ;;  %v6097_v20 = vmov 1  }
0x1c94   :  { %v1803_v38 = vmul.f32 %v1801_v19, %v1797_v15  ;;  %v1810_v54 = vsub.f32 1.0, %v1797_v15  ;;  %v1816_v8 = vmul.f32 %v1797_v15, %v4899_v18  ;;  %v6088_v18 = vld [vmem:[#allocation21_spill] sm:$0xff]  ;;  %v6098_v19 = vmov 2  }
0x1c95   :  { %v6099_v15 = vmov 3  }
0x1c96   :  { %1805 = vrot.lane.b32.xlu0 %v1803_v38, %s3745_s0  ;;  %v6100_v38 = vmov 4  }
0x1d08   :  { %v1806_v43 = vpop.permute.xlu0 %1805 }
0x1d09   :  { %v1808_v17 = vadd.f32 %v1806_v43, %v1758_v61  ;;  %v6101_v43 = vmov 6  }
0x1d0b   :  { %3590 = vtanh.f32 %v1808_v17  ;;  %v6102_v17 = vmov 7  }
0x1d11   :  { %v3591_v32 = vpop.eup %3590 }
0x1d12   :  { %1812 = vrot.lane.b32.xlu2 %v3591_v32, %s3746_s29 }
0x1d6c   :  { %v1813_v5 = vpop.permute.xlu2 %1812 }
0x1d6d   :  { %v1815_v45 = vmul.f32 %v1813_v5, %v1810_v54 }
0x1d6f   :  { %v4991_v6 = vadd.f32 %v1816_v8, %v1815_v45  ;;  %v6103_v45 = vld [vmem:[#allocation17_spill] sm:$0xff] }
0x1d71   :  { %1819 = vrot.lane.b32.xlu1 %v4991_v6, %s3746_s29 }
0x1de3   :  { %v4995_v39 = vpop.permute.xlu1 %1819 }
0x1de4   :  { %6080 = vst [vmem:[#allocation27_spill] sm:$0xff] %v4995_v39  ;;  %3350 = vmatmul.msk.f32.vlgmr.msra.gmra.mxu2 %vm501_vm15, %v4995_v39  ;;  %3351 = vmatmul.msk.f32.vlgmr.msra.gmra.mxu1 %vm501_vm15, %v4995_v39 }
0x1de5   :  { %3353 = vmatmul.msk.f32.vlgmr.msra.gmra.mxu0 %vm501_vm15, %v4995_v39  ;;  %2239 = vmatpush.msra.mxu1 %v4530_v1  ;;  %v6082_v1 = vld [vmem:[#allocation31_spill] sm:$0xff] }
0x1de6   :  { %2121 = vmatpush.msra.mxu0 %v4653_v23  ;;  %2218 = vmatpush.msra.mxu2 %v4827_v56  ;;  %v6086_v23 = vld [vmem:[#allocation34_spill] sm:$0xff] }
0x1de7   :  { %2240 = vmatpush.msra.mxu1 %v4535_v40  ;;  %v6083_v40 = vld [vmem:[#allocation32_spill] sm:$0xff] }
0x1de8   :  { %2122 = vmatpush.msra.mxu0 %v4666_v55  ;;  %2219 = vmatpush.msra.mxu2 %v4832_v47  ;;  %6112 = vst [vmem:[#allocation32_spill] sm:$0xff] %v5300_v11 }
0x1de9   :  { %2241 = vmatpush.msra.mxu1 %v4542_v53  ;;  %v6084_v53 = vld [vmem:[#allocation33_spill] sm:$0xff] }
0x1dea   :  { %2123 = vmatpush.msra.mxu0 %v4683_v35  ;;  %2220 = vmatpush.msra.mxu2 %v4839_v58  ;;  %v6081_v35 = vld [vmem:[#allocation30_spill] sm:$0xff] }
0x1deb   :  { %2242 = vmatpush.msra.mxu1 %v4548_v52 }
0x1dec   :  { %2124 = vmatpush.msra.mxu0 %v4689_v26  ;;  %2221 = vmatpush.msra.mxu2 %v4846_v37 }
0x1dee   :  { %2125 = vmatpush.msra.mxu0 %v4697_v48  ;;  %v6087_v48 = vld [vmem:[#allocation19_spill] sm:$0xff] }
0x1df0   :  { %2126 = vmatpush.msra.mxu0 %v4702_v0 }
0x1df2   :  { %2127 = vmatpush.msra.mxu0 %v4711_v13  ;;  %v6085_v13 = vld [vmem:[#allocation35_spill] sm:$0xff] }
0x1df4   :  { %2128 = vmatpush.msra.mxu0 %v4718_v59 }
0x1df6   :  { %2129 = vmatpush.msra.mxu0 %v6055_v4 }
0x1df8   :  { %2130 = vmatpush.msra.mxu0 %v6056_v16  ;;  %v6089_v16 = vld [vmem:[#allocation23_spill] sm:$0xff] }
0x1dfa   :  { %2131 = vmatpush.msra.mxu0 %v6057_v12  ;;  %v6090_v12 = vld [vmem:[#allocation18_spill] sm:$0xff] }
0x1dfc   :  { %2132 = vmatpush.msra.mxu0 %v6058_v2  ;;  %v6091_v2 = vld [vmem:[#allocation25_spill] sm:$0xff] }
0x1dfe   :  { %2133 = vmatpush.msra.mxu0 %v6081_v35 }
0x1e00   :  { %2134 = vmatpush.msra.mxu0 %v6082_v1 }
0x1e02   :  { %2135 = vmatpush.msra.mxu0 %v6083_v40 }
0x1e04   :  { %2136 = vmatpush.msra.mxu0 %v6084_v53 }
0x1e61   :  { %v1860_v0 = vpop.f32.mrf.mxu1 }
0x1e62   :  { %v1864_v52 = vadd.f32 %v1860_v0, %v6085_v13 }
0x1e64   :  { %3592 = vtanh.f32 %v1864_v52 }
0x1e67   :  { %v1840_v59 = vpop.f32.mrf.mxu2 }
0x1e68   :  { %v1863_v55 = vadd.f32 %v1840_v59, %v6086_v23 }
0x1e6a   :  { %v3593_v26 = vpop.eup %3592  ;;  %3594 = vtanh.f32 %v1863_v55 }
0x1e6b   :  { %1903 = vmatmul.f32.vlgmr.msrb.gmra.mxu1 %v3593_v26 }
0x1e6c   :  { %2323 = vmatpush.msrb.mxu1 %v6087_v48 }
0x1e6e   :  { %2324 = vmatpush.msrb.mxu1 %v6088_v18 }
0x1e70   :  { %v3595_v4 = vpop.eup %3594  ;;  %2325 = vmatpush.msrb.mxu1 %v6089_v16 }
0x1e71   :  { %1883 = vmatmul.f32.vlgmr.msrb.gmra.mxu2 %v3595_v4 }
0x1e72   :  { %2303 = vmatpush.msrb.mxu2 %v6090_v12  ;;  %2326 = vmatpush.msrb.mxu1 %v6091_v2 }
0x1e74   :  { %2304 = vmatpush.msrb.mxu2 %v6092_v31 }
0x1e76   :  { %2305 = vmatpush.msrb.mxu2 %v6093_v3 }
0x1e78   :  { %2306 = vmatpush.msrb.mxu2 %v6094_v34 }
0x1ee8   :  { %v1904_v7 = vpop.f32.mrf.mxu1 }
0x1ef4   :  { %v1884_v60 = vpop.f32.mrf.mxu2 }
0x1ef5   :  { %v1885_v61 = vadd.f32 %v1884_v60, %v6095_v57 }
0x1ef7   :  { %v1905_v22 = vadd.f32 %v1904_v7, %v1885_v61  ;;  %v2010_v61 = vpop.f32.mrf.mxu0 }
0x1ef8   :  { %v2011_v7 = vadd.f32 %v6077_v63, %v2010_v61 }
0x1ef9   :  { %v1907_v28 = vsel %vm1432_vm7, %v1905_v22, -inf }
0x1efa   :  { %1908 = vmax.xlane.f32.xlu0 %v1907_v28  ;;  %v5065_v28 = vld [vmem:[%s5868_s15 + $0x78] sm:$0xff] }
0x1f6d   :  { %v1909_v44 = vpop.xlane.xlu0 %1908 }
0x1f6e   :  { %v1910_v30 = vsub.f32 %v1905_v22, %v1909_v44  ;;  %v5071_v44 = vld [vmem:[%s5868_s15 + $0x70] sm:$0xff] }
0x1f70   :  { %v1911_v24 = vmul.f32 1.442695, %v1910_v30  ;;  %v5077_v30 = vld [vmem:[%s5868_s15 + $0x68] sm:$0xff] }
0x1f72   :  { %3596 = vpow2.f32 %v1911_v24  ;;  %v5083_v24 = vld [vmem:[%s5868_s15 + $0x60] sm:$0xff] }
0x1f78   :  { %v3597_v36 = vpop.eup %3596 }
0x1f79   :  { %v1913_v41 = vsel %vm1432_vm7, %v3597_v36, 0.0 }
0x1f7a   :  { %1914 = vadd.xlane.f32.xlu2 %v1913_v41  ;;  %v5095_v41 = vld [vmem:[%s5868_s15 + $0x50] sm:$0xff] }
0x1fed   :  { %v1915_v29 = vpop.xlane.xlu2 %1914 }
0x1fee   :  { %3598 = vrcp.f32 %v1915_v29  ;;  %v5101_v29 = vld [vmem:[%s5868_s15 + $0x48] sm:$0xff] }
0x1ff4   :  { %v3599_v62 = vpop.eup %3598 }
0x1ff5   :  { %v1917_v33 = vmul.f32 %v3599_v62, %v3597_v36  ;;  %v5089_v36 = vld [vmem:[%s5868_s15 + $0x58] sm:$0xff]  ;;  %v5107_v62 = vld [vmem:[%s5868_s15 + $0x40] sm:$0xff] }
0x1ff7   :  { %1962 = vperm.xlu2 %3475, %v1917_v33   ;;  %1950 = vperm.xlu0 %3460, %v1917_v33  }
0x1ff8   :  { %1920 = vperm.xlu1 %3469, %v1917_v33  }
0x1fff   :  { %3476 = vset.pattern.permute.xlu2 %v6096_v14 }
0x2000   :  { %3470 = vset.pattern.permute.xlu1 %v6097_v20 }
0x2001   :  { %1926 = vperm.xlu1 %3470, %v1917_v33  }
0x2009   :  { %3471 = vset.pattern.permute.xlu1 %v6098_v19 }
0x200a   :  { %1932 = vperm.xlu1 %3471, %v1917_v33  }
0x2012   :  { %3472 = vset.pattern.permute.xlu1 %v6099_v15 }
0x2013   :  { %1938 = vperm.xlu1 %3472, %v1917_v33  }
0x201b   :  { %3473 = vset.pattern.permute.xlu1 %v6100_v38 }
0x201c   :  { %1944 = vperm.xlu1 %3473, %v1917_v33  }
0x2024   :  { %3474 = vset.pattern.permute.xlu1 %v6101_v43 }
0x2025   :  { %1956 = vperm.xlu1 %3474, %v1917_v33   ;;  %v5113_v33 = vld [vmem:[%s5868_s15 + $0x38] sm:$0xff] }
0x202d   :  { %3482 = vset.pattern.permute.xlu1 %v6102_v17 }
0x2051   :  { %v1963_v16 = vpop.permute.xlu2 %1962 }
0x2052   :  { %v1965_v3 = vmul.f32 %v1963_v16, %v4454_v21 }
0x2069   :  { %v1951_v48 = vpop.permute.xlu0 %1950 }
0x206a   :  { %v1921_v32 = vpop.permute.xlu1 %1920  ;;  %v1953_v4 = vmul.f32 %v1951_v48, %v4461_v49 }
0x206b   :  { %v1923_v1 = vmul.f32 %v1921_v32, %v6076_v9  ;;  %v5119_v32 = vld [vmem:[%s5868_s15 + $0x30] sm:$0xff] }
0x2073   :  { %v1927_v54 = vpop.permute.xlu1 %1926 }
0x2074   :  { %v1929_v35 = vmul.f32 %v1927_v54, %v6103_v45  ;;  %v5125_v54 = vld [vmem:[%s5868_s15 + $0x28] sm:$0xff] }
0x2076   :  { %v1930_v53 = vadd.f32 %v1929_v35, %v1923_v1  ;;  %v5143_v35 = vld [vmem:[%s5868_s15 + $0x10] sm:$0xff]  ;;  %v6105_v1 = vld [vmem:[#allocation11_spill] sm:$0xff] }
0x207c   :  { %v1933_v5 = vpop.permute.xlu1 %1932 }
0x207d   :  { %v1935_v40 = vmul.f32 %v1933_v5, %v4236_v27  ;;  %v5131_v5 = vld [vmem:[%s5868_s15 + $0x20] sm:$0xff] }
0x207f   :  { %v1936_v59 = vadd.f32 %v1935_v40, %v1930_v53  ;;  %v484_v40 = vadd.f32 %v4892_v51, %v6105_v1 }
0x2085   :  { %v1939_v8 = vpop.permute.xlu1 %1938 }
0x2086   :  { %v1941_v0 = vmul.f32 %v1939_v8, %v4340_v25  ;;  %v5137_v8 = vld [vmem:[%s5868_s15 + $0x18] sm:$0xff] }
0x2088   :  { %v1942_v26 = vadd.f32 %v1941_v0, %v1936_v59 }
0x208e   :  { %v1945_v52 = vpop.permute.xlu1 %1944 }
0x208f   :  { %v1947_v55 = vmul.f32 %v1945_v52, %v4421_v46 }
0x2091   :  { %v1948_v18 = vadd.f32 %v1947_v55, %v1942_v26 }
0x2093   :  { %v1954_v2 = vadd.f32 %v1953_v4, %v1948_v18 }
0x2097   :  { %v1957_v12 = vpop.permute.xlu1 %1956 }
0x2098   :  { %v1959_v31 = vmul.f32 %v1957_v12, %v4426_v50 }
0x209a   :  { %v1960_v34 = vadd.f32 %v1959_v31, %v1954_v2 }
0x209c   :  { %v1966_v60 = vadd.f32 %v1965_v3, %v1960_v34 }
0x209e   :  { %1968 = vrot.lane.b32.xlu1 %v1966_v60, %s3746_s29 }
0x20a6   :  { %2034 = vrot.lane.b32.xlu1 %v2011_v7, %s3745_s0 }
0x2110   :  { %v5058_v22 = vpop.permute.xlu1 %1968 }
0x2111   :  { %6104 = vst [vmem:[#allocation28_spill] sm:$0xff] %v5058_v22  ;;  %3352 = vmatmul.msk.f32.vlgmr.msrb.gmra.mxu3 %vm501_vm15, %v5058_v22  ;;  %v5294_v22 = vld [vmem:[%s5866_s14 + $0x38] sm:$0xff] }
0x2112   :  { %2101 = vmatpush.msrb.mxu3 %v5065_v28  ;;  %6111 = vst [vmem:[#allocation31_spill] sm:$0xff] %v5294_v22 }
0x2114   :  { %2102 = vmatpush.msrb.mxu3 %v5071_v44 }
0x2116   :  { %2103 = vmatpush.msrb.mxu3 %v5077_v30 }
0x2118   :  { %2104 = vmatpush.msrb.mxu3 %v5083_v24  ;;  %v2035_v3 = vpop.permute.xlu1 %2034 }
0x211a   :  { %2105 = vmatpush.msrb.mxu3 %v5089_v36 }
0x211c   :  { %2106 = vmatpush.msrb.mxu3 %v5095_v41 }
0x211e   :  { %2107 = vmatpush.msrb.mxu3 %v5101_v29 }
0x2120   :  { %2108 = vmatpush.msrb.mxu3 %v5107_v62 }
0x2122   :  { %2109 = vmatpush.msrb.mxu3 %v5113_v33 }
0x2124   :  { %2110 = vmatpush.msrb.mxu3 %v5119_v32 }
0x2126   :  { %2111 = vmatpush.msrb.mxu3 %v5125_v54 }
0x2128   :  { %2112 = vmatpush.msrb.mxu3 %v5131_v5 }
0x212a   :  { %2113 = vmatpush.msrb.mxu3 %v5137_v8 }
0x212c   :  { %2114 = vmatpush.msrb.mxu3 %v5143_v35 }
0x212e   :  { %2115 = vmatpush.msrb.mxu3 %v4659_v42 }
0x2130   :  { %2116 = vmatpush.msrb.mxu3 %v4671_v10 }
0x2194   :  { %v1989_v53 = vpop.f32.mrf.mxu3 }
0x2195   :  { %v1992_v0 = vadd.f32 %v1989_v53, %v484_v40 }
0x2197   :  { %v2013_v52 = vadd.f32 %v2011_v7, %v1992_v0 }
0x2199   :  { %v3354_v59 = vmul.f32 -1.442695, %v2013_v52 }
0x219b   :  { %3600 = vpow2.f32 %v3354_v59 }
0x21a1   :  { %v3601_v55 = vpop.eup %3600 }
0x21a2   :  { %v2017_v26 = vadd.f32 1.0, %v3601_v55 }
0x21a4   :  { %3602 = vrcp.f32 %v2017_v26  ;;  %v2029_v16 = vand.u32 2147483648, %v2017_v26  ;;  %v2027_v42 = vand.u32 2147483647, %v2017_v26  ;;  %vm2023_vm3 = vweird.f32 %v2017_v26 }
0x21a6   :  { %v2030_v10 = vor.u32 1.1754944e-38, %v2029_v16  ;;  %vm2028_vm5 = vcmp.eq.f32.partialorder %v2027_v42, 8.507059e+37  ;;  %v5213_v16 = vld [vmem:[%s5868_s15 + $0xe0] sm:$0xff]  ;;  %v5232_v42 = vld [vmem:[%s5868_s15 + $0xc8] sm:$0xff] }
0x21aa   :  { %v3603_v48 = vpop.eup %3602 }
0x21ab   :  { %v2019_v18 = vmul.f32 %v3603_v48, %v2017_v26  ;;  %vm2024_vm2 = vweird.f32 %v3603_v48 }
0x21ac   :  { %vm2025_vm4 = vmor %vm2023_vm3, %vm2024_vm2 }
0x21ad   :  { %v2020_v4 = vsub.f32 1.0, %v2019_v18  ;;  %v5187_v18 = vld [vmem:[%s5868_s15 + $0xf0] sm:$0xff] }
0x21af   :  { %v2021_v12 = vmul.f32 %v3603_v48, %v2020_v4  ;;  %v5200_v4 = vld [vmem:[%s5868_s15 + $0xe8] sm:$0xff] }
0x21b1   :  { %v2022_v2 = vadd.f32 %v3603_v48, %v2021_v12  ;;  %v5226_v12 = vld [vmem:[%s5868_s15 + $0xd0] sm:$0xff] }
0x21b3   :  { %v2026_v31 = vsel %vm2025_vm4, %v3603_v48, %v2022_v2  ;;  %v5181_v48 = vld [vmem:[%s5867_s18 + $0x10] sm:$0xff]  ;;  %v5244_v2 = vld [vmem:[%s5868_s15 + $0xb8] sm:$0xff] }
0x21b4   :  { %v2031_v34 = vsel %vm2028_vm5, %v2030_v10, %v2026_v31  ;;  %v5250_v10 = vld [vmem:[%s5868_s15 + $0xb0] sm:$0xff]  ;;  %v5256_v31 = vld [vmem:[%s5868_s15 + $0xa8] sm:$0xff] }
0x21b5   :  { %v2037_v60 = vmul.f32 %v2035_v3, %v2031_v34  ;;  %v2044_v40 = vsub.f32 1.0, %v2031_v34  ;;  %v2050_v52 = vmul.f32 %v2031_v34, %v4991_v6  ;;  %v5168_v6 = vld [vmem:[%s5867_s18 + $0x18] sm:$0xff]  ;;  %v5262_v3 = vld [vmem:[%s5868_s15 + $0xa0] sm:$0xff] }
0x21b6   :  { %v5268_v34 = vld [vmem:[%s5868_s15 + $0x98] sm:$0xff] }
0x21b7   :  { %2039 = vrot.lane.b32.xlu0 %v2037_v60, %s3745_s0  ;;  %6107 = vst [vmem:[#allocation16_spill] sm:$0xff] %v5268_v34  ;;  %v5274_v60 = vld [vmem:[%s5868_s15 + $0x90] sm:$0xff] }
0x21b8   :  { %6108 = vst [vmem:[#allocation37_spill] sm:$0xff] %v5274_v60 }
0x2229   :  { %v2040_v61 = vpop.permute.xlu0 %2039 }
0x222a   :  { %v2042_v7 = vadd.f32 %v2040_v61, %v1992_v0  ;;  %v5174_v0 = vld [vmem:[%s5868_s15 + $0xf8] sm:$0xff]  ;;  %v5280_v61 = vld [vmem:[%s5868_s15 + $0x88] sm:$0xff] }
0x222b   :  { %6109 = vst [vmem:[#allocation10_spill] sm:$0xff] %v5280_v61 }
0x222c   :  { %3604 = vtanh.f32 %v2042_v7  ;;  %v5286_v7 = vld [vmem:[%s5868_s15 + $0x80] sm:$0xff] }
0x222d   :  { %6110 = vst [vmem:[#allocation30_spill] sm:$0xff] %v5286_v7 }
0x2232   :  { %v3605_v1 = vpop.eup %3604 }
0x2233   :  { %2046 = vrot.lane.b32.xlu1 %v3605_v1, %s3746_s29 }
0x22a5   :  { %v2047_v53 = vpop.permute.xlu1 %2046 }
0x22a6   :  { %v2049_v59 = vmul.f32 %v2047_v53, %v2044_v40 }
0x22a8   :  { %v5153_v55 = vadd.f32 %v2050_v52, %v2049_v59 }
0x22aa   :  { %2053 = vrot.lane.b32.xlu2 %v5153_v55, %s3746_s29 }
0x2304   :  { %v5157_v26 = vpop.permute.xlu2 %2053 }
0x2305   :  { %6106 = vst [vmem:[#allocation29_spill] sm:$0xff] %v5157_v26  ;;  %3355 = vmatmul.msk.f32.vlgmr.msra.gmra.mxu3 %vm501_vm15, %v5157_v26  ;;  %3356 = vmatmul.msk.f32.vlgmr.msrb.gmra.mxu0 %vm501_vm15, %v5157_v26 }
0x2306   :  { %3358 = vmatmul.msk.f32.vlgmr.msra.gmra.mxu1 %vm501_vm15, %v5157_v26  ;;  %2473 = vmatpush.msrb.mxu0 %v5168_v6  ;;  %v5336_v26 = vld [vmem:[%s5866_s14] sm:$0xff] }
0x2307   :  { %2355 = vmatpush.msra.mxu1 %v5174_v0  ;;  %2452 = vmatpush.msra.mxu3 %v4827_v56  ;;  %v5194_v56 = vld [vmem:[%s5867_s18 + $0x8] sm:$0xff]  ;;  %6118 = vst [vmem:[#allocation25_spill] sm:$0xff] %v5336_v26 }
0x2308   :  { %2474 = vmatpush.msrb.mxu0 %v5181_v48 }
0x2309   :  { %2356 = vmatpush.msra.mxu1 %v5187_v18  ;;  %2453 = vmatpush.msra.mxu3 %v4832_v47  ;;  %v5207_v47 = vld [vmem:[%s5867_s18] sm:$0xff] }
0x230a   :  { %2475 = vmatpush.msrb.mxu0 %v5194_v56 }
0x230b   :  { %2357 = vmatpush.msra.mxu1 %v5200_v4  ;;  %2454 = vmatpush.msra.mxu3 %v4839_v58  ;;  %v5220_v58 = vld [vmem:[%s5868_s15 + $0xd8] sm:$0xff] }
0x230c   :  { %2476 = vmatpush.msrb.mxu0 %v5207_v47 }
0x230d   :  { %2358 = vmatpush.msra.mxu1 %v5213_v16  ;;  %2455 = vmatpush.msra.mxu3 %v4846_v37  ;;  %v5238_v37 = vld [vmem:[%s5868_s15 + $0xc0] sm:$0xff] }
0x230f   :  { %2359 = vmatpush.msra.mxu1 %v5220_v58 }
0x2311   :  { %2360 = vmatpush.msra.mxu1 %v5226_v12 }
0x2313   :  { %2361 = vmatpush.msra.mxu1 %v5232_v42 }
0x2315   :  { %2362 = vmatpush.msra.mxu1 %v5238_v37 }
0x2317   :  { %2363 = vmatpush.msra.mxu1 %v5244_v2 }
0x2319   :  { %2364 = vmatpush.msra.mxu1 %v5250_v10 }
0x231b   :  { %2365 = vmatpush.msra.mxu1 %v5256_v31 }
0x231d   :  { %2366 = vmatpush.msra.mxu1 %v5262_v3 }
0x231f   :  { %2367 = vmatpush.msra.mxu1 %v5268_v34 }
0x2321   :  { %2368 = vmatpush.msra.mxu1 %v5274_v60 }
0x2323   :  { %2369 = vmatpush.msra.mxu1 %v5280_v61 }
0x2325   :  { %2370 = vmatpush.msra.mxu1 %v5286_v7 }
0x2382   :  { %v2094_v1 = vpop.f32.mrf.mxu0 }
0x2383   :  { %v2098_v40 = vadd.f32 %v2094_v1, %v6085_v13 }
0x2385   :  { %3606 = vtanh.f32 %v2098_v40  ;;  %v5306_v40 = vld [vmem:[%s5866_s14 + $0x18] sm:$0xff] }
0x2386   :  { %6113 = vst [vmem:[#allocation33_spill] sm:$0xff] %v5306_v40 }
0x2388   :  { %v2074_v53 = vpop.f32.mrf.mxu3 }
0x2389   :  { %v2097_v52 = vadd.f32 %v2074_v53, %v6086_v23  ;;  %v5312_v53 = vld [vmem:[%s5866_s14 + $0x30] sm:$0xff] }
0x238a   :  { %6114 = vst [vmem:[#allocation19_spill] sm:$0xff] %v5312_v53 }
0x238b   :  { %v3607_v59 = vpop.eup %3606  ;;  %3608 = vtanh.f32 %v2097_v52  ;;  %v5318_v52 = vld [vmem:[%s5866_s14 + $0x8] sm:$0xff] }
0x238c   :  { %2137 = vmatmul.f32.vlgmr.msra.gmra.mxu0 %v3607_v59  ;;  %6115 = vst [vmem:[#allocation21_spill] sm:$0xff] %v5318_v52  ;;  %v5324_v59 = vld [vmem:[%s5866_s14 + $0x20] sm:$0xff] }
0x238d   :  { %2557 = vmatpush.msra.mxu0 %v5294_v22  ;;  %6116 = vst [vmem:[#allocation23_spill] sm:$0xff] %v5324_v59 }
0x238f   :  { %2558 = vmatpush.msra.mxu0 %v5300_v11 }
0x2391   :  { %v3609_v1 = vpop.eup %3608  ;;  %2559 = vmatpush.msra.mxu0 %v5306_v40 }
0x2392   :  { %2117 = vmatmul.f32.vlgmr.msrb.gmra.mxu3 %v3609_v1  ;;  %v5330_v1 = vld [vmem:[%s5866_s14 + $0x10] sm:$0xff] }
0x2393   :  { %2537 = vmatpush.msrb.mxu3 %v5312_v53  ;;  %2560 = vmatpush.msra.mxu0 %v5318_v52  ;;  %6117 = vst [vmem:[#allocation18_spill] sm:$0xff] %v5330_v1 }
0x2395   :  { %2538 = vmatpush.msrb.mxu3 %v5324_v59 }
0x2397   :  { %2539 = vmatpush.msrb.mxu3 %v5330_v1 }
0x2399   :  { %2540 = vmatpush.msrb.mxu3 %v5336_v26 }
0x2409   :  { %v2138_v53 = vpop.f32.mrf.mxu0 }
0x2415   :  { %v2118_v39 = vpop.f32.mrf.mxu3 }
0x2416   :  { %v2119_v52 = vadd.f32 %v2118_v39, %v6095_v57  ;;  %v2244_v39 = vpop.f32.mrf.mxu1 }
0x2417   :  { %v2245_v57 = vadd.f32 %v6077_v63, %v2244_v39 }
0x2418   :  { %v2139_v40 = vadd.f32 %v2138_v53, %v2119_v52  ;;  %v6119_v53 = vmov 5  }
0x241a   :  { %v2141_v59 = vsel %vm1432_vm7, %v2139_v40, -inf }
0x241b   :  { %2142 = vmax.xlane.f32.xlu0 %v2141_v59 }
0x248e   :  { %v2143_v11 = vpop.xlane.xlu0 %2142 }
0x248f   :  { %v2144_v22 = vsub.f32 %v2139_v40, %v2143_v11 }
0x2491   :  { %v2145_v23 = vmul.f32 1.442695, %v2144_v22 }
0x2493   :  { %3610 = vpow2.f32 %v2145_v23 }
0x2499   :  { %v3611_v1 = vpop.eup %3610 }
0x249a   :  { %v2147_v13 = vsel %vm1432_vm7, %v3611_v1, 0.0 }
0x249b   :  { %2148 = vadd.xlane.f32.xlu1 %v2147_v13 }
0x250e   :  { %v2149_v7 = vpop.xlane.xlu1 %2148 }
0x250f   :  { %3612 = vrcp.f32 %v2149_v7 }
0x2515   :  { %v3613_v61 = vpop.eup %3612 }
0x2516   :  { %v2151_v26 = vmul.f32 %v3613_v61, %v3611_v1 }
0x2518   :  { %2196 = vperm.xlu1 %3482, %v2151_v26   ;;  %2184 = vperm.xlu0 %3460, %v2151_v26  }
0x2519   :  { %2154 = vperm.xlu2 %3476, %v2151_v26  }
0x2520   :  { %2268 = vrot.lane.b32.xlu0 %v2245_v57, %s3745_s0  ;;  %3488 = vset.pattern.permute.xlu1 %v6119_v53 }
0x2521   :  { %3477 = vset.pattern.permute.xlu2 %v6097_v20  ;;  %3490 = vset.pattern.permute.xlu0 %v6102_v17 }
0x2522   :  { %2160 = vperm.xlu2 %3477, %v2151_v26  }
0x252a   :  { %3478 = vset.pattern.permute.xlu2 %v6098_v19 }
0x252b   :  { %2166 = vperm.xlu2 %3478, %v2151_v26  }
0x2533   :  { %3479 = vset.pattern.permute.xlu2 %v6099_v15 }
0x2534   :  { %2172 = vperm.xlu2 %3479, %v2151_v26  }
0x253c   :  { %3480 = vset.pattern.permute.xlu2 %v6100_v38 }
0x253d   :  { %2178 = vperm.xlu2 %3480, %v2151_v26  }
0x2545   :  { %3481 = vset.pattern.permute.xlu2 %v6101_v43 }
0x2546   :  { %2190 = vperm.xlu2 %3481, %v2151_v26  }
0x254e   :  { %3483 = vset.pattern.permute.xlu2 %v6096_v14 }
0x2573   :  { %v2155_v63 = vpop.permute.xlu2 %2154 }
0x2574   :  { %v2157_v61 = vmul.f32 %v2155_v63, %v6076_v9 }
0x257c   :  { %v2161_v11 = vpop.permute.xlu2 %2160 }
0x257d   :  { %v2163_v22 = vmul.f32 %v2161_v11, %v6103_v45 }
0x257f   :  { %v2164_v40 = vadd.f32 %v2163_v22, %v2157_v61 }
0x2585   :  { %v2167_v13 = vpop.permute.xlu2 %2166 }
0x2586   :  { %v2169_v7 = vmul.f32 %v2167_v13, %v4236_v27 }
0x2588   :  { %v2170_v1 = vadd.f32 %v2169_v7, %v2164_v40 }
0x258a   :  { %v2185_v17 = vpop.permute.xlu0 %2184  ;;  %v2197_v15 = vpop.permute.xlu1 %2196 }
0x258b   :  { %v2187_v43 = vmul.f32 %v2185_v17, %v4461_v49  ;;  %v2199_v63 = vmul.f32 %v2197_v15, %v4454_v21  ;;  %v6121_v15 = vld [vmem:[#allocation12_spill] sm:$0xff] }
0x258e   :  { %v2173_v23 = vpop.permute.xlu2 %2172 }
0x258f   :  { %v2175_v52 = vmul.f32 %v2173_v23, %v4340_v25 }
0x2591   :  { %v2176_v26 = vadd.f32 %v2175_v52, %v2170_v1 }
0x2597   :  { %v2179_v59 = vpop.permute.xlu2 %2178 }
0x2598   :  { %v2181_v39 = vmul.f32 %v2179_v59, %v4421_v46 }
0x259a   :  { %v2182_v53 = vadd.f32 %v2181_v39, %v2176_v26 }
0x259c   :  { %v2188_v20 = vadd.f32 %v2187_v43, %v2182_v53  ;;  %v487_v43 = vadd.f32 %v4892_v51, %v6121_v15  ;;  %v2269_v15 = vpop.permute.xlu0 %2268 }
0x25a0   :  { %v2191_v19 = vpop.permute.xlu2 %2190 }
0x25a1   :  { %v2193_v11 = vmul.f32 %v2191_v19, %v4426_v50  ;;  %v5388_v19 = vld [vmem:[%s5868_s15] sm:$0xff] }
0x25a3   :  { %v2194_v13 = vadd.f32 %v2193_v11, %v2188_v20  ;;  %v5382_v20 = vld [vmem:[%s5868_s15 + $0x8] sm:$0xff] }
0x25a5   :  { %v2200_v22 = vadd.f32 %v2199_v63, %v2194_v13 }
0x25a7   :  { %2202 = vrot.lane.b32.xlu2 %v2200_v22, %s3746_s29 }
0x2601   :  { %v5361_v23 = vpop.permute.xlu2 %2202 }
0x2602   :  { %6120 = vst [vmem:[#allocation20_spill] sm:$0xff] %v5361_v23  ;;  %3357 = vmatmul.msk.f32.vlgmr.msra.gmra.mxu2 %vm501_vm15, %v5361_v23  ;;  %v6130_v23 = vld [vmem:[#allocation19_spill] sm:$0xff] }
0x2603   :  { %2335 = vmatpush.msra.mxu2 %v5065_v28 }
0x2605   :  { %2336 = vmatpush.msra.mxu2 %v5071_v44 }
0x2607   :  { %2337 = vmatpush.msra.mxu2 %v5077_v30 }
0x2609   :  { %2338 = vmatpush.msra.mxu2 %v5083_v24 }
0x260b   :  { %2339 = vmatpush.msra.mxu2 %v5089_v36 }
0x260d   :  { %2340 = vmatpush.msra.mxu2 %v5095_v41 }
0x260f   :  { %2341 = vmatpush.msra.mxu2 %v5101_v29 }
0x2611   :  { %2342 = vmatpush.msra.mxu2 %v5107_v62 }
0x2613   :  { %2343 = vmatpush.msra.mxu2 %v5113_v33 }
0x2615   :  { %2344 = vmatpush.msra.mxu2 %v5119_v32 }
0x2617   :  { %2345 = vmatpush.msra.mxu2 %v5125_v54 }
0x2619   :  { %2346 = vmatpush.msra.mxu2 %v5131_v5 }
0x261b   :  { %2347 = vmatpush.msra.mxu2 %v5137_v8 }
0x261d   :  { %2348 = vmatpush.msra.mxu2 %v5143_v35 }
0x261f   :  { %2349 = vmatpush.msra.mxu2 %v5382_v20 }
0x2621   :  { %2350 = vmatpush.msra.mxu2 %v5388_v19 }
0x2685   :  { %v2223_v17 = vpop.f32.mrf.mxu2 }
0x2686   :  { %v2226_v53 = vadd.f32 %v2223_v17, %v487_v43 }
0x2688   :  { %v2247_v61 = vadd.f32 %v2245_v57, %v2226_v53 }
0x268a   :  { %v3359_v7 = vmul.f32 -1.442695, %v2247_v61 }
0x268c   :  { %3614 = vpow2.f32 %v3359_v7 }
0x2692   :  { %v3615_v40 = vpop.eup %3614 }
0x2693   :  { %v2251_v52 = vadd.f32 1.0, %v3615_v40 }
0x2695   :  { %3616 = vrcp.f32 %v2251_v52  ;;  %v2263_v26 = vand.u32 2147483648, %v2251_v52  ;;  %v2261_v63 = vand.u32 2147483647, %v2251_v52  ;;  %vm2257_vm8 = vweird.f32 %v2251_v52 }
0x2697   :  { %v2264_v22 = vor.u32 1.1754944e-38, %v2263_v26  ;;  %vm2262_vm11 = vcmp.eq.f32.partialorder %v2261_v63, 8.507059e+37  ;;  %v5429_v26 = vld [vmem:[%s5871_s17 + $0x8] sm:$0xff]  ;;  %v5437_v63 = vld [vmem:[%s5871_s17] sm:$0xff] }
0x269b   :  { %v3617_v59 = vpop.eup %3616 }
0x269c   :  { %v2253_v1 = vmul.f32 %v3617_v59, %v2251_v52  ;;  %vm2258_vm6 = vweird.f32 %v3617_v59 }
0x269d   :  { %vm2259_vm9 = vmor %vm2257_vm8, %vm2258_vm6 }
0x269e   :  { %v2254_v39 = vsub.f32 1.0, %v2253_v1 }
0x26a0   :  { %v2255_v11 = vmul.f32 %v3617_v59, %v2254_v39 }
0x26a2   :  { %v2256_v13 = vadd.f32 %v3617_v59, %v2255_v11 }
0x26a4   :  { %v2260_v51 = vsel %vm2259_vm9, %v3617_v59, %v2256_v13  ;;  %v6123_v13 = vld [vmem:[#allocation10_spill] sm:$0xff] }
0x26a5   :  { %v2265_v57 = vsel %vm2262_vm11, %v2264_v22, %v2260_v51  ;;  %v6124_v22 = vld [vmem:[#allocation30_spill] sm:$0xff] }
0x26a6   :  { %v2271_v43 = vmul.f32 %v2269_v15, %v2265_v57  ;;  %v2278_v40 = vsub.f32 1.0, %v2265_v57  ;;  %v2284_v39 = vmul.f32 %v2265_v57, %v5153_v55  ;;  %v5413_v55 = vld [vmem:[%s5871_s17 + $0x18] sm:$0xff]  ;;  %v6125_v15 = vld [vmem:[#allocation35_spill] sm:$0xff] }
0x26a8   :  { %2273 = vrot.lane.b32.xlu2 %v2271_v43, %s3745_s0 }
0x2702   :  { %v2274_v17 = vpop.permute.xlu2 %2273 }
0x2703   :  { %v2276_v61 = vadd.f32 %v2274_v17, %v2226_v53  ;;  %v5421_v53 = vld [vmem:[%s5871_s17 + $0x10] sm:$0xff]  ;;  %v6126_v17 = vld [vmem:[#allocation34_spill] sm:$0xff] }
0x2705   :  { %3618 = vtanh.f32 %v2276_v61 }
0x270b   :  { %v3619_v7 = vpop.eup %3618 }
0x270c   :  { %2280 = vrot.lane.b32.xlu0 %v3619_v7, %s3746_s29 }
0x277e   :  { %v2281_v1 = vpop.permute.xlu0 %2280 }
0x277f   :  { %v2283_v52 = vmul.f32 %v2281_v1, %v2278_v40  ;;  %v6127_v40 = vld [vmem:[#allocation31_spill] sm:$0xff]  ;;  %v6128_v1 = vld [vmem:[#allocation32_spill] sm:$0xff] }
0x2781   :  { %v5396_v11 = vadd.f32 %v2284_v39, %v2283_v52  ;;  %v6129_v52 = vld [vmem:[#allocation33_spill] sm:$0xff] }
0x2783   :  { %2287 = vrot.lane.b32.xlu2 %v5396_v11, %s3746_s29 }
0x27dd   :  { %v5400_v59 = vpop.permute.xlu2 %2287 }
0x27de   :  { %6122 = vst [vmem:[#allocation22_spill] sm:$0xff] %v5400_v59  ;;  %3360 = vmatmul.msk.f32.vlgmr.msrb.gmra.mxu2 %vm501_vm15, %v5400_v59  ;;  %3361 = vmatmul.msk.f32.vlgmr.msrb.gmra.mxu1 %vm501_vm15, %v5400_v59 }
0x27df   :  { %3363 = vmatmul.msk.f32.vlgmr.msrb.gmra.mxu0 %vm501_vm15, %v5400_v59  ;;  %2707 = vmatpush.msrb.mxu1 %v5168_v6  ;;  %v6131_v59 = vld [vmem:[#allocation21_spill] sm:$0xff] }
0x27e0   :  { %2589 = vmatpush.msrb.mxu0 %v5174_v0  ;;  %2686 = vmatpush.msrb.mxu2 %v5413_v55 }
0x27e1   :  { %2708 = vmatpush.msrb.mxu1 %v5181_v48 }
0x27e2   :  { %2590 = vmatpush.msrb.mxu0 %v5187_v18  ;;  %2687 = vmatpush.msrb.mxu2 %v5421_v53 }
0x27e3   :  { %2709 = vmatpush.msrb.mxu1 %v5194_v56 }
0x27e4   :  { %2591 = vmatpush.msrb.mxu0 %v5200_v4  ;;  %2688 = vmatpush.msrb.mxu2 %v5429_v26 }
0x27e5   :  { %2710 = vmatpush.msrb.mxu1 %v5207_v47 }
0x27e6   :  { %2592 = vmatpush.msrb.mxu0 %v5213_v16  ;;  %2689 = vmatpush.msrb.mxu2 %v5437_v63 }
0x27e8   :  { %2593 = vmatpush.msrb.mxu0 %v5220_v58 }
0x27ea   :  { %2594 = vmatpush.msrb.mxu0 %v5226_v12 }
0x27ec   :  { %2595 = vmatpush.msrb.mxu0 %v5232_v42 }
0x27ee   :  { %2596 = vmatpush.msrb.mxu0 %v5238_v37 }
0x27f0   :  { %2597 = vmatpush.msrb.mxu0 %v5244_v2 }
0x27f2   :  { %2598 = vmatpush.msrb.mxu0 %v5250_v10 }
0x27f4   :  { %2599 = vmatpush.msrb.mxu0 %v5256_v31 }
0x27f6   :  { %2600 = vmatpush.msrb.mxu0 %v5262_v3 }
0x27f8   :  { %2601 = vmatpush.msrb.mxu0 %v5268_v34 }
0x27fa   :  { %2602 = vmatpush.msrb.mxu0 %v5274_v60 }
0x27fc   :  { %2603 = vmatpush.msrb.mxu0 %v6123_v13 }
0x27fe   :  { %2604 = vmatpush.msrb.mxu0 %v6124_v22 }
0x285b   :  { %v2328_v51 = vpop.f32.mrf.mxu1 }
0x285c   :  { %v2332_v57 = vadd.f32 %v2328_v51, %v6125_v15  ;;  %v6132_v51 = vld [vmem:[#allocation23_spill] sm:$0xff] }
0x285e   :  { %3620 = vtanh.f32 %v2332_v57  ;;  %v6133_v57 = vld [vmem:[#allocation18_spill] sm:$0xff] }
0x2861   :  { %v2308_v43 = vpop.f32.mrf.mxu2 }
0x2862   :  { %v2331_v61 = vadd.f32 %v2308_v43, %v6126_v17  ;;  %v6134_v43 = vld [vmem:[#allocation25_spill] sm:$0xff] }
0x2864   :  { %v3621_v7 = vpop.eup %3620  ;;  %3622 = vtanh.f32 %v2331_v61 }
0x2865   :  { %2371 = vmatmul.f32.vlgmr.msra.gmra.mxu1 %v3621_v7  ;;  %v5465_v7 = vld [vmem:[%s5870_s3] sm:$0xff] }
0x2866   :  { %2791 = vmatpush.msra.mxu1 %v6127_v40  ;;  %6135 = vst [vmem:[#allocation24_spill] sm:$0xff] %v5465_v7 }
0x2868   :  { %2792 = vmatpush.msra.mxu1 %v6128_v1 }
0x286a   :  { %v3623_v39 = vpop.eup %3622  ;;  %2793 = vmatpush.msra.mxu1 %v6129_v52 }
0x286b   :  { %2351 = vmatmul.f32.vlgmr.msra.gmra.mxu2 %v3623_v39 }
0x286c   :  { %2771 = vmatpush.msra.mxu2 %v6130_v23  ;;  %2794 = vmatpush.msra.mxu1 %v6131_v59 }
0x286e   :  { %2772 = vmatpush.msra.mxu2 %v6132_v51 }
0x2870   :  { %2773 = vmatpush.msra.mxu2 %v6133_v57 }
0x2872   :  { %2774 = vmatpush.msra.mxu2 %v6134_v43 }
0x28e2   :  { %v2372_v1 = vpop.f32.mrf.mxu1 }
0x28ee   :  { %v2352_v61 = vpop.f32.mrf.mxu2 }
0x28ef   :  { %v2353_v40 = vadd.f32 %v5465_v7, %v2352_v61  ;;  %v6136_v61 = vmov 1  }
0x28f1   :  { %v2373_v39 = vadd.f32 %v2372_v1, %v2353_v40  ;;  %v6137_v40 = vmov 2   ;;  %v6138_v1 = vmov 3  }
0x28f3   :  { %v2375_v23 = vsel %vm1432_vm7, %v2373_v39, -inf }
0x28f4   :  { %2376 = vmax.xlane.f32.xlu1 %v2375_v23 }
0x2967   :  { %v2377_v59 = vpop.xlane.xlu1 %2376 }
0x2968   :  { %v2378_v52 = vsub.f32 %v2373_v39, %v2377_v59 }
0x296a   :  { %v2379_v51 = vmul.f32 1.442695, %v2378_v52 }
0x296c   :  { %3624 = vpow2.f32 %v2379_v51 }
0x2972   :  { %v3625_v57 = vpop.eup %3624 }
0x2973   :  { %v2381_v43 = vsel %vm1432_vm7, %v3625_v57, 0.0 }
0x2974   :  { %2382 = vadd.xlane.f32.xlu0 %v2381_v43 }
0x29e7   :  { %v2383_v17 = vpop.xlane.xlu0 %2382 }
0x29e8   :  { %3626 = vrcp.f32 %v2383_v17 }
0x29ee   :  { %v3627_v15 = vpop.eup %3626 }
0x29ef   :  { %v2385_v22 = vmul.f32 %v3627_v15, %v3625_v57  ;;  %v6139_v15 = vmov 6  }
0x29f1   :  { %2430 = vperm.xlu0 %3490, %v2385_v22   ;;  %2418 = vperm.xlu1 %3488, %v2385_v22  }
0x29f2   :  { %2388 = vperm.xlu2 %3483, %v2385_v22  }
0x29f9   :  { %3491 = vset.pattern.permute.xlu0 %v6096_v14  ;;  %3495 = vset.pattern.permute.xlu1 %v6100_v38 }
0x29fa   :  { %3484 = vset.pattern.permute.xlu2 %v6136_v61 }
0x29fb   :  { %2394 = vperm.xlu2 %3484, %v2385_v22  }
0x2a03   :  { %3485 = vset.pattern.permute.xlu2 %v6137_v40 }
0x2a04   :  { %2400 = vperm.xlu2 %3485, %v2385_v22  }
0x2a0c   :  { %3486 = vset.pattern.permute.xlu2 %v6138_v1 }
0x2a0d   :  { %2406 = vperm.xlu2 %3486, %v2385_v22  }
0x2a15   :  { %3487 = vset.pattern.permute.xlu2 %v6100_v38 }
0x2a16   :  { %2412 = vperm.xlu2 %3487, %v2385_v22  }
0x2a1e   :  { %3489 = vset.pattern.permute.xlu2 %v6139_v15 }
0x2a1f   :  { %2424 = vperm.xlu2 %3489, %v2385_v22  }
0x2a27   :  { %3494 = vset.pattern.permute.xlu2 %v6138_v1 }
0x2a4c   :  { %v2389_v17 = vpop.permute.xlu2 %2388 }
0x2a4d   :  { %v2391_v51 = vmul.f32 %v2389_v17, %v6076_v9 }
0x2a55   :  { %v2395_v39 = vpop.permute.xlu2 %2394 }
0x2a56   :  { %v2397_v52 = vmul.f32 %v2395_v39, %v6103_v45 }
0x2a58   :  { %v2398_v43 = vadd.f32 %v2397_v52, %v2391_v51 }
0x2a5e   :  { %v2401_v23 = vpop.permute.xlu2 %2400 }
0x2a5f   :  { %v2403_v57 = vmul.f32 %v2401_v23, %v4236_v27 }
0x2a61   :  { %v2404_v40 = vadd.f32 %v2403_v57, %v2398_v43 }
0x2a63   :  { %v2419_v15 = vpop.permute.xlu1 %2418  ;;  %v2431_v13 = vpop.permute.xlu0 %2430 }
0x2a64   :  { %v2421_v7 = vmul.f32 %v2419_v15, %v4461_v49  ;;  %v2433_v17 = vmul.f32 %v2431_v13, %v4454_v21 }
0x2a67   :  { %v2407_v59 = vpop.permute.xlu2 %2406 }
0x2a68   :  { %v2409_v14 = vmul.f32 %v2407_v59, %v4340_v25  ;;  %v2478_v59 = vpop.f32.mrf.mxu0 }
0x2a6a   :  { %v2410_v22 = vadd.f32 %v2409_v14, %v2404_v40  ;;  %v5490_v14 = vld [vmem:[%s5869_s20] ss:$0 sm:$0xff] }
0x2a70   :  { %v2413_v38 = vpop.permute.xlu2 %2412 }
0x2a71   :  { %v2415_v61 = vmul.f32 %v2413_v38, %v4421_v46 }
0x2a73   :  { %v2416_v1 = vadd.f32 %v2415_v61, %v2410_v22  ;;  %v2479_v61 = vadd.f32 %v5490_v14, %v2478_v59 }
0x2a75   :  { %v2422_v34 = vadd.f32 %v2421_v7, %v2416_v1 }
0x2a79   :  { %v2425_v60 = vpop.permute.xlu2 %2424 }
0x2a7a   :  { %v2427_v39 = vmul.f32 %v2425_v60, %v4426_v50  ;;  %v6142_v60 = vld [vmem:[#allocation13_spill] sm:$0xff] }
0x2a7c   :  { %v2428_v23 = vadd.f32 %v2427_v39, %v2422_v34  ;;  %v5517_v34 = vld [vmem:[%s6053_s28] ss:$0 sm:$0xff] }
0x2a7d   :  { %6141 = vst [vmem:[#allocation17_spill] sm:$0xff] %v5517_v34  ;;  %v490_v13 = vadd.f32 %v5517_v34, %v6142_v60 }
0x2a7e   :  { %v2434_v52 = vadd.f32 %v2433_v17, %v2428_v23 }
0x2a80   :  { %2436 = vrot.lane.b32.xlu2 %v2434_v52, %s3746_s29 }
0x2a88   :  { %2502 = vrot.lane.b32.xlu2 %v2479_v61, %s3745_s0 }
0x2ada   :  { %v5494_v40 = vpop.permute.xlu2 %2436 }
0x2adb   :  { %6140 = vst [vmem:[#allocation36_spill] sm:$0xff] %v5494_v40  ;;  %3362 = vmatmul.msk.f32.vlgmr.msra.gmra.mxu3 %vm501_vm15, %v5494_v40 }
0x2adc   :  { %2569 = vmatpush.msra.mxu3 %v5065_v28 }
0x2ade   :  { %2570 = vmatpush.msra.mxu3 %v5071_v44 }
0x2ae0   :  { %2571 = vmatpush.msra.mxu3 %v5077_v30 }
0x2ae2   :  { %2572 = vmatpush.msra.mxu3 %v5083_v24 }
0x2ae4   :  { %2573 = vmatpush.msra.mxu3 %v5089_v36 }
0x2ae6   :  { %2574 = vmatpush.msra.mxu3 %v5095_v41 }
0x2ae8   :  { %2575 = vmatpush.msra.mxu3 %v5101_v29 }
0x2aea   :  { %2576 = vmatpush.msra.mxu3 %v5107_v62 }
0x2aec   :  { %2577 = vmatpush.msra.mxu3 %v5113_v33 }
0x2aee   :  { %2578 = vmatpush.msra.mxu3 %v5119_v32 }
0x2af0   :  { %2579 = vmatpush.msra.mxu3 %v5125_v54 }
0x2af2   :  { %2580 = vmatpush.msra.mxu3 %v5131_v5 }
0x2af4   :  { %2581 = vmatpush.msra.mxu3 %v5137_v8 }
0x2af6   :  { %2582 = vmatpush.msra.mxu3 %v5143_v35 }
0x2af8   :  { %2583 = vmatpush.msra.mxu3 %v5382_v20 }
0x2afa   :  { %2584 = vmatpush.msra.mxu3 %v5388_v19 }
0x2b5e   :  { %v2457_v7 = vpop.f32.mrf.mxu3 }
0x2b5f   :  { %v2460_v1 = vadd.f32 %v2457_v7, %v490_v13  ;;  %v2503_v13 = vpop.permute.xlu2 %2502 }
0x2b61   :  { %v2481_v15 = vadd.f32 %v2479_v61, %v2460_v1 }
0x2b63   :  { %v3364_v51 = vmul.f32 -1.442695, %v2481_v15 }
0x2b65   :  { %3628 = vpow2.f32 %v3364_v51 }
0x2b6b   :  { %v3629_v57 = vpop.eup %3628 }
0x2b6c   :  { %v2485_v43 = vadd.f32 1.0, %v3629_v57 }
0x2b6e   :  { %3630 = vrcp.f32 %v2485_v43  ;;  %v2497_v17 = vand.u32 2147483648, %v2485_v43  ;;  %v2495_v52 = vand.u32 2147483647, %v2485_v43  ;;  %vm2491_vm13 = vweird.f32 %v2485_v43 }
0x2b70   :  { %v2498_v40 = vor.u32 1.1754944e-38, %v2497_v17  ;;  %vm2496_vm0 = vcmp.eq.f32.partialorder %v2495_v52, 8.507059e+37 }
0x2b74   :  { %v3631_v38 = vpop.eup %3630 }
0x2b75   :  { %v2487_v22 = vmul.f32 %v3631_v38, %v2485_v43  ;;  %vm2492_vm12 = vweird.f32 %v3631_v38 }
0x2b76   :  { %vm2493_vm14 = vmor %vm2491_vm13, %vm2492_vm12  ;;  %vm3255_vm12 = vcmask 7168  }
0x2b77   :  { %v2488_v39 = vsub.f32 1.0, %v2487_v22 }
0x2b79   :  { %v2489_v23 = vmul.f32 %v3631_v38, %v2488_v39 }
0x2b7b   :  { %v2490_v59 = vadd.f32 %v3631_v38, %v2489_v23 }
0x2b7d   :  { %v2494_v60 = vsel %vm2493_vm14, %v3631_v38, %v2490_v59 }
0x2b7e   :  { %v2499_v61 = vsel %vm2496_vm0, %v2498_v40, %v2494_v60  ;;  %v6150_v60 = vmov 6  }
0x2b7f   :  { %v2505_v7 = vmul.f32 %v2503_v13, %v2499_v61  ;;  %v2512_v22 = vsub.f32 1.0, %v2499_v61  ;;  %v2518_v23 = vmul.f32 %v2499_v61, %v5396_v11  ;;  %v6151_v13 = vmov 1  }
0x2b81   :  { %2507 = vrot.lane.b32.xlu1 %v2505_v7, %s3745_s0 }
0x2bf3   :  { %v2508_v15 = vpop.permute.xlu1 %2507 }
0x2bf4   :  { %v2510_v51 = vadd.f32 %v2508_v15, %v2460_v1  ;;  %v6152_v15 = vmov 2  }
0x2bf6   :  { %3632 = vtanh.f32 %v2510_v51  ;;  %v6153_v51 = vmov 3  }
0x2bfc   :  { %v3633_v57 = vpop.eup %3632 }
0x2bfd   :  { %2514 = vrot.lane.b32.xlu2 %v3633_v57, %s3746_s29  ;;  %v6154_v57 = vmov 5  }
0x2c57   :  { %v2515_v39 = vpop.permute.xlu2 %2514 }
0x2c58   :  { %v2517_v43 = vmul.f32 %v2515_v39, %v2512_v22  ;;  %v6155_v22 = vmov 7   ;;  %v6156_v39 = vmov 0  }
0x2c5a   :  { %v5524_v34 = vadd.f32 %v2518_v23, %v2517_v43 }
0x2c5c   :  { %2521 = vrot.lane.b32.xlu1 %v5524_v34, %s3746_s29 }
0x2cce   :  { %v5528_v40 = vpop.permute.xlu1 %2521 }
0x2ccf   :  { %3365 = vmatmul.msk.f32.vlgmr.msrb.gmra.mxu3 %vm501_vm15, %v5528_v40  ;;  %3366 = vmatmul.msk.f32.vlgmr.msra.gmra.mxu0 %vm501_vm15, %v5528_v40 }
0x2cd0   :  { %3368 = vmatmul.msk.f32.vlgmr.msrb.gmra.mxu1 %vm501_vm15, %v5528_v40  ;;  %2941 = vmatpush.msra.mxu0 %v5168_v6  ;;  %v6143_v6 = vld [vmem:[#allocation16_spill] sm:$0xff] }
0x2cd1   :  { %2823 = vmatpush.msrb.mxu1 %v5174_v0  ;;  %2920 = vmatpush.msrb.mxu3 %v5413_v55  ;;  %v6144_v0 = vld [vmem:[#allocation37_spill] sm:$0xff] }
0x2cd2   :  { %2942 = vmatpush.msra.mxu0 %v5181_v48  ;;  %v6145_v48 = vld [vmem:[#allocation10_spill] sm:$0xff] }
0x2cd3   :  { %2824 = vmatpush.msrb.mxu1 %v5187_v18  ;;  %2921 = vmatpush.msrb.mxu3 %v5421_v53  ;;  %v6146_v18 = vld [vmem:[#allocation30_spill] sm:$0xff] }
0x2cd4   :  { %2943 = vmatpush.msra.mxu0 %v5194_v56 }
0x2cd5   :  { %2825 = vmatpush.msrb.mxu1 %v5200_v4  ;;  %2922 = vmatpush.msrb.mxu3 %v5429_v26  ;;  %v6147_v4 = vld [vmem:[#allocation35_spill] sm:$0xff] }
0x2cd6   :  { %2944 = vmatpush.msra.mxu0 %v5207_v47 }
0x2cd7   :  { %2826 = vmatpush.msrb.mxu1 %v5213_v16  ;;  %2923 = vmatpush.msrb.mxu3 %v5437_v63 }
0x2cd9   :  { %2827 = vmatpush.msrb.mxu1 %v5220_v58  ;;  %v6148_v58 = vld [vmem:[#allocation34_spill] sm:$0xff] }
0x2cdb   :  { %2828 = vmatpush.msrb.mxu1 %v5226_v12 }
0x2cdd   :  { %2829 = vmatpush.msrb.mxu1 %v5232_v42 }
0x2cdf   :  { %2830 = vmatpush.msrb.mxu1 %v5238_v37 }
0x2ce1   :  { %2831 = vmatpush.msrb.mxu1 %v5244_v2 }
0x2ce3   :  { %2832 = vmatpush.msrb.mxu1 %v5250_v10  ;;  %v6149_v10 = vld [vmem:[#allocation24_spill] sm:$0xff] }
0x2ce5   :  { %2833 = vmatpush.msrb.mxu1 %v5256_v31 }
0x2ce7   :  { %2834 = vmatpush.msrb.mxu1 %v5262_v3 }
0x2ce9   :  { %2835 = vmatpush.msrb.mxu1 %v6143_v6 }
0x2ceb   :  { %2836 = vmatpush.msrb.mxu1 %v6144_v0 }
0x2ced   :  { %2837 = vmatpush.msrb.mxu1 %v6145_v48 }
0x2cef   :  { %2838 = vmatpush.msrb.mxu1 %v6146_v18 }
0x2d4c   :  { %v2562_v56 = vpop.f32.mrf.mxu0 }
0x2d4d   :  { %v2566_v47 = vadd.f32 %v2562_v56, %v6147_v4  ;;  %v2712_v61 = vpop.f32.mrf.mxu1 }
0x2d4e   :  { %v2713_v7 = vadd.f32 %v5490_v14, %v2712_v61 }
0x2d4f   :  { %3634 = vtanh.f32 %v2566_v47 }
0x2d52   :  { %v2542_v16 = vpop.f32.mrf.mxu3 }
0x2d53   :  { %v2565_v12 = vadd.f32 %v2542_v16, %v6148_v58 }
0x2d55   :  { %v3635_v42 = vpop.eup %3634  ;;  %3636 = vtanh.f32 %v2565_v12 }
0x2d56   :  { %2605 = vmatmul.f32.vlgmr.msrb.gmra.mxu0 %v3635_v42 }
0x2d5b   :  { %v3637_v37 = vpop.eup %3636 }
0x2d5c   :  { %2585 = vmatmul.f32.vlgmr.msra.gmra.mxu3 %v3637_v37 }
0x2dd3   :  { %v2606_v3 = vpop.f32.mrf.mxu0 }
0x2ddf   :  { %v2586_v2 = vpop.f32.mrf.mxu3 }
0x2de0   :  { %v2587_v31 = vadd.f32 %v6149_v10, %v2586_v2 }
0x2de2   :  { %v2607_v11 = vadd.f32 %v2606_v3, %v2587_v31 }
0x2de4   :  { %v2609_v55 = vsel %vm1432_vm7, %v2607_v11, -inf }
0x2de5   :  { %2610 = vmax.xlane.f32.xlu2 %v2609_v55 }
0x2e58   :  { %v2611_v53 = vpop.xlane.xlu2 %2610 }
0x2e59   :  { %v2612_v26 = vsub.f32 %v2607_v11, %v2611_v53 }
0x2e5b   :  { %v2613_v63 = vmul.f32 1.442695, %v2612_v26 }
0x2e5d   :  { %3638 = vpow2.f32 %v2613_v63 }
0x2e63   :  { %v3639_v1 = vpop.eup %3638 }
0x2e64   :  { %v2615_v38 = vsel %vm1432_vm7, %v3639_v1, 0.0 }
0x2e65   :  { %2616 = vadd.xlane.f32.xlu1 %v2615_v38 }
0x2ed8   :  { %v2617_v17 = vpop.xlane.xlu1 %2616 }
0x2ed9   :  { %3640 = vrcp.f32 %v2617_v17 }
0x2edf   :  { %v3641_v52 = vpop.eup %3640 }
0x2ee0   :  { %v2619_v59 = vmul.f32 %v3641_v52, %v3639_v1 }
0x2ee2   :  { %2646 = vperm.xlu1 %3495, %v2619_v59   ;;  %2640 = vperm.xlu2 %3494, %v2619_v59  }
0x2ee3   :  { %2622 = vperm.xlu0 %3491, %v2619_v59  }
0x2eea   :  { %3497 = vset.pattern.permute.xlu2 %v6150_v60 }
0x2eeb   :  { %3492 = vset.pattern.permute.xlu0 %v6151_v13  ;;  %2658 = vperm.xlu2 %3497, %v2619_v59  }
0x2eec   :  { %2628 = vperm.xlu0 %3492, %v2619_v59  }
0x2ef3   :  { %2736 = vrot.lane.b32.xlu2 %v2713_v7, %s3745_s0 }
0x2ef4   :  { %3493 = vset.pattern.permute.xlu0 %v6152_v15  ;;  %3502 = vset.pattern.permute.xlu2 %v6153_v51 }
0x2ef5   :  { %2634 = vperm.xlu0 %3493, %v2619_v59  }
0x2efd   :  { %3496 = vset.pattern.permute.xlu0 %v6154_v57 }
0x2efe   :  { %2652 = vperm.xlu0 %3496, %v2619_v59  }
0x2f06   :  { %3498 = vset.pattern.permute.xlu0 %v6155_v22 }
0x2f07   :  { %2664 = vperm.xlu0 %3498, %v2619_v59  }
0x2f0f   :  { %3499 = vset.pattern.permute.xlu0 %v6156_v39 }
0x2f3c   :  { %v2641_v47 = vpop.permute.xlu2 %2640 }
0x2f3d   :  { %v2643_v12 = vmul.f32 %v2641_v47, %v4340_v25 }
0x2f45   :  { %v2659_v55 = vpop.permute.xlu2 %2658 }
0x2f46   :  { %v2661_v26 = vmul.f32 %v2659_v55, %v4426_v50  ;;  %v3078_v55 = vld [vmem:[%s5873_s23 + $0x8] sm:$0xff] }
0x2f4d   :  { %v2737_v51 = vpop.permute.xlu2 %2736 }
0x2f54   :  { %v2647_v42 = vpop.permute.xlu1 %2646 }
0x2f55   :  { %v2623_v23 = vpop.permute.xlu0 %2622  ;;  %v2649_v31 = vmul.f32 %v2647_v42, %v4421_v46  ;;  %v2989_v42 = vld [vmem:[%s5872_s21 + $0x8] sm:$0xff] }
0x2f56   :  { %v2625_v48 = vmul.f32 %v2623_v23, %v6076_v9 }
0x2f5e   :  { %v2629_v43 = vpop.permute.xlu0 %2628 }
0x2f5f   :  { %v2631_v6 = vmul.f32 %v2629_v43, %v6103_v45 }
0x2f61   :  { %v2632_v56 = vadd.f32 %v2631_v6, %v2625_v48 }
0x2f67   :  { %v2635_v0 = vpop.permute.xlu0 %2634 }
0x2f68   :  { %v2637_v18 = vmul.f32 %v2635_v0, %v4236_v27 }
0x2f6a   :  { %v2638_v16 = vadd.f32 %v2637_v18, %v2632_v56 }
0x2f6c   :  { %v2644_v37 = vadd.f32 %v2643_v12, %v2638_v16  ;;  %v2991_v16 = vld [vmem:[%s5872_s21 + $0x18] sm:$0xff]  ;;  %v2990_v12 = vld [vmem:[%s5872_s21 + $0x10] sm:$0xff] }
0x2f6d   :  { %3051 = vmatpush.msrb.mxu0 %v2991_v16 }
0x2f6e   :  { %v2650_v11 = vadd.f32 %v2649_v31, %v2644_v37  ;;  %v6160_v31 = vld [vmem:[#allocation27_spill] sm:$0xff] }
0x2f6f   :  { %3052 = vmatpush.msrb.mxu0 %v2990_v12 }
0x2f70   :  { %v2653_v2 = vpop.permute.xlu0 %2652 }
0x2f71   :  { %v2655_v3 = vmul.f32 %v2653_v2, %v4461_v49  ;;  %3053 = vmatpush.msrb.mxu0 %v2989_v42  ;;  %v6159_v2 = vld [vmem:[#allocation39_spill] sm:$0xff] }
0x2f73   :  { %v2656_v53 = vadd.f32 %v2655_v3, %v2650_v11  ;;  %v6161_v3 = vld [vmem:[#allocation29_spill] sm:$0xff]  ;;  %v6162_v11 = vld [vmem:[#allocation22_spill] sm:$0xff] }
0x2f75   :  { %v2662_v1 = vadd.f32 %v2661_v26, %v2656_v53  ;;  %v3077_v53 = vld [vmem:[%s5873_s23] sm:$0xff] }
0x2f79   :  { %v2665_v63 = vpop.permute.xlu0 %2664 }
0x2f7a   :  { %v2667_v38 = vmul.f32 %v2665_v63, %v4454_v21 }
0x2f7c   :  { %v2668_v17 = vadd.f32 %v2667_v38, %v2662_v1 }
0x2f7e   :  { %2670 = vrot.lane.b32.xlu1 %v2668_v17, %s3746_s29 }
0x2ff0   :  { %v5583_v52 = vpop.permute.xlu1 %2670 }
0x2ff1   :  { %3367 = vmatmul.msk.f32.vlgmr.msrb.gmra.mxu2 %vm501_vm15, %v5583_v52 }
0x2ff2   :  { %2803 = vmatpush.msrb.mxu2 %v5065_v28  ;;  %v6157_v28 = vld [vmem:[#allocation14_spill] sm:$0xff] }
0x2ff4   :  { %2804 = vmatpush.msrb.mxu2 %v5071_v44  ;;  %v6158_v44 = vld [vmem:[#allocation17_spill] sm:$0xff] }
0x2ff6   :  { %2805 = vmatpush.msrb.mxu2 %v5077_v30  ;;  %v493_v30 = vadd.f32 %v6158_v44, %v6157_v28  ;;  %v6163_v28 = vld [vmem:[#allocation3_spill] sm:$0xff] }
0x2ff8   :  { %2806 = vmatpush.msrb.mxu2 %v5083_v24 }
0x2ffa   :  { %2807 = vmatpush.msrb.mxu2 %v5089_v36 }
0x2ffc   :  { %2808 = vmatpush.msrb.mxu2 %v5095_v41 }
0x2ffe   :  { %2809 = vmatpush.msrb.mxu2 %v5101_v29 }
0x3000   :  { %2810 = vmatpush.msrb.mxu2 %v5107_v62 }
0x3002   :  { %2811 = vmatpush.msrb.mxu2 %v5113_v33 }
0x3004   :  { %2812 = vmatpush.msrb.mxu2 %v5119_v32 }
0x3006   :  { %2813 = vmatpush.msrb.mxu2 %v5125_v54 }
0x3008   :  { %2814 = vmatpush.msrb.mxu2 %v5131_v5 }
0x300a   :  { %2815 = vmatpush.msrb.mxu2 %v5137_v8 }
0x300c   :  { %2816 = vmatpush.msrb.mxu2 %v5143_v35 }
0x300e   :  { %2817 = vmatpush.msrb.mxu2 %v5382_v20 }
0x3010   :  { %2818 = vmatpush.msrb.mxu2 %v5388_v19 }
0x3074   :  { %v2691_v24 = vpop.f32.mrf.mxu2 }
0x3075   :  { %v2694_v36 = vadd.f32 %v2691_v24, %v493_v30  ;;  %v6164_v30 = vld [vmem:[#allocation4_spill] sm:$0xff]  ;;  %v6165_v24 = vld [vmem:[#allocation5_spill] sm:$0xff] }
0x3077   :  { %v2715_v41 = vadd.f32 %v2713_v7, %v2694_v36 }
0x3079   :  { %v3369_v29 = vmul.f32 -1.442695, %v2715_v41  ;;  %v6169_v41 = vld [vmem:[#allocation9_spill] sm:$0xff] }
0x307b   :  { %3642 = vpow2.f32 %v3369_v29 }
0x3081   :  { %v3643_v62 = vpop.eup %3642 }
0x3082   :  { %v2719_v33 = vadd.f32 1.0, %v3643_v62 }
0x3084   :  { %3644 = vrcp.f32 %v2719_v33  ;;  %v2731_v8 = vand.u32 2147483648, %v2719_v33  ;;  %v2729_v20 = vand.u32 2147483647, %v2719_v33  ;;  %vm2725_vm2 = vweird.f32 %v2719_v33 }
0x3086   :  { %v2732_v19 = vor.u32 1.1754944e-38, %v2731_v8  ;;  %vm2730_vm4 = vcmp.eq.f32.partialorder %v2729_v20, 8.507059e+37 }
0x308a   :  { %v3645_v32 = vpop.eup %3644 }
0x308b   :  { %v2721_v54 = vmul.f32 %v3645_v32, %v2719_v33  ;;  %vm2726_vm1 = vweird.f32 %v3645_v32 }
0x308c   :  { %vm2727_vm3 = vmor %vm2725_vm2, %vm2726_vm1 }
0x308d   :  { %v2722_v5 = vsub.f32 1.0, %v2721_v54 }
0x308f   :  { %v2723_v35 = vmul.f32 %v3645_v32, %v2722_v5 }
0x3091   :  { %v2724_v59 = vadd.f32 %v3645_v32, %v2723_v35 }
0x3093   :  { %v2728_v61 = vsel %vm2727_vm3, %v3645_v32, %v2724_v59 }
0x3094   :  { %v2733_v7 = vsel %vm2730_vm4, %v2732_v19, %v2728_v61 }
0x3095   :  { %v2739_v39 = vmul.f32 %v2737_v51, %v2733_v7  ;;  %v2746_v0 = vsub.f32 1.0, %v2733_v7  ;;  %v2752_v18 = vmul.f32 %v2733_v7, %v5524_v34  ;;  %v2988_v34 = vld [vmem:[%s5872_s21] sm:$0xff] }
0x3096   :  { %3054 = vmatpush.msrb.mxu0 %v2988_v34 }
0x3097   :  { %2741 = vrot.lane.b32.xlu1 %v2739_v39, %s3745_s0 }
0x3109   :  { %v2742_v23 = vpop.permute.xlu1 %2741 }
0x310a   :  { %v2744_v43 = vadd.f32 %v2742_v23, %v2694_v36  ;;  %v6166_v36 = vld [vmem:[#allocation6_spill] sm:$0xff] }
0x310c   :  { %3646 = vtanh.f32 %v2744_v43 }
0x3112   :  { %v3647_v6 = vpop.eup %3646 }
0x3113   :  { %2748 = vrot.lane.b32.xlu2 %v3647_v6, %s3746_s29 }
0x316d   :  { %v2749_v48 = vpop.permute.xlu2 %2748 }
0x316e   :  { %v2751_v56 = vmul.f32 %v2749_v48, %v2746_v0 }
0x3170   :  { %v5608_v47 = vadd.f32 %v2752_v18, %v2751_v56 }
0x3172   :  { %2755 = vrot.lane.b32.xlu0 %v5608_v47, %s3746_s29 }
0x31e4   :  { %v2756_v37 = vpop.permute.xlu0 %2755 }
0x31e5   :  { %3370 = vmatmul.msk.f32.vlgmr.msra.gmra.mxu2 %vm501_vm15, %v2756_v37  ;;  %3371 = vmatmul.msk.f32.vlgmr.msra.gmra.mxu1 %vm501_vm15, %v2756_v37 }
0x31e6   :  { %3373 = vmatmul.msk.f32.vlgmr.msra.gmra.mxu0 %vm501_vm15, %v2756_v37  ;;  %3093 = vmatpush.msra.mxu2 %v3078_v55  ;;  %v6173_v55 = vld [vmem:[#allocation20_spill] sm:$0xff] }
0x31e8   :  { %3094 = vmatpush.msra.mxu2 %v3077_v53  ;;  %v6174_v53 = vld [vmem:[#allocation36_spill] sm:$0xff] }
0x31ee   :  { %3382 = vmatmul.msk.f32.vlgmr.msrb.gmra.mxu0 %vm501_vm15, %v6159_v2 }
0x31f6   :  { %3383 = vmatmul.msk.f32.gmra.mxu0 %vm501_vm15, %v6160_v31 }
0x31fe   :  { %3384 = vmatmul.msk.f32.gmra.mxu0 %vm501_vm15, %v6161_v3  ;;  %v6171_v3 = vld [vmem:[#allocation26_spill] sm:$0xff] }
0x3206   :  { %3385 = vmatmul.msk.f32.gmra.mxu0 %vm501_vm15, %v6162_v11  ;;  %v6172_v11 = vld [vmem:[#allocation28_spill] sm:$0xff] }
0x320e   :  { %3386 = vmatmul.msk.f32.gmra.mxu0 %vm501_vm15, %v5528_v40 }
0x3216   :  { %3387 = vmatmul.msk.f32.gmra.mxu0 %vm501_vm15, %v2756_v37 }
0x3262   :  { %v2796_v26 = vpop.f32.mrf.mxu1 }
0x3263   :  { %v2800_v63 = vadd.f32 %v2796_v26, %v6147_v4  ;;  %v6167_v4 = vld [vmem:[#allocation7_spill] sm:$0xff] }
0x3264   :  { %v6175_v26 = vld [vmem:[#allocation15_spill] sm:$0xff] }
0x3265   :  { %3648 = vtanh.f32 %v2800_v63  ;;  %v496_v63 = vadd.f32 %v6158_v44, %v6175_v26 }
0x3268   :  { %v2776_v1 = vpop.f32.mrf.mxu2 }
0x3269   :  { %v2799_v38 = vadd.f32 %v2776_v1, %v6148_v58  ;;  %v6168_v58 = vld [vmem:[#allocation8_spill] sm:$0xff] }
0x326b   :  { %v3649_v40 = vpop.eup %3648  ;;  %3650 = vtanh.f32 %v2799_v38 }
0x326c   :  { %2839 = vmatmul.f32.vlgmr.msrb.gmra.mxu1 %v3649_v40 }
0x3271   :  { %v3651_v17 = vpop.eup %3650 }
0x3272   :  { %2819 = vmatmul.f32.vlgmr.msrb.gmra.mxu2 %v3651_v17 }
0x327a   :  { %3389 = vmatmul.msk.f32.vlgmr.msra.gmra.mxu2 %vm264_vm10, %v6163_v28 }
0x3282   :  { %3390 = vmatmul.msk.f32.gmra.mxu2 %vm264_vm10, %v6164_v30 }
0x328a   :  { %3391 = vmatmul.msk.f32.gmra.mxu2 %vm264_vm10, %v6165_v24 }
0x3292   :  { %3392 = vmatmul.msk.f32.gmra.mxu2 %vm264_vm10, %v6166_v36 }
0x329a   :  { %3393 = vmatmul.msk.f32.gmra.mxu2 %vm264_vm10, %v6167_v4 }
0x32a2   :  { %3394 = vmatmul.msk.f32.gmra.mxu2 %vm264_vm10, %v6168_v58 }
0x32aa   :  { %3395 = vmatmul.msk.f32.gmra.mxu2 %vm264_vm10, %v6169_v41 }
0x32e9   :  { %v2840_v33 = vpop.f32.mrf.mxu1 }
0x32f5   :  { %v2820_v29 = vpop.f32.mrf.mxu2 }
0x32f6   :  { %v2821_v62 = vadd.f32 %v6149_v10, %v2820_v29  ;;  %v2946_v10 = vpop.f32.mrf.mxu0 }
0x32f7   :  { %v2947_v7 = vadd.f32 %v5490_v14, %v2946_v10 }
0x32f8   :  { %v2841_v32 = vadd.f32 %v2840_v33, %v2821_v62 }
0x32fa   :  { %v2843_v54 = vsel %vm1432_vm7, %v2841_v32, -inf }
0x32fb   :  { %2844 = vmax.xlane.f32.xlu1 %v2843_v54 }
0x336e   :  { %v2845_v5 = vpop.xlane.xlu1 %2844 }
0x336f   :  { %v2846_v8 = vsub.f32 %v2841_v32, %v2845_v5 }
0x3371   :  { %v2847_v35 = vmul.f32 1.442695, %v2846_v8  ;;  %v3056_v8 = vpop.f32.mrf.mxu0 }
0x3373   :  { %3652 = vpow2.f32 %v2847_v35  ;;  %v3096_v35 = vpop.f32.mrf.mxu2 }
0x3379   :  { %v3653_v20 = vpop.eup %3652 }
0x337a   :  { %v2849_v59 = vsel %vm1432_vm7, %v3653_v20, 0.0 }
0x337b   :  { %2850 = vadd.xlane.f32.xlu2 %v2849_v59  ;;  %v3059_v59 = vpop.f32.mrf.mxu0 }
0x33ee   :  { %v2851_v19 = vpop.xlane.xlu2 %2850 }
0x33ef   :  { %3654 = vrcp.f32 %v2851_v19  ;;  %v3099_v19 = vpop.f32.mrf.mxu2 }
0x33f5   :  { %v3655_v61 = vpop.eup %3654 }
0x33f6   :  { %v2853_v51 = vmul.f32 %v3655_v61, %v3653_v20 }
0x33f8   :  { %2880 = vperm.xlu1 %3495, %v2853_v51   ;;  %2874 = vperm.xlu2 %3502, %v2853_v51  }
0x33f9   :  { %2856 = vperm.xlu0 %3499, %v2853_v51  }
0x3400   :  { %3505 = vset.pattern.permute.xlu1 %v6155_v22  ;;  %3504 = vset.pattern.permute.xlu2 %v6150_v60 }
0x3401   :  { %3500 = vset.pattern.permute.xlu0 %v6151_v13  ;;  %2898 = vperm.xlu1 %3505, %v2853_v51  }
0x3402   :  { %2892 = vperm.xlu2 %3504, %v2853_v51   ;;  %2862 = vperm.xlu0 %3500, %v2853_v51  }
0x340a   :  { %2970 = vrot.lane.b32.xlu2 %v2947_v7, %s3745_s0  ;;  %3501 = vset.pattern.permute.xlu0 %v6152_v15 }
0x340b   :  { %2868 = vperm.xlu0 %3501, %v2853_v51  }
0x3413   :  { %3503 = vset.pattern.permute.xlu0 %v6154_v57 }
0x3414   :  { %2886 = vperm.xlu0 %3503, %v2853_v51   ;;  %v3062_v51 = vpop.f32.mrf.mxu0 }
0x341c   :  { %3506 = vset.pattern.permute.xlu0 %v6155_v22 }
0x3452   :  { %v2875_v23 = vpop.permute.xlu2 %2874 }
0x3453   :  { %v2877_v15 = vmul.f32 %v2875_v23, %v4340_v25  ;;  %v2994_v25 = vld [vmem:[%s5874_s22 + $0x10] sm:$0xff]  ;;  %v3065_v23 = vpop.f32.mrf.mxu0 }
0x345c   :  { %v2893_v16 = vpop.permute.xlu2 %2892 }
0x345d   :  { %v2895_v34 = vmul.f32 %v2893_v16, %v4426_v50  ;;  %v2992_v50 = vld [vmem:[%s5874_s22] sm:$0xff] }
0x3464   :  { %v2971_v33 = vpop.permute.xlu2 %2970 }
0x346a   :  { %v2881_v0 = vpop.permute.xlu1 %2880 }
0x346b   :  { %v2857_v39 = vpop.permute.xlu0 %2856  ;;  %v2883_v57 = vmul.f32 %v2881_v0, %v4421_v46  ;;  %v2993_v46 = vld [vmem:[%s5874_s22 + $0x8] sm:$0xff] }
0x346c   :  { %v2859_v43 = vmul.f32 %v2857_v39, %v6076_v9 }
0x3474   :  { %v2863_v60 = vpop.permute.xlu0 %2862 }
0x3475   :  { %v2865_v13 = vmul.f32 %v2863_v60, %v6103_v45  ;;  %v2899_v45 = vpop.permute.xlu1 %2898  ;;  %v5712_v60 = vld [vmem:[%s5875_s24] ss:$0 sm:$0xff] }
0x3476   :  { %v2901_v37 = vmul.f32 %v2899_v45, %v4454_v21 }
0x3477   :  { %v2866_v14 = vadd.f32 %v2865_v13, %v2859_v43 }
0x347d   :  { %v2869_v6 = vpop.permute.xlu0 %2868 }
0x347e   :  { %v2871_v48 = vmul.f32 %v2869_v6, %v4236_v27  ;;  %v2995_v27 = vld [vmem:[%s5874_s22 + $0x18] sm:$0xff] }
0x347f   :  { %3008 = vmatpush.msra.mxu3 %v2995_v27 }
0x3480   :  { %v2872_v18 = vadd.f32 %v2871_v48, %v2866_v14 }
0x3481   :  { %3009 = vmatpush.msra.mxu3 %v2994_v25 }
0x3482   :  { %v2878_v56 = vadd.f32 %v2877_v15, %v2872_v18 }
0x3483   :  { %3010 = vmatpush.msra.mxu3 %v2993_v46 }
0x3484   :  { %v2884_v12 = vadd.f32 %v2883_v57, %v2878_v56 }
0x3485   :  { %3011 = vmatpush.msra.mxu3 %v2992_v50 }
0x3486   :  { %v2887_v22 = vpop.permute.xlu0 %2886 }
0x3487   :  { %v2889_v42 = vmul.f32 %v2887_v22, %v4461_v49  ;;  %v6170_v49 = vld [vmem:[#allocation38_spill] sm:$0xff] }
0x3489   :  { %v2890_v9 = vadd.f32 %v2889_v42, %v2884_v12  ;;  %v3068_v42 = vpop.f32.mrf.mxu0 }
0x348b   :  { %v2896_v2 = vadd.f32 %v2895_v34, %v2890_v9 }
0x348d   :  { %v2902_v31 = vadd.f32 %v2901_v37, %v2896_v2 }
0x348f   :  { %2904 = vrot.lane.b32.xlu0 %v2902_v31, %s3746_s29 }
0x3501   :  { %v2905_v21 = vpop.permute.xlu0 %2904 }
0x3502   :  { %3372 = vmatmul.msk.f32.vlgmr.msrb.gmra.mxu3 %vm501_vm15, %v2905_v21 }
0x350a   :  { %3375 = vmatmul.msk.f32.vlgmr.msra.gmra.mxu3 %vm501_vm15, %v6170_v49 }
0x3512   :  { %3376 = vmatmul.msk.f32.gmra.mxu3 %vm501_vm15, %v6171_v3 }
0x351a   :  { %3377 = vmatmul.msk.f32.gmra.mxu3 %vm501_vm15, %v6172_v11 }
0x3522   :  { %3378 = vmatmul.msk.f32.gmra.mxu3 %vm501_vm15, %v6173_v55 }
0x352a   :  { %3379 = vmatmul.msk.f32.gmra.mxu3 %vm501_vm15, %v6174_v53 }
0x3532   :  { %3380 = vmatmul.msk.f32.gmra.mxu3 %vm501_vm15, %v5583_v52 }
0x353a   :  { %3381 = vmatmul.msk.f32.gmra.mxu3 %vm501_vm15, %v2905_v21 }
0x3585   :  { %v2925_v1 = vpop.f32.mrf.mxu3 }
0x3586   :  { %v2928_v38 = vadd.f32 %v2925_v1, %v496_v63 }
0x3588   :  { %v2949_v40 = vadd.f32 %v2947_v7, %v2928_v38  ;;  %v3102_v7 = vpop.f32.mrf.mxu2 }
0x358a   :  { %v3374_v17 = vmul.f32 -1.442695, %v2949_v40  ;;  %v3071_v40 = vpop.f32.mrf.mxu0 }
0x358c   :  { %3656 = vpow2.f32 %v3374_v17 }
0x358d   :  { %v3013_v5 = vpop.f32.mrf.mxu3 }
0x358e   :  { %v3057_v10 = vadd.f32 %v3056_v8, %v3013_v5 }
0x3590   :  { %v3117_v39 = vadd.f32 %v3096_v35, %v3057_v10  ;;  %v3105_v0 = vpop.f32.mrf.mxu2 }
0x3592   :  { %v3657_v28 = vpop.eup %3656  ;;  %v5715_v43 = vadd.f32 %v5712_v60, %v3117_v39 }
0x3593   :  { %v2953_v30 = vadd.f32 1.0, %v3657_v28 }
0x3595   :  { %3658 = vrcp.f32 %v2953_v30  ;;  %v2965_v58 = vand.u32 2147483648, %v2953_v30  ;;  %v2963_v52 = vand.u32 2147483647, %v2953_v30  ;;  %vm2959_vm7 = vweird.f32 %v2953_v30  ;;  %v3016_v20 = vpop.f32.mrf.mxu3 }
0x3596   :  { %v3060_v57 = vadd.f32 %v3059_v59, %v3016_v20  ;;  %v6176_v20 = vld [vmem:[#allocation2_spill] sm:$0xff] }
0x3597   :  { %v2966_v62 = vor.u32 1.1754944e-38, %v2965_v58  ;;  %vm2964_vm6 = vcmp.eq.f32.partialorder %v2963_v52, 8.507059e+37  ;;  %v5760_v59 = vcvt.s32.f32 %v6176_v20 }
0x3598   :  { %v3118_v16 = vadd.f32 %v3099_v19, %v3060_v57  ;;  %v3108_v9 = vpop.f32.mrf.mxu2 }
0x359a   :  { %v5726_v45 = vadd.f32 %v5712_v60, %v3118_v16 }
0x359b   :  { %v3659_v24 = vpop.eup %3658 }
0x359c   :  { %v2955_v36 = vmul.f32 %v3659_v24, %v2953_v30  ;;  %vm2960_vm10 = vweird.f32 %v3659_v24 }
0x359d   :  { %vm2961_vm5 = vmor %vm2959_vm7, %vm2960_vm10  ;;  %v3019_v61 = vpop.f32.mrf.mxu3 }
0x359e   :  { %v2956_v4 = vsub.f32 1.0, %v2955_v36  ;;  %v3063_v63 = vadd.f32 %v3062_v51, %v3019_v61 }
0x35a0   :  { %v2957_v41 = vmul.f32 %v3659_v24, %v2956_v4  ;;  %v3119_v1 = vadd.f32 %v3102_v7, %v3063_v63 }
0x35a2   :  { %v2958_v29 = vadd.f32 %v3659_v24, %v2957_v41  ;;  %v5741_v28 = vadd.f32 %v5712_v60, %v3119_v1 }
0x35a4   :  { %v2962_v44 = vsel %vm2961_vm5, %v3659_v24, %v2958_v29  ;;  %v3111_v24 = vpop.f32.mrf.mxu2 }
0x35a5   :  { %v2967_v32 = vsel %vm2964_vm6, %v2966_v62, %v2962_v44  ;;  %v3022_v13 = vpop.f32.mrf.mxu3 }
0x35a6   :  { %v2973_v54 = vmul.f32 %v2971_v33, %v2967_v32  ;;  %v3066_v6 = vadd.f32 %v3065_v23, %v3022_v13  ;;  %v2980_v3 = vsub.f32 1.0, %v2967_v32  ;;  %v2986_v55 = vmul.f32 %v2967_v32, %v5608_v47 }
0x35a8   :  { %2975 = vrot.lane.b32.xlu1 %v2973_v54, %s3745_s0  ;;  %v3120_v14 = vadd.f32 %v3105_v0, %v3066_v6 }
0x35aa   :  { %v5719_v48 = vadd.f32 %v5712_v60, %v3120_v14 }
0x35ad   :  { %v3025_v22 = vpop.f32.mrf.mxu3 }
0x35ae   :  { %v3069_v34 = vadd.f32 %v3068_v42, %v3025_v22 }
0x35b0   :  { %v3121_v2 = vadd.f32 %v3108_v9, %v3069_v34 }
0x35b2   :  { %v5732_v27 = vadd.f32 %v5712_v60, %v3121_v2 }
0x35d2   :  { %3135 = vmax.xlane.f32.xlu1 %v5715_v43 }
0x35da   :  { %3141 = vmax.xlane.f32.xlu1 %v5719_v48 }
0x361a   :  { %v2976_v18 = vpop.permute.xlu1 %2975 }
0x361b   :  { %v2978_v15 = vadd.f32 %v2976_v18, %v2928_v38  ;;  %v3028_v38 = vpop.f32.mrf.mxu3 }
0x361c   :  { %v3072_v30 = vadd.f32 %v3071_v40, %v3028_v38 }
0x361d   :  { %3660 = vtanh.f32 %v2978_v15 }
0x361e   :  { %v3122_v36 = vadd.f32 %v3111_v24, %v3072_v30 }
0x3620   :  { %v5749_v41 = vadd.f32 %v5712_v60, %v3122_v36 }
0x3623   :  { %v3661_v56 = vpop.eup %3660 }
0x3624   :  { %2982 = vrot.lane.b32.xlu0 %v3661_v56, %s3746_s29 }
0x3645   :  { %v5723_v12 = vpop.xlane.xlu1 %3135 }
0x3646   :  { %v3149_v37 = vsub.f32 %v5715_v43, %v5723_v12  ;;  %vm3220_vm8 = vcmp.ge.f32.partialorder %v5715_v43, %v5723_v12 }
0x3647   :  { %v3227_v10 = vsel %vm3220_vm8, %v5760_v59, 128.0 }
0x3648   :  { %v3156_v31 = vmul.f32 1.442695, %v3149_v37 }
0x364a   :  { %3662 = vpow2.f32 %v3156_v31 }
0x364d   :  { %v3142_v25 = vpop.xlane.xlu1 %3141 }
0x364e   :  { %3137 = vmax.xlane.f32.xlu0 %v5726_v45  ;;  %v3152_v46 = vsub.f32 %v5719_v48, %v3142_v25  ;;  %vm3223_vm9 = vcmp.ge.f32.partialorder %v5719_v48, %v3142_v25 }
0x364f   :  { %v3230_v39 = vsel %vm3223_vm9, %v5760_v59, 128.0 }
0x3650   :  { %v3162_v50 = vmul.f32 1.442695, %v3152_v46  ;;  %v3663_v21 = vpop.eup %3662 }
0x3652   :  { %3664 = vpow2.f32 %v3162_v50 }
0x3656   :  { %3143 = vmax.xlane.f32.xlu0 %v5732_v27 }
0x3658   :  { %v3665_v49 = vpop.eup %3664 }
0x365e   :  { %3170 = vadd.xlane.f32.xlu0 %v3663_v21 }
0x3666   :  { %3176 = vadd.xlane.f32.xlu0 %v3665_v49  ;;  %v3031_v49 = vpop.f32.mrf.mxu3 }
0x3696   :  { %v2983_v11 = vpop.permute.xlu0 %2982 }
0x3697   :  { %v2985_v53 = vmul.f32 %v2983_v11, %v2980_v3 }
0x3699   :  { %v2987_v26 = vadd.f32 %v2986_v55, %v2985_v53  ;;  %v3114_v53 = vpop.f32.mrf.mxu2 }
0x369b   :  { %3035 = vrot.lane.b32.xlu2 %v2987_v26, %s3746_s29 }
0x36c1   :  { %v5738_v17 = vpop.xlane.xlu0 %3137 }
0x36c2   :  { %v3150_v47 = vsub.f32 %v5726_v45, %v5738_v17  ;;  %vm3221_vm14 = vcmp.ge.f32.partialorder %v5726_v45, %v5738_v17 }
0x36c4   :  { %3139 = vmax.xlane.f32.xlu2 %v5741_v28  ;;  %v3158_v4 = vmul.f32 1.442695, %v3150_v47  ;;  %v3228_v47 = vsel %vm3221_vm14, %v5760_v59, 128.0 }
0x36c6   :  { %3666 = vpow2.f32 %v3158_v4 }
0x36c9   :  { %v5746_v58 = vpop.xlane.xlu0 %3143 }
0x36ca   :  { %v3153_v52 = vsub.f32 %v5732_v27, %v5746_v58  ;;  %vm3224_vm0 = vcmp.ge.f32.partialorder %v5732_v27, %v5746_v58 }
0x36cc   :  { %3145 = vmax.xlane.f32.xlu2 %v5749_v41  ;;  %v3164_v29 = vmul.f32 1.442695, %v3153_v52  ;;  %v3667_v44 = vpop.eup %3666 }
0x36d1   :  { %v3171_v62 = vpop.xlane.xlu0 %3170 }
0x36d2   :  { %3668 = vlog2.f32 %v3171_v62 }
0x36d3   :  { %3670 = vpow2.f32 %v3164_v29 }
0x36d4   :  { %3172 = vadd.xlane.f32.xlu2 %v3667_v44 }
0x36d8   :  { %v3669_v33 = vpop.eup %3668 }
0x36d9   :  { %v3185_v32 = vmul.f32 0.6931472, %v3669_v33  ;;  %v3177_v54 = vpop.xlane.xlu0 %3176  ;;  %v3671_v5 = vpop.eup %3670 }
0x36da   :  { %3672 = vlog2.f32 %v3177_v54 }
0x36db   :  { %v3198_v8 = vadd.f32 %v3185_v32, %v5723_v12 }
0x36dc   :  { %3178 = vadd.xlane.f32.xlu2 %v3671_v5 }
0x36dd   :  { %v3205_v35 = vsub.f32 %v5715_v43, %v3198_v8 }
0x36df   :  { %3212 = vst [vmem:[%s5876_s25] sm:$0xff] %v3205_v35 }
0x36e0   :  { %v3673_v19 = vpop.eup %3672 }
0x36e1   :  { %v3191_v61 = vmul.f32 0.6931472, %v3673_v19 }
0x36e3   :  { %v3201_v51 = vadd.f32 %v3191_v61, %v3142_v25 }
0x36e4   :  { %3234 = vmin.xlane.f32.xlu2 %v3227_v10 }
0x36e5   :  { %v3208_v7 = vsub.f32 %v5719_v48, %v3201_v51 }
0x36e7   :  { %3215 = vst [vmem:[%s5876_s25 + $0x18] sm:$0xff] %v3208_v7 }
0x36ec   :  { %3240 = vmin.xlane.f32.xlu2 %v3230_v39 }
0x36f5   :  { %v3036_v13 = vpop.permute.xlu2 %3035 }
0x36f6   :  { %3388 = vmatmul.msk.f32.gmra.mxu0 %vm501_vm15, %v3036_v13 }
0x3737   :  { %v5772_v23 = vpop.xlane.xlu2 %3139 }
0x3738   :  { %vm3222_vm11 = vcmp.ge.f32.partialorder %v5741_v28, %v5772_v23  ;;  %v3151_v3 = vsub.f32 %v5741_v28, %v5772_v23 }
0x3739   :  { %v3229_v43 = vsel %vm3222_vm11, %v5760_v59, 128.0 }
0x373a   :  { %3238 = vmin.xlane.f32.xlu0 %v3229_v43  ;;  %v3160_v63 = vmul.f32 1.442695, %v3151_v3 }
0x373f   :  { %v5777_v6 = vpop.xlane.xlu2 %3145 }
0x3740   :  { %v3154_v38 = vsub.f32 %v5749_v41, %v5777_v6  ;;  %vm3225_vm3 = vcmp.ge.f32.partialorder %v5749_v41, %v5777_v6 }
0x3741   :  { %v3232_v35 = vsel %vm3225_vm3, %v5760_v59, 128.0 }
0x3742   :  { %v3166_v40 = vmul.f32 1.442695, %v3154_v38 }
0x3747   :  { %v3173_v0 = vpop.xlane.xlu2 %3172 }
0x3748   :  { %3674 = vlog2.f32 %v3173_v0 }
0x374e   :  { %v3675_v14 = vpop.eup %3674 }
0x374f   :  { %v3187_v48 = vmul.f32 0.6931472, %v3675_v14  ;;  %v3179_v18 = vpop.xlane.xlu2 %3178 }
0x3750   :  { %3676 = vlog2.f32 %v3179_v18 }
0x3751   :  { %v3199_v15 = vadd.f32 %v3187_v48, %v5738_v17  ;;  %3678 = vpow2.f32 %v3160_v63 }
0x3752   :  { %3680 = vpow2.f32 %v3166_v40 }
0x3753   :  { %v3206_v56 = vsub.f32 %v5726_v45, %v3199_v15 }
0x3755   :  { %3213 = vst [vmem:[%s5876_s25 + $0x8] sm:$0xff] %v3206_v56 }
0x3756   :  { %v3677_v57 = vpop.eup %3676 }
0x3757   :  { %v3193_v16 = vmul.f32 0.6931472, %v3677_v57  ;;  %v3235_v22 = vpop.xlane.xlu2 %3234  ;;  %v3679_v30 = vpop.eup %3678 }
0x3758   :  { %vm3396_vm15 = vcmp.lt.s32.totalorder %v3235_v22, 0  ;;  %v3397_v12 = vceil.f32 %v3235_v22  ;;  %v3398_v42 = vfloor.f32 %v3235_v22  ;;  %v3681_v24 = vpop.eup %3680 }
0x3759   :  { %v3202_v34 = vadd.f32 %v3193_v16, %v5746_v58 }
0x375a   :  { %v3399_v9 = vsel %vm3396_vm15, %v3397_v12, %v3398_v42 }
0x375b   :  { %v3209_v37 = vsub.f32 %v5732_v27, %v3202_v34  ;;  %v3400_v2 = vcvt.f32.s32 %v3399_v9 }
0x375d   :  { %3216 = vst [vmem:[%s5876_s25 + $0x20] sm:$0xff] %v3209_v37 }
0x375e   :  { %3256 = vst.msk [vmem:[%s5877_s26] sm:$0xff] %vm3255_vm12, %v3400_v2 }
0x375f   :  { %v3241_v31 = vpop.xlane.xlu2 %3240 }
0x3760   :  { %vm3411_vm13 = vcmp.lt.s32.totalorder %v3241_v31, 0  ;;  %v3412_v25 = vceil.f32 %v3241_v31  ;;  %v3413_v46 = vfloor.f32 %v3241_v31 }
0x3762   :  { %v3414_v50 = vsel %vm3411_vm13, %v3412_v25, %v3413_v46 }
0x3763   :  { %v3415_v21 = vcvt.f32.s32 %v3414_v50 }
0x3765   :  { %3259 = vst.msk [vmem:[%s5877_s26 + $0x18] sm:$0xff] %vm3255_vm12, %v3415_v21 }
0x3773   :  { %v3074_v11 = vpop.f32.mrf.mxu0 }
0x3774   :  { %v3075_v55 = vadd.f32 %v3074_v11, %v3031_v49 }
0x3776   :  { %v3123_v26 = vadd.f32 %v3114_v53, %v3075_v55 }
0x3778   :  { %v5800_v1 = vadd.f32 %v5712_v60, %v3123_v26  ;;  %v3231_v60 = vsel %vm3224_vm0, %v5760_v59, 128.0 }
0x377a   :  { %3147 = vmax.xlane.f32.xlu1 %v5800_v1 }
0x3782   :  { %3174 = vadd.xlane.f32.xlu1 %v3679_v30 }
0x378a   :  { %3180 = vadd.xlane.f32.xlu1 %v3681_v24 }
0x3792   :  { %3236 = vmin.xlane.f32.xlu1 %v3228_v47 }
0x379a   :  { %3242 = vmin.xlane.f32.xlu1 %v3231_v60 }
0x37ad   :  { %v3239_v36 = vpop.xlane.xlu0 %3238 }
0x37ae   :  { %vm3406_vm1 = vcmp.lt.s32.totalorder %v3239_v36, 0  ;;  %v3407_v4 = vceil.f32 %v3239_v36  ;;  %v3408_v52 = vfloor.f32 %v3239_v36 }
0x37b0   :  { %v3409_v29 = vsel %vm3406_vm1, %v3407_v4, %v3408_v52 }
0x37b1   :  { %v3410_v62 = vcvt.f32.s32 %v3409_v29 }
0x37b3   :  { %3258 = vst.msk [vmem:[%s5877_s26 + $0x10] sm:$0xff] %vm3255_vm12, %v3410_v62 }
0x37ed   :  { %v3148_v45 = vpop.xlane.xlu1 %3147 }
0x37ee   :  { %v3155_v17 = vsub.f32 %v5800_v1, %v3148_v45  ;;  %vm3226_vm2 = vcmp.ge.f32.partialorder %v5800_v1, %v3148_v45 }
0x37ef   :  { %v3233_v27 = vsel %vm3226_vm2, %v5760_v59, 128.0 }
0x37f0   :  { %v3168_v58 = vmul.f32 1.442695, %v3155_v17  ;;  %3246 = vmin.xlane.f32.xlu2 %v3233_v27 }
0x37f2   :  { %3682 = vpow2.f32 %v3168_v58 }
0x37f5   :  { %v3175_v44 = vpop.xlane.xlu1 %3174 }
0x37f6   :  { %3684 = vlog2.f32 %v3175_v44 }
0x37f8   :  { %v3683_v33 = vpop.eup %3682 }
0x37f9   :  { %3182 = vadd.xlane.f32.xlu0 %v3683_v33 }
0x37fc   :  { %v3685_v32 = vpop.eup %3684 }
0x37fd   :  { %v3189_v54 = vmul.f32 0.6931472, %v3685_v32  ;;  %v3181_v5 = vpop.xlane.xlu1 %3180 }
0x37fe   :  { %3686 = vlog2.f32 %v3181_v5 }
0x37ff   :  { %v3200_v8 = vadd.f32 %v3189_v54, %v5772_v23 }
0x3801   :  { %v3207_v20 = vsub.f32 %v5741_v28, %v3200_v8  ;;  %3244 = vmin.xlane.f32.xlu0 %v3232_v35 }
0x3803   :  { %3214 = vst [vmem:[%s5876_s25 + $0x10] sm:$0xff] %v3207_v20 }
0x3804   :  { %v3687_v19 = vpop.eup %3686 }
0x3805   :  { %v3195_v61 = vmul.f32 0.6931472, %v3687_v19  ;;  %v3237_v51 = vpop.xlane.xlu1 %3236 }
0x3806   :  { %vm3401_vm4 = vcmp.lt.s32.totalorder %v3237_v51, 0  ;;  %v3402_v10 = vceil.f32 %v3237_v51  ;;  %v3403_v7 = vfloor.f32 %v3237_v51 }
0x3807   :  { %v3203_v39 = vadd.f32 %v3195_v61, %v5777_v6 }
0x3808   :  { %v3404_v13 = vsel %vm3401_vm4, %v3402_v10, %v3403_v7 }
0x3809   :  { %v3210_v23 = vsub.f32 %v5749_v41, %v3203_v39  ;;  %v3405_v43 = vcvt.f32.s32 %v3404_v13 }
0x380b   :  { %3217 = vst [vmem:[%s5876_s25 + $0x28] sm:$0xff] %v3210_v23 }
0x380c   :  { %3257 = vst.msk [vmem:[%s5877_s26 + $0x8] sm:$0xff] %vm3255_vm12, %v3405_v43 }
0x380d   :  { %v3243_v28 = vpop.xlane.xlu1 %3242 }
0x380e   :  { %vm3416_vm10 = vcmp.lt.s32.totalorder %v3243_v28, 0  ;;  %v3417_v59 = vceil.f32 %v3243_v28  ;;  %v3418_v0 = vfloor.f32 %v3243_v28 }
0x3810   :  { %v3419_v14 = vsel %vm3416_vm10, %v3417_v59, %v3418_v0 }
0x3811   :  { %v3420_v48 = vcvt.f32.s32 %v3419_v14 }
0x3813   :  { %3260 = vst.msk [vmem:[%s5877_s26 + $0x20] sm:$0xff] %vm3255_vm12, %v3420_v48 }
0x3863   :  { %v3247_v41 = vpop.xlane.xlu2 %3246 }
0x3864   :  { %vm3426_vm7 = vcmp.lt.s32.totalorder %v3247_v41, 0  ;;  %v3427_v6 = vceil.f32 %v3247_v41  ;;  %v3428_v18 = vfloor.f32 %v3247_v41 }
0x3866   :  { %v3429_v15 = vsel %vm3426_vm7, %v3427_v6, %v3428_v18 }
0x3867   :  { %v3430_v56 = vcvt.f32.s32 %v3429_v15 }
0x3869   :  { %3262 = vst.msk [vmem:[%s5877_s26 + $0x30] sm:$0xff] %vm3255_vm12, %v3430_v56 }
0x386c   :  { %v3183_v57 = vpop.xlane.xlu0 %3182 }
0x386d   :  { %3688 = vlog2.f32 %v3183_v57 }
0x3873   :  { %v3689_v16 = vpop.eup %3688 }
0x3874   :  { %v3197_v22 = vmul.f32 0.6931472, %v3689_v16  ;;  %v3245_v12 = vpop.xlane.xlu0 %3244 }
0x3875   :  { %vm3421_vm5 = vcmp.lt.s32.totalorder %v3245_v12, 0  ;;  %v3422_v42 = vceil.f32 %v3245_v12  ;;  %v3423_v34 = vfloor.f32 %v3245_v12 }
0x3876   :  { %v3204_v9 = vadd.f32 %v3197_v22, %v3148_v45 }
0x3877   :  { %v3424_v37 = vsel %vm3421_vm5, %v3422_v42, %v3423_v34 }
0x3878   :  { %v3211_v2 = vsub.f32 %v5800_v1, %v3204_v9  ;;  %v3425_v31 = vcvt.f32.s32 %v3424_v37 }
0x387a   :  { %3218 = vst [vmem:[%s5876_s25 + $0x30] sm:$0xff] %v3211_v2 }
0x387b   :  { %3261 = vst.msk [vmem:[%s5877_s26 + $0x28] sm:$0xff] %vm3255_vm12, %v3425_v31 }

</bundles_post_ra>
